<compile_context>
chip_gen: v6e
topology: v6e:2x2x1
jax: 0.10.0
libtpu: 0.0.40
codegen_flags: <defaults>
</compile_context>

<pallas_src>
import jax
import jax.numpy as jnp
from jax.experimental import pallas as pl
from jax.experimental.pallas import tpu as pltpu

# ----------------------------- synthetic config -----------------------------
B = 2                 # batch
C = 3                 # input channels
H = W = 16            # image size
PATCH = 4             # patch size
D = 32                # hidden size
NH = 2                # attention heads
HD = D // NH          # head dim
MLP = 4 * D           # MLP intermediate size
NREG = 4              # register tokens
NLAYERS = 2           # encoder layers
NP = (H // PATCH) * (W // PATCH)   # 16 patches
S = 1 + NREG + NP                  # cls + registers + patches = 21 tokens
SP = ((S + 7) // 8) * 8            # sequence padded to sublane multiple = 24
KDIM = C * PATCH * PATCH           # unfolded patch feature dim = 48
EPS = 1e-6            # Dinov2 layer_norm_eps


# ------------------------------ kernel helpers -------------------------------
def _layernorm(h, g, b):
    # f32 elementwise math (v5e has no bf16 VPU path)
    mu = jnp.mean(h, axis=-1, keepdims=True)
    var = jnp.mean((h - mu) ** 2, axis=-1, keepdims=True)
    return (h - mu) * jax.lax.rsqrt(var + EPS) * g + b


# ---------------------- fused full-forward kernel -----------------------------
def fused_forward_kernel(
    patches_ref,    # (B*SP, KDIM) bf16 : unfolded patches, zero rows at cls/reg/pad positions
    pw_ref,         # (KDIM, D)    bf16 : conv kernel in matmul form
    base_ref,       # (B*SP, D)    f32  : cls+pos0 ; registers ; pos_patch+conv_bias ; pad zeros
    ln1g, ln1b, wqkv, bqkv, wo, bo, ls1,
    ln2g, ln2b, w1, b1, w2, b2, ls2,
    out_ref,        # (B*SP, D)    f32
):
    # Patch embedding fused with token assembly: zero patch rows contribute nothing, so
    # base + patches @ Wp places the conv-as-matmul embedding only at the patch tokens.
    x = base_ref[...] + jnp.dot(
        patches_ref[...], pw_ref[...], preferred_element_type=jnp.float32)   # (B*SP, D) f32

    # Additive key-padding mask (padded token columns >= S get -1e30), built once, reused.
    key_pos = jax.lax.broadcasted_iota(jnp.int32, (SP, SP), 1)
    mask_bias = jnp.where(key_pos < S, 0.0, -1e30).astype(jnp.float32)       # (SP, SP)

    # Static layer loop; activation x stays resident on-chip the whole time.
    # TODO(synk): switch to lax.fori_loop + dynamic layer index when NLAYERS grows to 12-24.
    for li in range(NLAYERS):
        # ---------------- self-attention block (pre-LN, LayerScale) ----------------
        h = _layernorm(x, ln1g[li], ln1b[li])                                 # (B*SP, D) f32
        # Fused QKV projection: one wide matmul (scale already folded into Wq/bq at init).
        qkv = jnp.dot(h.astype(jnp.bfloat16), wqkv[li],
                      preferred_element_type=jnp.float32) + bqkv[li]          # (B*SP, 3D) f32
        qkv3 = qkv.reshape(B, SP, 3 * D)                                      # tile-aligned split

        ctx_heads = []
        for hd in range(NH):                                                  # unrolled, NH=2
            q = qkv3[:, :, hd * HD:(hd + 1) * HD]                             # (B, SP, HD) f32
            k = qkv3[:, :, D + hd * HD:D + (hd + 1) * HD]
            v = qkv3[:, :, 2 * D + hd * HD:2 * D + (hd + 1) * HD]
            s = jnp.einsum("bqe,bke->bqk", q, k,
                           preferred_element_type=jnp.float32) + mask_bias    # (B, SP, SP)
            # manual softmax; divide goes to the EUP via approx reciprocal
            m = jnp.max(s, axis=-1, keepdims=True)
            e = jnp.exp(s - m)
            r = pl.reciprocal(jnp.sum(e, axis=-1, keepdims=True), approx=True)
            p = e * r                                                         # (B, SP, SP) f32
            ctx_heads.append(jnp.einsum("bqk,bke->bqe", p, v,
                                        preferred_element_type=jnp.float32))  # (B, SP, HD)

        # Heads concatenated in lanes -> single (B*SP, D) x (D, D) output projection.
        ctx = jnp.concatenate(ctx_heads, axis=-1).reshape(B * SP, D)          # (B*SP, D) f32
        attn = jnp.dot(ctx.astype(jnp.bfloat16), wo[li],
                       preferred_element_type=jnp.float32) + bo[li]           # (B*SP, D)
        x = x + attn * ls1[li]                                                # LayerScale1 + residual

        # -------------------------- MLP block (pre-LN) -----------------------------
        h2 = _layernorm(x, ln2g[li], ln2b[li])
        m1 = jnp.dot(h2.astype(jnp.bfloat16), w1[li],
                     preferred_element_type=jnp.float32) + b1[li]
        # TODO(synk): HF Dinov2 uses exact (erf) GELU; tanh approximation for robust Mosaic lowering.
        m1 = jax.nn.gelu(m1, approximate=True)
        m2 = jnp.dot(m1.astype(jnp.bfloat16), w2[li],
                     preferred_element_type=jnp.float32) + b2[li]
        x = x + m2 * ls2[li]                                                  # LayerScale2 + residual

    out_ref[...] = x


# ------------------------------- JAX wrapper ----------------------------------
@jax.jit
def dinov2_backbone_forward(x, params):
    """x: [B, C, H, W] (NCHW) -> hidden_states[-1]: [B, 1+NREG+NP, D]"""
    # Unfold NCHW image to patches [B, NP, C*P*P].
    xp = x.reshape(B, C, H // PATCH, PATCH, W // PATCH, PATCH)
    xp = xp.transpose(0, 2, 4, 1, 3, 5).reshape(B, NP, KDIM)
    # Place patch rows at their token positions; zero rows at cls/register/pad positions.
    patches = jnp.zeros((B, SP, KDIM), jnp.float32)
    patches = patches.at[:, 1 + NREG:1 + NREG + NP, :].set(xp)
    patches = patches.reshape(B * SP, KDIM).astype(jnp.bfloat16)

    # Parameter-only token base: [CLS]+pos0 ; registers ; pos_patch + conv bias ; pad zeros.
    base = jnp.concatenate(
        [params["cls_token"] + params["pos_cls"],
         params["register_tokens"],
         params["pos_patch"] + params["patch_b"],
         jnp.zeros((SP - S, D), jnp.float32)],
        axis=0,
    )                                           # (SP, D)
    base = jnp.tile(base, (B, 1))               # (B*SP, D)

    args = [patches, params["patch_w"], base] + list(params["layers"])
    vmem_spec = pl.BlockSpec(memory_space=pltpu.MemorySpace.VMEM)

    out = pl.pallas_call(
        fused_forward_kernel,
        out_shape=jax.ShapeDtypeStruct((B * SP, D), jnp.float32),
        in_specs=[vmem_spec] * len(args),
        out_specs=vmem_spec,
    )(*args)

    return out.reshape(B, SP, D)[:, :S, :]      # drop sequence padding


# ------------------------------ parameter init ---------------------------------
def init_params(key):
    ks = jax.random.split(key, 4 + NLAYERS)

    def nrm(k, shape):
        return (0.02 * jax.random.normal(k, shape)).astype(jnp.float32)

    pos = nrm(ks[3], (1 + NP, D))
    params = {
        # conv weight [D, C, P, P] flattened & transposed to matmul form [C*P*P, D], bf16 for MXU
        "patch_w": nrm(ks[0], (KDIM, D)).astype(jnp.bfloat16),
        "patch_b": jnp.zeros((1, D), jnp.float32),
        "cls_token": nrm(ks[1], (1, D)),
        "register_tokens": nrm(ks[2], (NREG, D)),
        "pos_cls": pos[:1],         # (1, D)
        "pos_patch": pos[1:],       # (NP, D)
    }

    scale = 1.0 / (HD ** 0.5)
    names = ["ln1g", "ln1b", "wqkv", "bqkv", "wo", "bo", "ls1",
             "ln2g", "ln2b", "w1", "b1", "w2", "b2", "ls2"]
    per_layer = []
    for li in range(NLAYERS):
        lk = jax.random.split(ks[4 + li], 6)
        # 1/sqrt(HD) folded into the query projection (weight AND bias).
        wq = nrm(lk[0], (D, D)) * scale
        wk = nrm(lk[1], (D, D))
        wv = nrm(lk[2], (D, D))
        bq = jnp.zeros((1, D), jnp.float32) * scale
        bk = jnp.zeros((1, D), jnp.float32)
        bv = jnp.zeros((1, D), jnp.float32)
        layer = {
            "ln1g": jnp.ones((1, D), jnp.float32), "ln1b": jnp.zeros((1, D), jnp.float32),
            # lane-concatenated fused QKV weight/bias (head h = lanes h*HD:(h+1)*HD in each block)
            "wqkv": jnp.concatenate([wq, wk, wv], axis=1).astype(jnp.bfloat16),   # (D, 3D)
            "bqkv": jnp.concatenate([bq, bk, bv], axis=1),                        # (1, 3D)
            "wo": nrm(lk[3], (D, D)).astype(jnp.bfloat16),                        # (D, D)
            "bo": jnp.zeros((1, D), jnp.float32),
            "ls1": jnp.ones((1, D), jnp.float32),     # LayerScale1 lambda
            "ln2g": jnp.ones((1, D), jnp.float32), "ln2b": jnp.zeros((1, D), jnp.float32),
            "w1": nrm(lk[4], (D, MLP)).astype(jnp.bfloat16), "b1": jnp.zeros((1, MLP), jnp.float32),
            "w2": nrm(lk[5], (MLP, D)).astype(jnp.bfloat16), "b2": jnp.zeros((1, D), jnp.float32),
            "ls2": jnp.ones((1, D), jnp.float32),     # LayerScale2 lambda
        }
        per_layer.append(layer)

    # stack per-layer params on a leading layer axis -> 14 arrays, statically indexed in-kernel
    params["layers"] = [jnp.stack([l[n] for l in per_layer], axis=0) for n in names]
    return params


if __name__ == "__main__":
    key = jax.random.PRNGKey(0)
    kx, kp = jax.random.split(key)
    x = jax.random.normal(kx, (B, C, H, W), dtype=jnp.float32)
    params = init_params(kp)

    feats = dinov2_backbone_forward(x, params)
    feats = jax.block_until_ready(feats)

    assert feats.shape == (B, S, D), feats.shape
    assert feats.dtype == jnp.float32
    assert bool(jnp.all(jnp.isfinite(feats)))
    print("KERNEL_OK")
</pallas_src>

<mosaic_0001>
module attributes {stable_mosaic.version = 11 : i64} {
  func.func @fused_forward_kernel(%arg0: memref<48x48xbf16, #tpu.memory_space<vmem>>, %arg1: memref<48x32xbf16, #tpu.memory_space<vmem>>, %arg2: memref<48x32xf32, #tpu.memory_space<vmem>>, %arg3: memref<2x1x32xf32, #tpu.memory_space<vmem>>, %arg4: memref<2x1x32xf32, #tpu.memory_space<vmem>>, %arg5: memref<2x32x96xbf16, #tpu.memory_space<vmem>>, %arg6: memref<2x1x96xf32, #tpu.memory_space<vmem>>, %arg7: memref<2x32x32xbf16, #tpu.memory_space<vmem>>, %arg8: memref<2x1x32xf32, #tpu.memory_space<vmem>>, %arg9: memref<2x1x32xf32, #tpu.memory_space<vmem>>, %arg10: memref<2x1x32xf32, #tpu.memory_space<vmem>>, %arg11: memref<2x1x32xf32, #tpu.memory_space<vmem>>, %arg12: memref<2x32x128xbf16, #tpu.memory_space<vmem>>, %arg13: memref<2x1x128xf32, #tpu.memory_space<vmem>>, %arg14: memref<2x128x32xbf16, #tpu.memory_space<vmem>>, %arg15: memref<2x1x32xf32, #tpu.memory_space<vmem>>, %arg16: memref<2x1x32xf32, #tpu.memory_space<vmem>>, %arg17: memref<48x32xf32, #tpu.memory_space<vmem>>) attributes {dimension_semantics = [], scalar_prefetch = 0 : i64, scratch_operands = 0 : i64, tpu.core_type = #tpu.core_type<tc>} {
    %c0 = arith.constant 0 : index
    %c0_0 = arith.constant 0 : index
    %0 = vector.load %arg2[%c0, %c0_0] : memref<48x32xf32, #tpu.memory_space<vmem>>, vector<48x32xf32>
    %c0_1 = arith.constant 0 : index
    %c0_2 = arith.constant 0 : index
    %1 = vector.load %arg0[%c0_1, %c0_2] : memref<48x48xbf16, #tpu.memory_space<vmem>>, vector<48x48xbf16>
    %c0_3 = arith.constant 0 : index
    %c0_4 = arith.constant 0 : index
    %2 = vector.load %arg1[%c0_3, %c0_4] : memref<48x32xbf16, #tpu.memory_space<vmem>>, vector<48x32xbf16>
    %cst = arith.constant dense<0.000000e+00> : vector<48x32xf32>
    %3 = tpu.matmul %1, %2, %cst {dimension_numbers = #tpu.dot_dimension_numbers<[1], [0], [0], [1], [0, 0, 1, 1], [], []>} : vector<48x48xbf16>, vector<48x32xbf16>, vector<48x32xf32> -> vector<48x32xf32>
    %4 = arith.addf %0, %3 : vector<48x32xf32>
    %5 = tpu.iota {dimensions = array<i32: 1>} : vector<24x24xi32>
    %c21_i32 = arith.constant 21 : i32
    %6 = vector.broadcast %c21_i32 : i32 to vector<24x24xi32>
    %7 = arith.cmpi slt, %5, %6 : vector<24x24xi32>
    %cst_5 = arith.constant 0.000000e+00 : f32
    %cst_6 = arith.constant -1.000000e+30 : f32
    %8 = vector.broadcast %cst_5 : f32 to vector<24x24xf32>
    %9 = vector.broadcast %cst_6 : f32 to vector<24x24xf32>
    %10 = arith.select %7, %8, %9 : vector<24x24xi1>, vector<24x24xf32>
    %c0_7 = arith.constant 0 : index
    %c0_8 = arith.constant 0 : index
    %c0_9 = arith.constant 0 : index
    %11 = vector.load %arg3[%c0_7, %c0_8, %c0_9] : memref<2x1x32xf32, #tpu.memory_space<vmem>>, vector<1x1x32xf32>
    %12 = vector.shape_cast %11 : vector<1x1x32xf32> to vector<1x32xf32>
    %c0_10 = arith.constant 0 : index
    %c0_11 = arith.constant 0 : index
    %c0_12 = arith.constant 0 : index
    %13 = vector.load %arg4[%c0_10, %c0_11, %c0_12] : memref<2x1x32xf32, #tpu.memory_space<vmem>>, vector<1x1x32xf32>
    %14 = vector.shape_cast %13 : vector<1x1x32xf32> to vector<1x32xf32>
    %cst_13 = arith.constant dense<0.000000e+00> : vector<48xf32>
    %15 = vector.multi_reduction <add>, %4, %cst_13 [1] : vector<48x32xf32> to vector<48xf32>
    %16 = vector.shape_cast %15 : vector<48xf32> to vector<48x1xf32>
    %cst_14 = arith.constant 3.200000e+01 : f32
    %17 = vector.broadcast %cst_14 : f32 to vector<48x1xf32>
    %18 = arith.divf %16, %17 : vector<48x1xf32>
    %19 = vector.broadcast %18 : vector<48x1xf32> to vector<48x32xf32>
    %20 = arith.subf %4, %19 : vector<48x32xf32>
    %21 = arith.mulf %20, %20 : vector<48x32xf32>
    %cst_15 = arith.constant dense<0.000000e+00> : vector<48xf32>
    %22 = vector.multi_reduction <add>, %21, %cst_15 [1] : vector<48x32xf32> to vector<48xf32>
    %23 = vector.shape_cast %22 : vector<48xf32> to vector<48x1xf32>
    %cst_16 = arith.constant 3.200000e+01 : f32
    %24 = vector.broadcast %cst_16 : f32 to vector<48x1xf32>
    %25 = arith.divf %23, %24 : vector<48x1xf32>
    %26 = vector.broadcast %18 : vector<48x1xf32> to vector<48x32xf32>
    %27 = arith.subf %4, %26 : vector<48x32xf32>
    %cst_17 = arith.constant 9.99999997E-7 : f32
    %28 = vector.broadcast %cst_17 : f32 to vector<48x1xf32>
    %29 = arith.addf %25, %28 : vector<48x1xf32>
    %30 = math.rsqrt %29 : vector<48x1xf32>
    %31 = vector.broadcast %30 : vector<48x1xf32> to vector<48x32xf32>
    %32 = arith.mulf %27, %31 : vector<48x32xf32>
    %33 = vector.broadcast %12 : vector<1x32xf32> to vector<48x32xf32>
    %34 = arith.mulf %32, %33 : vector<48x32xf32>
    %35 = vector.broadcast %14 : vector<1x32xf32> to vector<48x32xf32>
    %36 = arith.addf %34, %35 : vector<48x32xf32>
    %37 = arith.truncf %36 : vector<48x32xf32> to vector<48x32xbf16>
    %c0_18 = arith.constant 0 : index
    %c0_19 = arith.constant 0 : index
    %c0_20 = arith.constant 0 : index
    %38 = vector.load %arg5[%c0_18, %c0_19, %c0_20] : memref<2x32x96xbf16, #tpu.memory_space<vmem>>, vector<1x32x96xbf16>
    %39 = vector.shape_cast %38 : vector<1x32x96xbf16> to vector<32x96xbf16>
    %cst_21 = arith.constant dense<0.000000e+00> : vector<48x96xf32>
    %40 = tpu.matmul %37, %39, %cst_21 {dimension_numbers = #tpu.dot_dimension_numbers<[1], [0], [0], [1], [0, 0, 1, 1], [], []>} : vector<48x32xbf16>, vector<32x96xbf16>, vector<48x96xf32> -> vector<48x96xf32>
    %c0_22 = arith.constant 0 : index
    %c0_23 = arith.constant 0 : index
    %c0_24 = arith.constant 0 : index
    %41 = vector.load %arg6[%c0_22, %c0_23, %c0_24] : memref<2x1x96xf32, #tpu.memory_space<vmem>>, vector<1x1x96xf32>
    %42 = vector.shape_cast %41 : vector<1x1x96xf32> to vector<1x96xf32>
    %43 = vector.broadcast %42 : vector<1x96xf32> to vector<48x96xf32>
    %44 = arith.addf %40, %43 : vector<48x96xf32>
    %45 = vector.shape_cast %44 : vector<48x96xf32> to vector<2x24x96xf32>
    %46 = vector.extract_strided_slice %45 {offsets = [0, 0, 0], sizes = [2, 24, 16], strides = [1, 1, 1]} : vector<2x24x96xf32> to vector<2x24x16xf32>
    %47 = vector.extract_strided_slice %45 {offsets = [0, 0, 32], sizes = [2, 24, 16], strides = [1, 1, 1]} : vector<2x24x96xf32> to vector<2x24x16xf32>
    %48 = vector.extract_strided_slice %45 {offsets = [0, 0, 64], sizes = [2, 24, 16], strides = [1, 1, 1]} : vector<2x24x96xf32> to vector<2x24x16xf32>
    "tpu.trace_start"() <{level = 10 : i32, message = "bqe,bke->bqk"}> : () -> ()
    %cst_25 = arith.constant dense<0.000000e+00> : vector<2x24x24xf32>
    %49 = tpu.matmul %46, %47, %cst_25 {dimension_numbers = #tpu.dot_dimension_numbers<[2], [2], [1], [1], [0, 0, 0, 1, 1, 1], [0], [0]>} : vector<2x24x16xf32>, vector<2x24x16xf32>, vector<2x24x24xf32> -> vector<2x24x24xf32>
    "tpu.trace_stop"() : () -> ()
    %50 = vector.shape_cast %10 : vector<24x24xf32> to vector<1x24x24xf32>
    %51 = vector.broadcast %50 : vector<1x24x24xf32> to vector<2x24x24xf32>
    %52 = arith.addf %49, %51 : vector<2x24x24xf32>
    %cst_26 = arith.constant dense<0xFF800000> : vector<2x24xf32>
    %53 = vector.multi_reduction <maximumf>, %52, %cst_26 [2] : vector<2x24x24xf32> to vector<2x24xf32>
    %54 = vector.shape_cast %53 : vector<2x24xf32> to vector<2x24x1xf32>
    %55 = vector.broadcast %54 : vector<2x24x1xf32> to vector<2x24x24xf32>
    %56 = arith.subf %52, %55 : vector<2x24x24xf32>
    %57 = math.exp %56 : vector<2x24x24xf32>
    %cst_27 = arith.constant dense<0.000000e+00> : vector<2x24xf32>
    %58 = vector.multi_reduction <add>, %57, %cst_27 [2] : vector<2x24x24xf32> to vector<2x24xf32>
    %59 = vector.shape_cast %58 : vector<2x24xf32> to vector<2x24x1xf32>
    %60 = tpu.reciprocal %59 {approx = true} : vector<2x24x1xf32> -> vector<2x24x1xf32>
    %61 = vector.broadcast %60 : vector<2x24x1xf32> to vector<2x24x24xf32>
    %62 = arith.mulf %57, %61 : vector<2x24x24xf32>
    "tpu.trace_start"() <{level = 10 : i32, message = "bqk,bke->bqe"}> : () -> ()
    %cst_28 = arith.constant dense<0.000000e+00> : vector<2x24x16xf32>
    %63 = tpu.matmul %62, %48, %cst_28 {dimension_numbers = #tpu.dot_dimension_numbers<[2], [1], [1], [2], [0, 0, 0, 1, 1, 2], [0], [0]>} : vector<2x24x24xf32>, vector<2x24x16xf32>, vector<2x24x16xf32> -> vector<2x24x16xf32>
    "tpu.trace_stop"() : () -> ()
    %64 = vector.extract_strided_slice %45 {offsets = [0, 0, 16], sizes = [2, 24, 16], strides = [1, 1, 1]} : vector<2x24x96xf32> to vector<2x24x16xf32>
    %65 = vector.extract_strided_slice %45 {offsets = [0, 0, 48], sizes = [2, 24, 16], strides = [1, 1, 1]} : vector<2x24x96xf32> to vector<2x24x16xf32>
    %66 = vector.extract_strided_slice %45 {offsets = [0, 0, 80], sizes = [2, 24, 16], strides = [1, 1, 1]} : vector<2x24x96xf32> to vector<2x24x16xf32>
    "tpu.trace_start"() <{level = 10 : i32, message = "bqe,bke->bqk"}> : () -> ()
    %cst_29 = arith.constant dense<0.000000e+00> : vector<2x24x24xf32>
    %67 = tpu.matmul %64, %65, %cst_29 {dimension_numbers = #tpu.dot_dimension_numbers<[2], [2], [1], [1], [0, 0, 0, 1, 1, 1], [0], [0]>} : vector<2x24x16xf32>, vector<2x24x16xf32>, vector<2x24x24xf32> -> vector<2x24x24xf32>
    "tpu.trace_stop"() : () -> ()
    %68 = vector.shape_cast %10 : vector<24x24xf32> to vector<1x24x24xf32>
    %69 = vector.broadcast %68 : vector<1x24x24xf32> to vector<2x24x24xf32>
    %70 = arith.addf %67, %69 : vector<2x24x24xf32>
    %cst_30 = arith.constant dense<0xFF800000> : vector<2x24xf32>
    %71 = vector.multi_reduction <maximumf>, %70, %cst_30 [2] : vector<2x24x24xf32> to vector<2x24xf32>
    %72 = vector.shape_cast %71 : vector<2x24xf32> to vector<2x24x1xf32>
    %73 = vector.broadcast %72 : vector<2x24x1xf32> to vector<2x24x24xf32>
    %74 = arith.subf %70, %73 : vector<2x24x24xf32>
    %75 = math.exp %74 : vector<2x24x24xf32>
    %cst_31 = arith.constant dense<0.000000e+00> : vector<2x24xf32>
    %76 = vector.multi_reduction <add>, %75, %cst_31 [2] : vector<2x24x24xf32> to vector<2x24xf32>
    %77 = vector.shape_cast %76 : vector<2x24xf32> to vector<2x24x1xf32>
    %78 = tpu.reciprocal %77 {approx = true} : vector<2x24x1xf32> -> vector<2x24x1xf32>
    %79 = vector.broadcast %78 : vector<2x24x1xf32> to vector<2x24x24xf32>
    %80 = arith.mulf %75, %79 : vector<2x24x24xf32>
    "tpu.trace_start"() <{level = 10 : i32, message = "bqk,bke->bqe"}> : () -> ()
    %cst_32 = arith.constant dense<0.000000e+00> : vector<2x24x16xf32>
    %81 = tpu.matmul %80, %66, %cst_32 {dimension_numbers = #tpu.dot_dimension_numbers<[2], [1], [1], [2], [0, 0, 0, 1, 1, 2], [0], [0]>} : vector<2x24x24xf32>, vector<2x24x16xf32>, vector<2x24x16xf32> -> vector<2x24x16xf32>
    "tpu.trace_stop"() : () -> ()
    %82 = tpu.concatenate %63, %81 in 2 : vector<2x24x16xf32>, vector<2x24x16xf32> -> vector<2x24x32xf32>
    %83 = vector.shape_cast %82 : vector<2x24x32xf32> to vector<48x32xf32>
    %84 = arith.truncf %83 : vector<48x32xf32> to vector<48x32xbf16>
    %c0_33 = arith.constant 0 : index
    %c0_34 = arith.constant 0 : index
    %c0_35 = arith.constant 0 : index
    %85 = vector.load %arg7[%c0_33, %c0_34, %c0_35] : memref<2x32x32xbf16, #tpu.memory_space<vmem>>, vector<1x32x32xbf16>
    %86 = vector.shape_cast %85 : vector<1x32x32xbf16> to vector<32x32xbf16>
    %cst_36 = arith.constant dense<0.000000e+00> : vector<48x32xf32>
    %87 = tpu.matmul %84, %86, %cst_36 {dimension_numbers = #tpu.dot_dimension_numbers<[1], [0], [0], [1], [0, 0, 1, 1], [], []>} : vector<48x32xbf16>, vector<32x32xbf16>, vector<48x32xf32> -> vector<48x32xf32>
    %c0_37 = arith.constant 0 : index
    %c0_38 = arith.constant 0 : index
    %c0_39 = arith.constant 0 : index
    %88 = vector.load %arg8[%c0_37, %c0_38, %c0_39] : memref<2x1x32xf32, #tpu.memory_space<vmem>>, vector<1x1x32xf32>
    %89 = vector.shape_cast %88 : vector<1x1x32xf32> to vector<1x32xf32>
    %90 = vector.broadcast %89 : vector<1x32xf32> to vector<48x32xf32>
    %91 = arith.addf %87, %90 : vector<48x32xf32>
    %c0_40 = arith.constant 0 : index
    %c0_41 = arith.constant 0 : index
    %c0_42 = arith.constant 0 : index
    %92 = vector.load %arg9[%c0_40, %c0_41, %c0_42] : memref<2x1x32xf32, #tpu.memory_space<vmem>>, vector<1x1x32xf32>
    %93 = vector.shape_cast %92 : vector<1x1x32xf32> to vector<1x32xf32>
    %94 = vector.broadcast %93 : vector<1x32xf32> to vector<48x32xf32>
    %95 = arith.mulf %91, %94 : vector<48x32xf32>
    %96 = arith.addf %4, %95 : vector<48x32xf32>
    %c0_43 = arith.constant 0 : index
    %c0_44 = arith.constant 0 : index
    %c0_45 = arith.constant 0 : index
    %97 = vector.load %arg10[%c0_43, %c0_44, %c0_45] : memref<2x1x32xf32, #tpu.memory_space<vmem>>, vector<1x1x32xf32>
    %98 = vector.shape_cast %97 : vector<1x1x32xf32> to vector<1x32xf32>
    %c0_46 = arith.constant 0 : index
    %c0_47 = arith.constant 0 : index
    %c0_48 = arith.constant 0 : index
    %99 = vector.load %arg11[%c0_46, %c0_47, %c0_48] : memref<2x1x32xf32, #tpu.memory_space<vmem>>, vector<1x1x32xf32>
    %100 = vector.shape_cast %99 : vector<1x1x32xf32> to vector<1x32xf32>
    %cst_49 = arith.constant dense<0.000000e+00> : vector<48xf32>
    %101 = vector.multi_reduction <add>, %96, %cst_49 [1] : vector<48x32xf32> to vector<48xf32>
    %102 = vector.shape_cast %101 : vector<48xf32> to vector<48x1xf32>
    %cst_50 = arith.constant 3.200000e+01 : f32
    %103 = vector.broadcast %cst_50 : f32 to vector<48x1xf32>
    %104 = arith.divf %102, %103 : vector<48x1xf32>
    %105 = vector.broadcast %104 : vector<48x1xf32> to vector<48x32xf32>
    %106 = arith.subf %96, %105 : vector<48x32xf32>
    %107 = arith.mulf %106, %106 : vector<48x32xf32>
    %cst_51 = arith.constant dense<0.000000e+00> : vector<48xf32>
    %108 = vector.multi_reduction <add>, %107, %cst_51 [1] : vector<48x32xf32> to vector<48xf32>
    %109 = vector.shape_cast %108 : vector<48xf32> to vector<48x1xf32>
    %cst_52 = arith.constant 3.200000e+01 : f32
    %110 = vector.broadcast %cst_52 : f32 to vector<48x1xf32>
    %111 = arith.divf %109, %110 : vector<48x1xf32>
    %112 = vector.broadcast %104 : vector<48x1xf32> to vector<48x32xf32>
    %113 = arith.subf %96, %112 : vector<48x32xf32>
    %cst_53 = arith.constant 9.99999997E-7 : f32
    %114 = vector.broadcast %cst_53 : f32 to vector<48x1xf32>
    %115 = arith.addf %111, %114 : vector<48x1xf32>
    %116 = math.rsqrt %115 : vector<48x1xf32>
    %117 = vector.broadcast %116 : vector<48x1xf32> to vector<48x32xf32>
    %118 = arith.mulf %113, %117 : vector<48x32xf32>
    %119 = vector.broadcast %98 : vector<1x32xf32> to vector<48x32xf32>
    %120 = arith.mulf %118, %119 : vector<48x32xf32>
    %121 = vector.broadcast %100 : vector<1x32xf32> to vector<48x32xf32>
    %122 = arith.addf %120, %121 : vector<48x32xf32>
    %123 = arith.truncf %122 : vector<48x32xf32> to vector<48x32xbf16>
    %c0_54 = arith.constant 0 : index
    %c0_55 = arith.constant 0 : index
    %c0_56 = arith.constant 0 : index
    %124 = vector.load %arg12[%c0_54, %c0_55, %c0_56] : memref<2x32x128xbf16, #tpu.memory_space<vmem>>, vector<1x32x128xbf16>
    %125 = vector.shape_cast %124 : vector<1x32x128xbf16> to vector<32x128xbf16>
    %cst_57 = arith.constant dense<0.000000e+00> : vector<48x128xf32>
    %126 = tpu.matmul %123, %125, %cst_57 {dimension_numbers = #tpu.dot_dimension_numbers<[1], [0], [0], [1], [0, 0, 1, 1], [], []>} : vector<48x32xbf16>, vector<32x128xbf16>, vector<48x128xf32> -> vector<48x128xf32>
    %c0_58 = arith.constant 0 : index
    %c0_59 = arith.constant 0 : index
    %c0_60 = arith.constant 0 : index
    %127 = vector.load %arg13[%c0_58, %c0_59, %c0_60] : memref<2x1x128xf32, #tpu.memory_space<vmem>>, vector<1x1x128xf32>
    %128 = vector.shape_cast %127 : vector<1x1x128xf32> to vector<1x128xf32>
    %129 = vector.broadcast %128 : vector<1x128xf32> to vector<48x128xf32>
    %130 = arith.addf %126, %129 : vector<48x128xf32>
    %131 = arith.mulf %130, %130 : vector<48x128xf32>
    %132 = arith.mulf %130, %131 : vector<48x128xf32>
    %cst_61 = arith.constant 4.471500e-02 : f32
    %133 = vector.broadcast %cst_61 : f32 to vector<48x128xf32>
    %134 = arith.mulf %133, %132 : vector<48x128xf32>
    %135 = arith.addf %130, %134 : vector<48x128xf32>
    %cst_62 = arith.constant 0.797884583 : f32
    %136 = vector.broadcast %cst_62 : f32 to vector<48x128xf32>
    %137 = arith.mulf %136, %135 : vector<48x128xf32>
    %138 = math.tanh %137 : vector<48x128xf32>
    %cst_63 = arith.constant 1.000000e+00 : f32
    %139 = vector.broadcast %cst_63 : f32 to vector<48x128xf32>
    %140 = arith.addf %139, %138 : vector<48x128xf32>
    %cst_64 = arith.constant 5.000000e-01 : f32
    %141 = vector.broadcast %cst_64 : f32 to vector<48x128xf32>
    %142 = arith.mulf %141, %140 : vector<48x128xf32>
    %143 = arith.mulf %130, %142 : vector<48x128xf32>
    %144 = arith.truncf %143 : vector<48x128xf32> to vector<48x128xbf16>
    %c0_65 = arith.constant 0 : index
    %c0_66 = arith.constant 0 : index
    %c0_67 = arith.constant 0 : index
    %145 = vector.load %arg14[%c0_65, %c0_66, %c0_67] : memref<2x128x32xbf16, #tpu.memory_space<vmem>>, vector<1x128x32xbf16>
    %146 = vector.shape_cast %145 : vector<1x128x32xbf16> to vector<128x32xbf16>
    %cst_68 = arith.constant dense<0.000000e+00> : vector<48x32xf32>
    %147 = tpu.matmul %144, %146, %cst_68 {dimension_numbers = #tpu.dot_dimension_numbers<[1], [0], [0], [1], [0, 0, 1, 1], [], []>} : vector<48x128xbf16>, vector<128x32xbf16>, vector<48x32xf32> -> vector<48x32xf32>
    %c0_69 = arith.constant 0 : index
    %c0_70 = arith.constant 0 : index
    %c0_71 = arith.constant 0 : index
    %148 = vector.load %arg15[%c0_69, %c0_70, %c0_71] : memref<2x1x32xf32, #tpu.memory_space<vmem>>, vector<1x1x32xf32>
    %149 = vector.shape_cast %148 : vector<1x1x32xf32> to vector<1x32xf32>
    %150 = vector.broadcast %149 : vector<1x32xf32> to vector<48x32xf32>
    %151 = arith.addf %147, %150 : vector<48x32xf32>
    %c0_72 = arith.constant 0 : index
    %c0_73 = arith.constant 0 : index
    %c0_74 = arith.constant 0 : index
    %152 = vector.load %arg16[%c0_72, %c0_73, %c0_74] : memref<2x1x32xf32, #tpu.memory_space<vmem>>, vector<1x1x32xf32>
    %153 = vector.shape_cast %152 : vector<1x1x32xf32> to vector<1x32xf32>
    %154 = vector.broadcast %153 : vector<1x32xf32> to vector<48x32xf32>
    %155 = arith.mulf %151, %154 : vector<48x32xf32>
    %156 = arith.addf %96, %155 : vector<48x32xf32>
    %c1 = arith.constant 1 : index
    %c0_75 = arith.constant 0 : index
    %c0_76 = arith.constant 0 : index
    %157 = vector.load %arg3[%c1, %c0_75, %c0_76] : memref<2x1x32xf32, #tpu.memory_space<vmem>>, vector<1x1x32xf32>
    %158 = vector.shape_cast %157 : vector<1x1x32xf32> to vector<1x32xf32>
    %c1_77 = arith.constant 1 : index
    %c0_78 = arith.constant 0 : index
    %c0_79 = arith.constant 0 : index
    %159 = vector.load %arg4[%c1_77, %c0_78, %c0_79] : memref<2x1x32xf32, #tpu.memory_space<vmem>>, vector<1x1x32xf32>
    %160 = vector.shape_cast %159 : vector<1x1x32xf32> to vector<1x32xf32>
    %cst_80 = arith.constant dense<0.000000e+00> : vector<48xf32>
    %161 = vector.multi_reduction <add>, %156, %cst_80 [1] : vector<48x32xf32> to vector<48xf32>
    %162 = vector.shape_cast %161 : vector<48xf32> to vector<48x1xf32>
    %cst_81 = arith.constant 3.200000e+01 : f32
    %163 = vector.broadcast %cst_81 : f32 to vector<48x1xf32>
    %164 = arith.divf %162, %163 : vector<48x1xf32>
    %165 = vector.broadcast %164 : vector<48x1xf32> to vector<48x32xf32>
    %166 = arith.subf %156, %165 : vector<48x32xf32>
    %167 = arith.mulf %166, %166 : vector<48x32xf32>
    %cst_82 = arith.constant dense<0.000000e+00> : vector<48xf32>
    %168 = vector.multi_reduction <add>, %167, %cst_82 [1] : vector<48x32xf32> to vector<48xf32>
    %169 = vector.shape_cast %168 : vector<48xf32> to vector<48x1xf32>
    %cst_83 = arith.constant 3.200000e+01 : f32
    %170 = vector.broadcast %cst_83 : f32 to vector<48x1xf32>
    %171 = arith.divf %169, %170 : vector<48x1xf32>
    %172 = vector.broadcast %164 : vector<48x1xf32> to vector<48x32xf32>
    %173 = arith.subf %156, %172 : vector<48x32xf32>
    %cst_84 = arith.constant 9.99999997E-7 : f32
    %174 = vector.broadcast %cst_84 : f32 to vector<48x1xf32>
    %175 = arith.addf %171, %174 : vector<48x1xf32>
    %176 = math.rsqrt %175 : vector<48x1xf32>
    %177 = vector.broadcast %176 : vector<48x1xf32> to vector<48x32xf32>
    %178 = arith.mulf %173, %177 : vector<48x32xf32>
    %179 = vector.broadcast %158 : vector<1x32xf32> to vector<48x32xf32>
    %180 = arith.mulf %178, %179 : vector<48x32xf32>
    %181 = vector.broadcast %160 : vector<1x32xf32> to vector<48x32xf32>
    %182 = arith.addf %180, %181 : vector<48x32xf32>
    %183 = arith.truncf %182 : vector<48x32xf32> to vector<48x32xbf16>
    %c1_85 = arith.constant 1 : index
    %c0_86 = arith.constant 0 : index
    %c0_87 = arith.constant 0 : index
    %184 = vector.load %arg5[%c1_85, %c0_86, %c0_87] : memref<2x32x96xbf16, #tpu.memory_space<vmem>>, vector<1x32x96xbf16>
    %185 = vector.shape_cast %184 : vector<1x32x96xbf16> to vector<32x96xbf16>
    %cst_88 = arith.constant dense<0.000000e+00> : vector<48x96xf32>
    %186 = tpu.matmul %183, %185, %cst_88 {dimension_numbers = #tpu.dot_dimension_numbers<[1], [0], [0], [1], [0, 0, 1, 1], [], []>} : vector<48x32xbf16>, vector<32x96xbf16>, vector<48x96xf32> -> vector<48x96xf32>
    %c1_89 = arith.constant 1 : index
    %c0_90 = arith.constant 0 : index
    %c0_91 = arith.constant 0 : index
    %187 = vector.load %arg6[%c1_89, %c0_90, %c0_91] : memref<2x1x96xf32, #tpu.memory_space<vmem>>, vector<1x1x96xf32>
    %188 = vector.shape_cast %187 : vector<1x1x96xf32> to vector<1x96xf32>
    %189 = vector.broadcast %188 : vector<1x96xf32> to vector<48x96xf32>
    %190 = arith.addf %186, %189 : vector<48x96xf32>
    %191 = vector.shape_cast %190 : vector<48x96xf32> to vector<2x24x96xf32>
    %192 = vector.extract_strided_slice %191 {offsets = [0, 0, 0], sizes = [2, 24, 16], strides = [1, 1, 1]} : vector<2x24x96xf32> to vector<2x24x16xf32>
    %193 = vector.extract_strided_slice %191 {offsets = [0, 0, 32], sizes = [2, 24, 16], strides = [1, 1, 1]} : vector<2x24x96xf32> to vector<2x24x16xf32>
    %194 = vector.extract_strided_slice %191 {offsets = [0, 0, 64], sizes = [2, 24, 16], strides = [1, 1, 1]} : vector<2x24x96xf32> to vector<2x24x16xf32>
    "tpu.trace_start"() <{level = 10 : i32, message = "bqe,bke->bqk"}> : () -> ()
    %cst_92 = arith.constant dense<0.000000e+00> : vector<2x24x24xf32>
    %195 = tpu.matmul %192, %193, %cst_92 {dimension_numbers = #tpu.dot_dimension_numbers<[2], [2], [1], [1], [0, 0, 0, 1, 1, 1], [0], [0]>} : vector<2x24x16xf32>, vector<2x24x16xf32>, vector<2x24x24xf32> -> vector<2x24x24xf32>
    "tpu.trace_stop"() : () -> ()
    %196 = vector.shape_cast %10 : vector<24x24xf32> to vector<1x24x24xf32>
    %197 = vector.broadcast %196 : vector<1x24x24xf32> to vector<2x24x24xf32>
    %198 = arith.addf %195, %197 : vector<2x24x24xf32>
    %cst_93 = arith.constant dense<0xFF800000> : vector<2x24xf32>
    %199 = vector.multi_reduction <maximumf>, %198, %cst_93 [2] : vector<2x24x24xf32> to vector<2x24xf32>
    %200 = vector.shape_cast %199 : vector<2x24xf32> to vector<2x24x1xf32>
    %201 = vector.broadcast %200 : vector<2x24x1xf32> to vector<2x24x24xf32>
    %202 = arith.subf %198, %201 : vector<2x24x24xf32>
    %203 = math.exp %202 : vector<2x24x24xf32>
    %cst_94 = arith.constant dense<0.000000e+00> : vector<2x24xf32>
    %204 = vector.multi_reduction <add>, %203, %cst_94 [2] : vector<2x24x24xf32> to vector<2x24xf32>
    %205 = vector.shape_cast %204 : vector<2x24xf32> to vector<2x24x1xf32>
    %206 = tpu.reciprocal %205 {approx = true} : vector<2x24x1xf32> -> vector<2x24x1xf32>
    %207 = vector.broadcast %206 : vector<2x24x1xf32> to vector<2x24x24xf32>
    %208 = arith.mulf %203, %207 : vector<2x24x24xf32>
    "tpu.trace_start"() <{level = 10 : i32, message = "bqk,bke->bqe"}> : () -> ()
    %cst_95 = arith.constant dense<0.000000e+00> : vector<2x24x16xf32>
    %209 = tpu.matmul %208, %194, %cst_95 {dimension_numbers = #tpu.dot_dimension_numbers<[2], [1], [1], [2], [0, 0, 0, 1, 1, 2], [0], [0]>} : vector<2x24x24xf32>, vector<2x24x16xf32>, vector<2x24x16xf32> -> vector<2x24x16xf32>
    "tpu.trace_stop"() : () -> ()
    %210 = vector.extract_strided_slice %191 {offsets = [0, 0, 16], sizes = [2, 24, 16], strides = [1, 1, 1]} : vector<2x24x96xf32> to vector<2x24x16xf32>
    %211 = vector.extract_strided_slice %191 {offsets = [0, 0, 48], sizes = [2, 24, 16], strides = [1, 1, 1]} : vector<2x24x96xf32> to vector<2x24x16xf32>
    %212 = vector.extract_strided_slice %191 {offsets = [0, 0, 80], sizes = [2, 24, 16], strides = [1, 1, 1]} : vector<2x24x96xf32> to vector<2x24x16xf32>
    "tpu.trace_start"() <{level = 10 : i32, message = "bqe,bke->bqk"}> : () -> ()
    %cst_96 = arith.constant dense<0.000000e+00> : vector<2x24x24xf32>
    %213 = tpu.matmul %210, %211, %cst_96 {dimension_numbers = #tpu.dot_dimension_numbers<[2], [2], [1], [1], [0, 0, 0, 1, 1, 1], [0], [0]>} : vector<2x24x16xf32>, vector<2x24x16xf32>, vector<2x24x24xf32> -> vector<2x24x24xf32>
    "tpu.trace_stop"() : () -> ()
    %214 = vector.shape_cast %10 : vector<24x24xf32> to vector<1x24x24xf32>
    %215 = vector.broadcast %214 : vector<1x24x24xf32> to vector<2x24x24xf32>
    %216 = arith.addf %213, %215 : vector<2x24x24xf32>
    %cst_97 = arith.constant dense<0xFF800000> : vector<2x24xf32>
    %217 = vector.multi_reduction <maximumf>, %216, %cst_97 [2] : vector<2x24x24xf32> to vector<2x24xf32>
    %218 = vector.shape_cast %217 : vector<2x24xf32> to vector<2x24x1xf32>
    %219 = vector.broadcast %218 : vector<2x24x1xf32> to vector<2x24x24xf32>
    %220 = arith.subf %216, %219 : vector<2x24x24xf32>
    %221 = math.exp %220 : vector<2x24x24xf32>
    %cst_98 = arith.constant dense<0.000000e+00> : vector<2x24xf32>
    %222 = vector.multi_reduction <add>, %221, %cst_98 [2] : vector<2x24x24xf32> to vector<2x24xf32>
    %223 = vector.shape_cast %222 : vector<2x24xf32> to vector<2x24x1xf32>
    %224 = tpu.reciprocal %223 {approx = true} : vector<2x24x1xf32> -> vector<2x24x1xf32>
    %225 = vector.broadcast %224 : vector<2x24x1xf32> to vector<2x24x24xf32>
    %226 = arith.mulf %221, %225 : vector<2x24x24xf32>
    "tpu.trace_start"() <{level = 10 : i32, message = "bqk,bke->bqe"}> : () -> ()
    %cst_99 = arith.constant dense<0.000000e+00> : vector<2x24x16xf32>
    %227 = tpu.matmul %226, %212, %cst_99 {dimension_numbers = #tpu.dot_dimension_numbers<[2], [1], [1], [2], [0, 0, 0, 1, 1, 2], [0], [0]>} : vector<2x24x24xf32>, vector<2x24x16xf32>, vector<2x24x16xf32> -> vector<2x24x16xf32>
    "tpu.trace_stop"() : () -> ()
    %228 = tpu.concatenate %209, %227 in 2 : vector<2x24x16xf32>, vector<2x24x16xf32> -> vector<2x24x32xf32>
    %229 = vector.shape_cast %228 : vector<2x24x32xf32> to vector<48x32xf32>
    %230 = arith.truncf %229 : vector<48x32xf32> to vector<48x32xbf16>
    %c1_100 = arith.constant 1 : index
    %c0_101 = arith.constant 0 : index
    %c0_102 = arith.constant 0 : index
    %231 = vector.load %arg7[%c1_100, %c0_101, %c0_102] : memref<2x32x32xbf16, #tpu.memory_space<vmem>>, vector<1x32x32xbf16>
    %232 = vector.shape_cast %231 : vector<1x32x32xbf16> to vector<32x32xbf16>
    %cst_103 = arith.constant dense<0.000000e+00> : vector<48x32xf32>
    %233 = tpu.matmul %230, %232, %cst_103 {dimension_numbers = #tpu.dot_dimension_numbers<[1], [0], [0], [1], [0, 0, 1, 1], [], []>} : vector<48x32xbf16>, vector<32x32xbf16>, vector<48x32xf32> -> vector<48x32xf32>
    %c1_104 = arith.constant 1 : index
    %c0_105 = arith.constant 0 : index
    %c0_106 = arith.constant 0 : index
    %234 = vector.load %arg8[%c1_104, %c0_105, %c0_106] : memref<2x1x32xf32, #tpu.memory_space<vmem>>, vector<1x1x32xf32>
    %235 = vector.shape_cast %234 : vector<1x1x32xf32> to vector<1x32xf32>
    %236 = vector.broadcast %235 : vector<1x32xf32> to vector<48x32xf32>
    %237 = arith.addf %233, %236 : vector<48x32xf32>
    %c1_107 = arith.constant 1 : index
    %c0_108 = arith.constant 0 : index
    %c0_109 = arith.constant 0 : index
    %238 = vector.load %arg9[%c1_107, %c0_108, %c0_109] : memref<2x1x32xf32, #tpu.memory_space<vmem>>, vector<1x1x32xf32>
    %239 = vector.shape_cast %238 : vector<1x1x32xf32> to vector<1x32xf32>
    %240 = vector.broadcast %239 : vector<1x32xf32> to vector<48x32xf32>
    %241 = arith.mulf %237, %240 : vector<48x32xf32>
    %242 = arith.addf %156, %241 : vector<48x32xf32>
    %c1_110 = arith.constant 1 : index
    %c0_111 = arith.constant 0 : index
    %c0_112 = arith.constant 0 : index
    %243 = vector.load %arg10[%c1_110, %c0_111, %c0_112] : memref<2x1x32xf32, #tpu.memory_space<vmem>>, vector<1x1x32xf32>
    %244 = vector.shape_cast %243 : vector<1x1x32xf32> to vector<1x32xf32>
    %c1_113 = arith.constant 1 : index
    %c0_114 = arith.constant 0 : index
    %c0_115 = arith.constant 0 : index
    %245 = vector.load %arg11[%c1_113, %c0_114, %c0_115] : memref<2x1x32xf32, #tpu.memory_space<vmem>>, vector<1x1x32xf32>
    %246 = vector.shape_cast %245 : vector<1x1x32xf32> to vector<1x32xf32>
    %cst_116 = arith.constant dense<0.000000e+00> : vector<48xf32>
    %247 = vector.multi_reduction <add>, %242, %cst_116 [1] : vector<48x32xf32> to vector<48xf32>
    %248 = vector.shape_cast %247 : vector<48xf32> to vector<48x1xf32>
    %cst_117 = arith.constant 3.200000e+01 : f32
    %249 = vector.broadcast %cst_117 : f32 to vector<48x1xf32>
    %250 = arith.divf %248, %249 : vector<48x1xf32>
    %251 = vector.broadcast %250 : vector<48x1xf32> to vector<48x32xf32>
    %252 = arith.subf %242, %251 : vector<48x32xf32>
    %253 = arith.mulf %252, %252 : vector<48x32xf32>
    %cst_118 = arith.constant dense<0.000000e+00> : vector<48xf32>
    %254 = vector.multi_reduction <add>, %253, %cst_118 [1] : vector<48x32xf32> to vector<48xf32>
    %255 = vector.shape_cast %254 : vector<48xf32> to vector<48x1xf32>
    %cst_119 = arith.constant 3.200000e+01 : f32
    %256 = vector.broadcast %cst_119 : f32 to vector<48x1xf32>
    %257 = arith.divf %255, %256 : vector<48x1xf32>
    %258 = vector.broadcast %250 : vector<48x1xf32> to vector<48x32xf32>
    %259 = arith.subf %242, %258 : vector<48x32xf32>
    %cst_120 = arith.constant 9.99999997E-7 : f32
    %260 = vector.broadcast %cst_120 : f32 to vector<48x1xf32>
    %261 = arith.addf %257, %260 : vector<48x1xf32>
    %262 = math.rsqrt %261 : vector<48x1xf32>
    %263 = vector.broadcast %262 : vector<48x1xf32> to vector<48x32xf32>
    %264 = arith.mulf %259, %263 : vector<48x32xf32>
    %265 = vector.broadcast %244 : vector<1x32xf32> to vector<48x32xf32>
    %266 = arith.mulf %264, %265 : vector<48x32xf32>
    %267 = vector.broadcast %246 : vector<1x32xf32> to vector<48x32xf32>
    %268 = arith.addf %266, %267 : vector<48x32xf32>
    %269 = arith.truncf %268 : vector<48x32xf32> to vector<48x32xbf16>
    %c1_121 = arith.constant 1 : index
    %c0_122 = arith.constant 0 : index
    %c0_123 = arith.constant 0 : index
    %270 = vector.load %arg12[%c1_121, %c0_122, %c0_123] : memref<2x32x128xbf16, #tpu.memory_space<vmem>>, vector<1x32x128xbf16>
    %271 = vector.shape_cast %270 : vector<1x32x128xbf16> to vector<32x128xbf16>
    %cst_124 = arith.constant dense<0.000000e+00> : vector<48x128xf32>
    %272 = tpu.matmul %269, %271, %cst_124 {dimension_numbers = #tpu.dot_dimension_numbers<[1], [0], [0], [1], [0, 0, 1, 1], [], []>} : vector<48x32xbf16>, vector<32x128xbf16>, vector<48x128xf32> -> vector<48x128xf32>
    %c1_125 = arith.constant 1 : index
    %c0_126 = arith.constant 0 : index
    %c0_127 = arith.constant 0 : index
    %273 = vector.load %arg13[%c1_125, %c0_126, %c0_127] : memref<2x1x128xf32, #tpu.memory_space<vmem>>, vector<1x1x128xf32>
    %274 = vector.shape_cast %273 : vector<1x1x128xf32> to vector<1x128xf32>
    %275 = vector.broadcast %274 : vector<1x128xf32> to vector<48x128xf32>
    %276 = arith.addf %272, %275 : vector<48x128xf32>
    %277 = arith.mulf %276, %276 : vector<48x128xf32>
    %278 = arith.mulf %276, %277 : vector<48x128xf32>
    %cst_128 = arith.constant 4.471500e-02 : f32
    %279 = vector.broadcast %cst_128 : f32 to vector<48x128xf32>
    %280 = arith.mulf %279, %278 : vector<48x128xf32>
    %281 = arith.addf %276, %280 : vector<48x128xf32>
    %cst_129 = arith.constant 0.797884583 : f32
    %282 = vector.broadcast %cst_129 : f32 to vector<48x128xf32>
    %283 = arith.mulf %282, %281 : vector<48x128xf32>
    %284 = math.tanh %283 : vector<48x128xf32>
    %cst_130 = arith.constant 1.000000e+00 : f32
    %285 = vector.broadcast %cst_130 : f32 to vector<48x128xf32>
    %286 = arith.addf %285, %284 : vector<48x128xf32>
    %cst_131 = arith.constant 5.000000e-01 : f32
    %287 = vector.broadcast %cst_131 : f32 to vector<48x128xf32>
    %288 = arith.mulf %287, %286 : vector<48x128xf32>
    %289 = arith.mulf %276, %288 : vector<48x128xf32>
    %290 = arith.truncf %289 : vector<48x128xf32> to vector<48x128xbf16>
    %c1_132 = arith.constant 1 : index
    %c0_133 = arith.constant 0 : index
    %c0_134 = arith.constant 0 : index
    %291 = vector.load %arg14[%c1_132, %c0_133, %c0_134] : memref<2x128x32xbf16, #tpu.memory_space<vmem>>, vector<1x128x32xbf16>
    %292 = vector.shape_cast %291 : vector<1x128x32xbf16> to vector<128x32xbf16>
    %cst_135 = arith.constant dense<0.000000e+00> : vector<48x32xf32>
    %293 = tpu.matmul %290, %292, %cst_135 {dimension_numbers = #tpu.dot_dimension_numbers<[1], [0], [0], [1], [0, 0, 1, 1], [], []>} : vector<48x128xbf16>, vector<128x32xbf16>, vector<48x32xf32> -> vector<48x32xf32>
    %c1_136 = arith.constant 1 : index
    %c0_137 = arith.constant 0 : index
    %c0_138 = arith.constant 0 : index
    %294 = vector.load %arg15[%c1_136, %c0_137, %c0_138] : memref<2x1x32xf32, #tpu.memory_space<vmem>>, vector<1x1x32xf32>
    %295 = vector.shape_cast %294 : vector<1x1x32xf32> to vector<1x32xf32>
    %296 = vector.broadcast %295 : vector<1x32xf32> to vector<48x32xf32>
    %297 = arith.addf %293, %296 : vector<48x32xf32>
    %c1_139 = arith.constant 1 : index
    %c0_140 = arith.constant 0 : index
    %c0_141 = arith.constant 0 : index
    %298 = vector.load %arg16[%c1_139, %c0_140, %c0_141] : memref<2x1x32xf32, #tpu.memory_space<vmem>>, vector<1x1x32xf32>
    %299 = vector.shape_cast %298 : vector<1x1x32xf32> to vector<1x32xf32>
    %300 = vector.broadcast %299 : vector<1x32xf32> to vector<48x32xf32>
    %301 = arith.mulf %297, %300 : vector<48x32xf32>
    %302 = arith.addf %242, %301 : vector<48x32xf32>
    %c0_142 = arith.constant 0 : index
    %c0_143 = arith.constant 0 : index
    %303 = vector.load %arg17[%c0_142, %c0_143] : memref<48x32xf32, #tpu.memory_space<vmem>>, vector<48x32xf32>
    tpu.vector_store %arg17[%c0_142, %c0_143], %302 {strides = array<i32>} : memref<48x32xf32, #tpu.memory_space<vmem>>, vector<48x32xf32>,
    return
  }
}

</mosaic_0001>

<bundles_post_ra>
// kernel: dinov2_backbone_forward.1
= control target key start
LH: loop header
LB: loop body
LE: loop exit
PB: predicated region body
PF: predicated region fallthrough
CT: control target
= control target key end

     0   :  { %v4545_v0 = vmov 0.0   ;;  %vm4546_vm0 = vmmov 0   ;;  %vm108_vm1 = vcmask 392192   ;;  %vm187_vm2 = vcmask 261120   ;;  %s4547_s29 = smov 96   ;;  %s4549_s30 = smov 80   ;;  %s5694_s1 = inlined_call_operand.vmem [shape: bf16[48,32], index: 1, kind: input, shape index: {}]   ;;  %s5695_s0 = inlined_call_operand.vmem [shape: bf16[48,48], index: 0, kind: input, shape index: {}]   ;;  %s5696_s2 = inlined_call_operand.vmem [shape: f32[48,32], index: 2, kind: input, shape index: {}]   ;;  %s5697_s5 = inlined_call_operand.vmem [shape: bf16[2,32,96], index: 5, kind: input, shape index: {}]   ;;  %s5698_s3 = inlined_call_operand.vmem [shape: f32[2,1,32], index: 3, kind: input, shape index: {}]   ;;  %s5699_s4 = inlined_call_operand.vmem [shape: f32[2,1,32], index: 4, kind: input, shape index: {}]   ;;  %s5700_s6 = inlined_call_operand.vmem [shape: f32[2,1,96], index: 6, kind: input, shape index: {}]   ;;  %s5701_s7 = inlined_call_operand.vmem [shape: bf16[2,32,32], index: 7, kind: input, shape index: {}]   ;;  %s5702_s8 = inlined_call_operand.vmem [shape: f32[2,1,32], index: 8, kind: input, shape index: {}]   ;;  %s5703_s9 = inlined_call_operand.vmem [shape: f32[2,1,32], index: 9, kind: input, shape index: {}]   ;;  %s5704_s12 = inlined_call_operand.vmem [shape: bf16[2,32,128], index: 12, kind: input, shape index: {}]   ;;  %s5705_s10 = inlined_call_operand.vmem [shape: f32[2,1,32], index: 10, kind: input, shape index: {}]   ;;  %s5706_s11 = inlined_call_operand.vmem [shape: f32[2,1,32], index: 11, kind: input, shape index: {}]   ;;  %s5707_s14 = inlined_call_operand.vmem [shape: bf16[2,128,32], index: 14, kind: input, shape index: {}]   ;;  %s5708_s13 = inlined_call_operand.vmem [shape: f32[2,1,128], index: 13, kind: input, shape index: {}]   ;;  %s5709_s15 = inlined_call_operand.vmem [shape: f32[2,1,32], index: 15, kind: input, shape index: {}]   ;;  %s5710_s16 = inlined_call_operand.vmem [shape: f32[2,1,32], index: 16, kind: input, shape index: {}]   ;;  %s5711_s17 = inlined_call_operand.vmem [shape: f32[48,32], index: 17, kind: output, shape index: {}]  }
   0x1   :  { %5714 = sst [smem:[#allocation2_spill]] %s5694_s1  ;;  %3894 = vmatprep.subr.bf16.mxu0 %v4545_v0  ;;  %3900 = vmatprep.mubr.msk.bf16.mxu0 %vm4546_vm0, %v4545_v0  ;;  %v57_v7 = vld [vmem:[%s5696_s2] sm:$0xff]  ;;  %v58_v11 = vld [vmem:[%s5696_s2 + $0x8] sm:$0xff]  ;;  %v59_v16 = vld [vmem:[%s5696_s2 + $0x10] sm:$0xff]  ;;  %s4548_s1 = smov 64   ;;  %vm392_vm3 = vcmask 130048  }
   0x2   :  { %5715 = sst [smem:[#allocation3_spill]] %s5695_s0  ;;  %3912 = vmatprep.subr.bf16.mxu1 %v4545_v0  ;;  %3916 = vmatprep.mubr.msk.bf16.mxu1 %vm4546_vm0, %v4545_v0  ;;  %v60_v21 = vld [vmem:[%s5696_s2 + $0x18] sm:$0xff]  ;;  %v61_v26 = vld [vmem:[%s5696_s2 + $0x20] sm:$0xff]  ;;  %v62_v31 = vld [vmem:[%s5696_s2 + $0x28] sm:$0xff]  ;;  %vm586_vm5 = vcmask 195584   ;;  %s4551_s18 = smov 112  }
   0x3   :  { %s5716_s26 = sld [smem:[#allocation2_spill]]  ;;  %s4553_s22 = smov 16  }
   0x4   :  { %s5717_s19 = sld [smem:[#allocation3_spill]] }
   0x9   :  { %v4343_v1 = vld [vmem:[%s5716_s26 + $0x10] sm:$0xff]   ;;  %v4344_v2 = vld [vmem:[%s5716_s26 + $0x8] sm:$0xff]   ;;  %v4345_v3 = vld [vmem:[%s5716_s26] sm:$0xff]  }
   0xa   :  { %3895 = vmatpush3.bf16.msra.mxu0 %v4343_v1  ;;  %v4346_v4 = vld [vmem:[%s5717_s19] sm:$0xff]   ;;  %v4347_v5 = vld [vmem:[%s5717_s19 + $0x8] sm:$0xff]   ;;  %v4348_v6 = vld [vmem:[%s5717_s19 + $0x10] sm:$0xff]   ;;  %s4552_s19 = smov 48  }
   0xb   :  { %3896 = vmatprep.subr.bf16.mxu0 %v4545_v0 }
   0xe   :  { %3897 = vmatpush3.bf16.msra.mxu0 %v4344_v2 }
   0xf   :  { %3898 = vmatprep.subr.bf16.mxu0 %v4545_v0 }
  0x12   :  { %3899 = vmatpush3.bf16.msra.mxu0 %v4345_v3 }
  0x13   :  { %3973 = vmatprep.subr.mxu0 %v4545_v0 }
  0x15   :  { %3901 = vmatmul.mubr.msk.bf16.vlgmr.msra.gmra.mxu0 %vm108_vm1, %v4346_v4  ;;  %v4349_v4 = vld [vmem:[%s5697_s5 + $0x8] sm:$0xff]  }
  0x16   :  { %3904 = vmatprep.mubr.msk.bf16.mxu0 %vm4546_vm0, %v4545_v0  ;;  %3913 = vmatpush3.bf16.msra.mxu1 %v4349_v4 }
  0x17   :  { %3914 = vmatprep.subr.bf16.mxu1 %v4545_v0 }
  0x1d   :  { %3905 = vmatmul.mubr.msk.bf16.gmra.mxu0 %vm108_vm1, %v4347_v5  ;;  %v4350_v5 = vld [vmem:[%s5697_s5] sm:$0xff]  }
  0x1e   :  { %3908 = vmatprep.mubr.msk.bf16.mxu0 %vm4546_vm0, %v4545_v0  ;;  %3915 = vmatpush3.bf16.msra.mxu1 %v4350_v5 }
  0x1f   :  { %3928 = vmatprep.subr.mxu1 %v4545_v0 }
  0x25   :  { %3909 = vmatmul.mubr.msk.bf16.gmra.mxu0 %vm108_vm1, %v4348_v6 }
  0x26   :  { %3979 = vmatprep.mubr.msk.f32.mxu0 %vm4546_vm0, %v4545_v0 }
  0xd5   :  { %v152_v8 = vpop.f32.mrf.mxu0 }
  0xd6   :  { %v4680_v9 = vadd.f32 %v152_v8, %v57_v7 }
  0xd7   :  { %v3902_v10 = vpop.f32.mrf.mxu0 }
  0xd8   :  { %v188_v12 = vsel %vm187_vm2, %v4680_v9, 0.0 }
  0xd9   :  { %189 = vadd.xlane.f32.xlu0 %v188_v12  ;;  %v155_v13 = vpop.f32.mrf.mxu0 }
  0xda   :  { %v4687_v14 = vadd.f32 %v155_v13, %v58_v11 }
  0xdb   :  { %v3903_v15 = vpop.f32.mrf.mxu0 }
  0xdc   :  { %v191_v17 = vsel %vm187_vm2, %v4687_v14, 0.0 }
  0xdd   :  { %192 = vadd.xlane.f32.xlu0 %v191_v17  ;;  %v160_v18 = vpop.f32.mrf.mxu0 }
  0xde   :  { %v4694_v19 = vadd.f32 %v160_v18, %v59_v16 }
  0xdf   :  { %v3906_v20 = vpop.f32.mrf.mxu0 }
  0xe0   :  { %v194_v22 = vsel %vm187_vm2, %v4694_v19, 0.0 }
  0xe1   :  { %195 = vadd.xlane.f32.xlu1 %v194_v22  ;;  %v163_v23 = vpop.f32.mrf.mxu0 }
  0xe2   :  { %v4701_v24 = vadd.f32 %v163_v23, %v60_v21 }
  0xe3   :  { %v3907_v25 = vpop.f32.mrf.mxu0 }
  0xe4   :  { %v197_v27 = vsel %vm187_vm2, %v4701_v24, 0.0 }
  0xe5   :  { %198 = vadd.xlane.f32.xlu1 %v197_v27  ;;  %v168_v28 = vpop.f32.mrf.mxu0 }
  0xe6   :  { %v4708_v29 = vadd.f32 %v168_v28, %v61_v26  ;;  %v3564_v28 = vld [vmem:[%s5698_s3] ss:$0 sm:$0xff] }
  0xe7   :  { %v3910_v30 = vpop.f32.mrf.mxu0 }
  0xe8   :  { %v200_v32 = vsel %vm187_vm2, %v4708_v29, 0.0 }
  0xe9   :  { %201 = vadd.xlane.f32.xlu0 %v200_v32  ;;  %v171_v33 = vpop.f32.mrf.mxu0 }
  0xea   :  { %v4715_v34 = vadd.f32 %v171_v33, %v62_v31 }
  0xeb   :  { %v3911_v35 = vpop.f32.mrf.mxu0 }
  0xec   :  { %v203_v36 = vsel %vm187_vm2, %v4715_v34, 0.0 }
  0xed   :  { %204 = vadd.xlane.f32.xlu1 %v203_v36  ;;  %v3565_v36 = vld [vmem:[%s5699_s4] ss:$0 sm:$0xff] }
 0x162   :  { %v190_v37 = vpop.xlane.xlu0 %189 }
 0x163   :  { %v207_v38 = vmul.f32 0.03125, %v190_v37 }
 0x165   :  { %v213_v39 = vsub.f32 %v4680_v9, %v207_v38 }
 0x166   :  { %v193_v40 = vpop.xlane.xlu0 %192 }
 0x167   :  { %v208_v41 = vmul.f32 0.03125, %v193_v40  ;;  %v219_v42 = vmul.f32 %v213_v39, %v213_v39 }
 0x169   :  { %v4721_v43 = vsub.f32 %v4687_v14, %v208_v41  ;;  %v225_v44 = vsel %vm187_vm2, %v219_v42, 0.0 }
 0x16a   :  { %v196_v45 = vpop.xlane.xlu1 %195  ;;  %226 = vadd.xlane.f32.xlu0 %v225_v44 }
 0x16b   :  { %v209_v46 = vmul.f32 0.03125, %v196_v45  ;;  %v220_v47 = vmul.f32 %v4721_v43, %v4721_v43 }
 0x16d   :  { %v4727_v48 = vsub.f32 %v4694_v19, %v209_v46  ;;  %v228_v49 = vsel %vm187_vm2, %v220_v47, 0.0 }
 0x16e   :  { %v199_v50 = vpop.xlane.xlu1 %198  ;;  %229 = vadd.xlane.f32.xlu1 %v228_v49 }
 0x16f   :  { %v210_v51 = vmul.f32 0.03125, %v199_v50  ;;  %v221_v52 = vmul.f32 %v4727_v48, %v4727_v48 }
 0x171   :  { %v4733_v53 = vsub.f32 %v4701_v24, %v210_v51  ;;  %v231_v54 = vsel %vm187_vm2, %v221_v52, 0.0 }
 0x172   :  { %232 = vadd.xlane.f32.xlu0 %v231_v54  ;;  %v202_v55 = vpop.xlane.xlu0 %201 }
 0x173   :  { %v211_v56 = vmul.f32 0.03125, %v202_v55  ;;  %v222_v57 = vmul.f32 %v4733_v53, %v4733_v53 }
 0x175   :  { %v4739_v58 = vsub.f32 %v4708_v29, %v211_v56  ;;  %v234_v59 = vsel %vm187_vm2, %v222_v57, 0.0 }
 0x176   :  { %235 = vadd.xlane.f32.xlu1 %v234_v59  ;;  %v205_v60 = vpop.xlane.xlu1 %204 }
 0x177   :  { %v212_v61 = vmul.f32 0.03125, %v205_v60  ;;  %v223_v62 = vmul.f32 %v4739_v58, %v4739_v58 }
 0x179   :  { %v4745_v63 = vsub.f32 %v4715_v34, %v212_v61  ;;  %v237_v1 = vsel %vm187_vm2, %v223_v62, 0.0  ;;  %v3566_v61 = vld [vmem:[%s5700_s6] ss:$0 sm:$0xff] }
 0x17a   :  { %238 = vadd.xlane.f32.xlu0 %v237_v1 }
 0x17b   :  { %v224_v2 = vmul.f32 %v4745_v63, %v4745_v63 }
 0x17d   :  { %v240_v3 = vsel %vm187_vm2, %v224_v2, 0.0 }
 0x17e   :  { %241 = vadd.xlane.f32.xlu1 %v240_v3 }
 0x1f3   :  { %v227_v6 = vpop.xlane.xlu0 %226 }
 0x1f4   :  { %v243_v7 = vmul.f32 0.03125, %v227_v6 }
 0x1f6   :  { %v249_v8 = vadd.f32 1e-06, %v243_v7 }
 0x1f7   :  { %v230_v10 = vpop.xlane.xlu1 %229 }
 0x1f8   :  { %4377 = vrsqrt.f32 %v249_v8  ;;  %v244_v11 = vmul.f32 0.03125, %v230_v10 }
 0x1fa   :  { %v250_v12 = vadd.f32 1e-06, %v244_v11 }
 0x1fb   :  { %v233_v13 = vpop.xlane.xlu0 %232 }
 0x1fc   :  { %4379 = vrsqrt.f32 %v250_v12  ;;  %v245_v15 = vmul.f32 0.03125, %v233_v13 }
 0x1fe   :  { %v251_v16 = vadd.f32 1e-06, %v245_v15 }
 0x1ff   :  { %v236_v17 = vpop.xlane.xlu1 %235 }
 0x200   :  { %4381 = vrsqrt.f32 %v251_v16  ;;  %v246_v18 = vmul.f32 0.03125, %v236_v17 }
 0x202   :  { %v252_v20 = vadd.f32 1e-06, %v246_v18 }
 0x203   :  { %v239_v21 = vpop.xlane.xlu0 %238 }
 0x204   :  { %4383 = vrsqrt.f32 %v252_v20  ;;  %v247_v22 = vmul.f32 0.03125, %v239_v21 }
 0x205   :  { %v4378_v23 = vpop.eup %4377 }
 0x206   :  { %v253_v25 = vadd.f32 1e-06, %v247_v22  ;;  %v261_v26 = vmul.f32 %v4378_v23, %v213_v39 }
 0x207   :  { %v242_v27 = vpop.xlane.xlu1 %241 }
 0x208   :  { %4385 = vrsqrt.f32 %v253_v25  ;;  %v248_v30 = vmul.f32 0.03125, %v242_v27  ;;  %v273_v35 = vmul.f32 %v3564_v28, %v261_v26 }
 0x209   :  { %v4380_v31 = vpop.eup %4379 }
 0x20a   :  { %v254_v32 = vadd.f32 1e-06, %v248_v30  ;;  %v262_v33 = vmul.f32 %v4380_v31, %v4721_v43  ;;  %v285_v39 = vadd.f32 %v3565_v36, %v273_v35  ;;  %v181_v35 = vlaneseq }
 0x20c   :  { %4387 = vrsqrt.f32 %v254_v32  ;;  %v274_v37 = vmul.f32 %v3564_v28, %v262_v33 }
 0x20d   :  { %v4382_v38 = vpop.eup %4381 }
 0x20e   :  { %v286_v40 = vadd.f32 %v3565_v36, %v274_v37  ;;  %v263_v41 = vmul.f32 %v4382_v38, %v4727_v48  ;;  %v4550_v37 = vmov -1e+30  }
 0x210   :  { %v291_v42 = vpack.c.bf16 %v286_v40, %v285_v39  ;;  %v275_v46 = vmul.f32 %v3564_v28, %v263_v41 }
 0x211   :  { %v4384_v44 = vpop.eup %4383 }
 0x212   :  { %3917 = vmatmul.mubr.msk.bf16.vlgmr.msra.gmra.mxu1 %vm187_vm2, %v291_v42  ;;  %v264_v45 = vmul.f32 %v4384_v44, %v4733_v53  ;;  %v287_v49 = vadd.f32 %v3565_v36, %v275_v46 }
 0x213   :  { %3920 = vmatprep.mubr.msk.bf16.mxu1 %vm4546_vm0, %v4545_v0 }
 0x214   :  { %v276_v43 = vmul.f32 %v3564_v28, %v264_v45 }
 0x215   :  { %v4386_v47 = vpop.eup %4385 }
 0x216   :  { %v288_v50 = vadd.f32 %v3565_v36, %v276_v43  ;;  %v265_v51 = vmul.f32 %v4386_v47, %v4739_v58 }
 0x218   :  { %v292_v52 = vpack.c.bf16 %v288_v50, %v287_v49  ;;  %v277_v55 = vmul.f32 %v3564_v28, %v265_v51 }
 0x219   :  { %v4388_v54 = vpop.eup %4387 }
 0x21a   :  { %3921 = vmatmul.mubr.msk.bf16.gmra.mxu1 %vm187_vm2, %v292_v52  ;;  %v266_v48 = vmul.f32 %v4388_v54, %v4745_v63  ;;  %v289_v56 = vadd.f32 %v3565_v36, %v277_v55 }
 0x21b   :  { %3924 = vmatprep.mubr.msk.bf16.mxu1 %vm4546_vm0, %v4545_v0 }
 0x21c   :  { %v278_v53 = vmul.f32 %v3564_v28, %v266_v48 }
 0x21e   :  { %v290_v57 = vadd.f32 %v3565_v36, %v278_v53  ;;  %v182_v36 = vand.u32 127, %v181_v35 }
 0x220   :  { %v293_v59 = vpack.c.bf16 %v290_v57, %v289_v56  ;;  %vm183_vm4 = vcmp.lt.s32.totalorder %v182_v36, 21 }
 0x221   :  { %v4869_v38 = vsel %vm183_vm4, 0.0, %v4550_v37 }
 0x222   :  { %3925 = vmatmul.mubr.msk.bf16.gmra.mxu1 %vm187_vm2, %v293_v59 }
 0x223   :  { %3934 = vmatprep.mubr.msk.f32.mxu1 %vm4546_vm0, %v4545_v0 }
 0x2d2   :  { %v360_v58 = vpop.f32.mrf.mxu1 }
 0x2d3   :  { %v4786_v3 = vadd.f32 %v3566_v61, %v360_v58 }
 0x2d4   :  { %v3918_v60 = vpop.f32.mrf.mxu1 }
 0x2d6   :  { %v363_v62 = vpop.f32.mrf.mxu1 }
 0x2d7   :  { %v4782_v63 = vadd.f32 %v3566_v61, %v363_v62 }
 0x2d8   :  { %v3919_v1 = vpop.f32.mrf.mxu1 }
 0x2d9   :  { %388 = vrot.lane.b32.xlu1 %v4782_v63, %s4547_s29 }
 0x2da   :  { %v368_v2 = vpop.f32.mrf.mxu1 }
 0x2db   :  { %v4788_v4 = vadd.f32 %v3566_v61, %v368_v2 }
 0x2dc   :  { %v3922_v5 = vpop.f32.mrf.mxu1 }
 0x2dd   :  { %386 = vrot.lane.b32.xlu1 %v4786_v3, %s4547_s29  ;;  %390 = vrot.lane.b32.xlu0 %v4788_v4, %s4547_s29 }
 0x2de   :  { %v371_v6 = vpop.f32.mrf.mxu1 }
 0x2df   :  { %v4804_v16 = vadd.f32 %v3566_v61, %v371_v6 }
 0x2e0   :  { %v3923_v7 = vpop.f32.mrf.mxu1 }
 0x2e2   :  { %v376_v8 = vpop.f32.mrf.mxu1 }
 0x2e3   :  { %v4794_v10 = vadd.f32 %v3566_v61, %v376_v8 }
 0x2e4   :  { %v3926_v11 = vpop.f32.mrf.mxu1 }
 0x2e5   :  { %490 = vrot.lane.b32.xlu0 %v4794_v10, %s4547_s29 }
 0x2e6   :  { %v379_v12 = vpop.f32.mrf.mxu1 }
 0x2e7   :  { %v4798_v13 = vadd.f32 %v3566_v61, %v379_v12 }
 0x2e8   :  { %v3927_v15 = vpop.f32.mrf.mxu1 }
 0x2e9   :  { %657 = vrot.lane.b32.xlu0 %v4788_v4, %s4548_s1  ;;  %492 = vrot.lane.b32.xlu1 %v4798_v13, %s4547_s29 }
 0x2ed   :  { %857 = vrot.lane.b32.xlu0 %v4782_v63, %s4549_s30  ;;  %488 = vrot.lane.b32.xlu1 %v4804_v16, %s4547_s29 }
 0x2f1   :  { %753 = vrot.lane.b32.xlu0 %v4794_v10, %s4548_s1  ;;  %655 = vrot.lane.b32.xlu1 %v4782_v63, %s4548_s1 }
 0x2f5   :  { %653 = vrot.lane.b32.xlu1 %v4786_v3, %s4548_s1 }
 0x2f9   :  { %859 = vrot.lane.b32.xlu1 %v4788_v4, %s4549_s30 }
 0x2fd   :  { %855 = vrot.lane.b32.xlu1 %v4786_v3, %s4549_s30 }
 0x301   :  { %755 = vrot.lane.b32.xlu1 %v4798_v13, %s4548_s1 }
 0x34b   :  { %v389_v18 = vpop.permute.xlu1 %388 }
 0x34f   :  { %v391_v17 = vpop.permute.xlu0 %390  ;;  %v387_v20 = vpop.permute.xlu1 %386 }
 0x350   :  { %3929 = vmatpush3.xpose.msk.msra.mxu1 %vm392_vm3, %v391_v17 }
 0x351   :  { %3930 = vmatprep.subr.mxu1 %v4545_v0 }
 0x354   :  { %3931 = vmatpush3.xpose.msk.msra.mxu1 %vm392_vm3, %v389_v18 }
 0x355   :  { %3932 = vmatprep.subr.mxu1 %v4545_v0 }
 0x357   :  { %v491_v22 = vpop.permute.xlu0 %490 }
 0x358   :  { %3933 = vmatpush3.xpose.msk.msra.mxu1 %vm392_vm3, %v387_v20 }
 0x359   :  { %3943 = vmatprep.subr.mxu1 %v4545_v0 }
 0x35b   :  { %3935 = vmatmul.mubr.msk.f32.vlgmr.msra.gmra.mxu1 %vm392_vm3, %v4786_v3  ;;  %v493_v21 = vpop.permute.xlu1 %492  ;;  %v658_v26 = vpop.permute.xlu0 %657 }
 0x35c   :  { %3944 = vmatpush3.xpose.msk.msra.mxu1 %vm392_vm3, %v493_v21  ;;  %3937 = vmatprep.mubr.msk.f32.mxu1 %vm4546_vm0, %v4545_v0 }
 0x35d   :  { %3945 = vmatprep.subr.mxu1 %v4545_v0 }
 0x35f   :  { %3938 = vmatmul.mubr.msk.f32.gmra.mxu1 %vm392_vm3, %v4782_v63  ;;  %v489_v23 = vpop.permute.xlu1 %488  ;;  %v4859_v30 = vpop.permute.xlu0 %857 }
 0x360   :  { %3946 = vmatpush3.xpose.msk.msra.mxu1 %vm392_vm3, %v491_v22  ;;  %3940 = vmatprep.mubr.msk.f32.mxu1 %vm4546_vm0, %v4545_v0 }
 0x361   :  { %3947 = vmatprep.subr.mxu1 %v4545_v0 }
 0x363   :  { %3941 = vmatmul.mubr.msk.f32.gmra.mxu1 %vm392_vm3, %v4788_v4  ;;  %v656_v25 = vpop.permute.xlu1 %655  ;;  %v754_v33 = vpop.permute.xlu0 %753 }
 0x364   :  { %3948 = vmatpush3.xpose.msk.msra.mxu1 %vm392_vm3, %v489_v23  ;;  %3949 = vmatprep.mubr.msk.f32.mxu1 %vm4546_vm0, %v4545_v0 }
 0x365   :  { %3958 = vmatprep.subr.mxu1 %v4545_v0 }
 0x367   :  { %3950 = vmatmul.mubr.msk.f32.vlgmr.msra.gmra.mxu1 %vm392_vm3, %v4804_v16  ;;  %v654_v27 = vpop.permute.xlu1 %653 }
 0x368   :  { %3959 = vmatpush3.msra.mxu1 %v658_v26  ;;  %3952 = vmatprep.mubr.msk.f32.mxu1 %vm4546_vm0, %v4545_v0 }
 0x369   :  { %3960 = vmatprep.subr.mxu1 %v4545_v0 }
 0x36a   :  { %3961 = vmatpush3.msra.mxu1 %v656_v25 }
 0x36b   :  { %3953 = vmatmul.mubr.msk.f32.gmra.mxu1 %vm392_vm3, %v4794_v10  ;;  %3962 = vmatprep.subr.mxu1 %v4545_v0  ;;  %v4854_v28 = vpop.permute.xlu1 %859 }
 0x36c   :  { %3963 = vmatpush3.msra.mxu1 %v654_v27  ;;  %3955 = vmatprep.mubr.msk.f32.mxu1 %vm4546_vm0, %v4545_v0 }
 0x36d   :  { %3988 = vmatprep.subr.mxu1 %v4545_v0 }
 0x36f   :  { %3956 = vmatmul.mubr.msk.f32.gmra.mxu1 %vm392_vm3, %v4798_v13  ;;  %v4863_v31 = vpop.permute.xlu1 %855 }
 0x370   :  { %3964 = vmatprep.mubr.msk.f32.mxu1 %vm4546_vm0, %v4545_v0 }
 0x373   :  { %v756_v32 = vpop.permute.xlu1 %755 }
 0x374   :  { %3974 = vmatpush3.msra.mxu0 %v756_v32 }
 0x375   :  { %3975 = vmatprep.subr.mxu0 %v4545_v0 }
 0x376   :  { %3976 = vmatpush3.msra.mxu0 %v754_v33 }
 0x377   :  { %3977 = vmatprep.subr.mxu0 %v4545_v0 }
 0x41b   :  { %v471_v39 = vpop.f32.mrf.mxu1 }
 0x41c   :  { %v472_v40 = vadd.f32 %v471_v39, %v4869_v38 }
 0x41d   :  { %v3936_v41 = vpop.f32.mrf.mxu1 }
 0x41e   :  { %v587_v42 = vsel %vm586_vm5, %v472_v40, -inf }
 0x41f   :  { %588 = vmax.xlane.f32.xlu0 %v587_v42  ;;  %v476_v44 = vpop.f32.mrf.mxu1 }
 0x420   :  { %v477_v45 = vadd.f32 %v476_v44, %v4869_v38 }
 0x421   :  { %v3939_v46 = vpop.f32.mrf.mxu1 }
 0x422   :  { %v590_v43 = vsel %vm586_vm5, %v477_v45, -inf }
 0x423   :  { %591 = vmax.xlane.f32.xlu1 %v590_v43  ;;  %v481_v47 = vpop.f32.mrf.mxu1 }
 0x424   :  { %v482_v49 = vadd.f32 %v481_v47, %v4869_v38 }
 0x425   :  { %v3942_v50 = vpop.f32.mrf.mxu1 }
 0x426   :  { %v593_v51 = vsel %vm586_vm5, %v482_v49, -inf }
 0x427   :  { %594 = vmax.xlane.f32.xlu0 %v593_v51  ;;  %v572_v52 = vpop.f32.mrf.mxu1 }
 0x428   :  { %v573_v54 = vadd.f32 %v572_v52, %v4869_v38 }
 0x429   :  { %v3951_v48 = vpop.f32.mrf.mxu1 }
 0x42a   :  { %v596_v55 = vsel %vm586_vm5, %v573_v54, -inf }
 0x42b   :  { %597 = vmax.xlane.f32.xlu0 %v596_v55  ;;  %v577_v53 = vpop.f32.mrf.mxu1 }
 0x42c   :  { %v578_v56 = vadd.f32 %v577_v53, %v4869_v38 }
 0x42d   :  { %v3954_v57 = vpop.f32.mrf.mxu1 }
 0x42e   :  { %v599_v59 = vsel %vm586_vm5, %v578_v56, -inf }
 0x42f   :  { %600 = vmax.xlane.f32.xlu0 %v599_v59  ;;  %v582_v58 = vpop.f32.mrf.mxu1 }
 0x430   :  { %v583_v61 = vadd.f32 %v582_v58, %v4869_v38 }
 0x431   :  { %v3957_v60 = vpop.f32.mrf.mxu1 }
 0x432   :  { %v602_v62 = vsel %vm586_vm5, %v583_v61, -inf }
 0x434   :  { %849 = vrot.lane.b32.xlu1 %v4786_v3, %s4551_s18 }
 0x445   :  { %751 = vrot.lane.b32.xlu0 %v4804_v16, %s4548_s1 }
 0x458   :  { %603 = vmax.xlane.f32.xlu1 %v602_v62 }
 0x4a8   :  { %v589_v1 = vpop.xlane.xlu0 %588 }
 0x4a9   :  { %v605_v2 = vsub.f32 %v472_v40, %v589_v1 }
 0x4ab   :  { %v611_v5 = vmul.f32 1.442695, %v605_v2 }
 0x4ac   :  { %v592_v6 = vpop.xlane.xlu1 %591 }
 0x4ad   :  { %4389 = vpow2.f32 %v611_v5  ;;  %v606_v7 = vsub.f32 %v477_v45, %v592_v6 }
 0x4af   :  { %v613_v8 = vmul.f32 1.442695, %v606_v7 }
 0x4b0   :  { %v595_v11 = vpop.xlane.xlu0 %594  ;;  %v850_v42 = vpop.permute.xlu1 %849 }
 0x4b1   :  { %4391 = vpow2.f32 %v613_v8  ;;  %v607_v12 = vsub.f32 %v482_v49, %v595_v11 }
 0x4b3   :  { %v615_v15 = vmul.f32 1.442695, %v607_v12 }
 0x4b4   :  { %v598_v17 = vpop.xlane.xlu0 %597 }
 0x4b5   :  { %4393 = vpow2.f32 %v615_v15  ;;  %v608_v32 = vsub.f32 %v573_v54, %v598_v17 }
 0x4b7   :  { %v617_v33 = vmul.f32 1.442695, %v608_v32 }
 0x4b8   :  { %v601_v18 = vpop.xlane.xlu0 %600 }
 0x4b9   :  { %v609_v35 = vsub.f32 %v578_v56, %v601_v18  ;;  %4395 = vpow2.f32 %v617_v33 }
 0x4ba   :  { %v4390_v20 = vpop.eup %4389 }
 0x4bb   :  { %v623_v21 = vsel %vm586_vm5, %v4390_v20, 0.0  ;;  %v619_v36 = vmul.f32 1.442695, %v609_v35 }
 0x4bc   :  { %624 = vadd.xlane.f32.xlu0 %v623_v21  ;;  %v752_v22 = vpop.permute.xlu0 %751 }
 0x4bd   :  { %3978 = vmatpush3.msra.mxu0 %v752_v22  ;;  %4397 = vpow2.f32 %v619_v36 }
 0x4be   :  { %v4392_v23 = vpop.eup %4391  ;;  %4003 = vmatprep.subr.mxu0 %v4545_v0 }
 0x4bf   :  { %v626_v25 = vsel %vm586_vm5, %v4392_v23, 0.0 }
 0x4c0   :  { %627 = vadd.xlane.f32.xlu1 %v626_v25 }
 0x4c2   :  { %v4394_v26 = vpop.eup %4393 }
 0x4c3   :  { %v629_v27 = vsel %vm586_vm5, %v4394_v26, 0.0 }
 0x4c4   :  { %630 = vadd.xlane.f32.xlu0 %v629_v27 }
 0x4c6   :  { %v4396_v37 = vpop.eup %4395 }
 0x4c7   :  { %v632_v39 = vsel %vm586_vm5, %v4396_v37, 0.0 }
 0x4ca   :  { %v4896_v40 = vpop.eup %4397 }
 0x4cb   :  { %v635_v41 = vsel %vm586_vm5, %v4896_v40, 0.0 }
 0x4d1   :  { %851 = vrot.lane.b32.xlu1 %v4782_v63, %s4551_s18 }
 0x4da   :  { %963 = vrot.lane.b32.xlu0 %v4798_v13, %s4549_s30 }
 0x4e1   :  { %v604_v44 = vpop.xlane.xlu1 %603 }
 0x4e2   :  { %v610_v45 = vsub.f32 %v583_v61, %v604_v44 }
 0x4e4   :  { %v621_v46 = vmul.f32 1.442695, %v610_v45 }
 0x4e6   :  { %4399 = vpow2.f32 %v621_v46 }
 0x4f3   :  { %v4400_v43 = vpop.eup %4399 }
 0x4f4   :  { %v638_v47 = vsel %vm586_vm5, %v4400_v43, 0.0 }
 0x4f5   :  { %633 = vadd.xlane.f32.xlu1 %v632_v39 }
 0x4f9   :  { %636 = vadd.xlane.f32.xlu0 %v635_v41 }
 0x506   :  { %959 = vrot.lane.b32.xlu1 %v4804_v16, %s4549_s30 }
 0x50f   :  { %961 = vrot.lane.b32.xlu0 %v4794_v10, %s4549_s30 }
 0x513   :  { %853 = vrot.lane.b32.xlu0 %v4788_v4, %s4551_s18 }
 0x517   :  { %955 = vrot.lane.b32.xlu0 %v4794_v10, %s4551_s18 }
 0x52a   :  { %639 = vadd.xlane.f32.xlu1 %v638_v47 }
 0x53b   :  { %953 = vrot.lane.b32.xlu1 %v4804_v16, %s4551_s18 }
 0x53f   :  { %957 = vrot.lane.b32.xlu1 %v4798_v13, %s4551_s18 }
 0x545   :  { %v625_v49 = vpop.xlane.xlu0 %624 }
 0x546   :  { %4401 = vrcp.f32 %v625_v49 }
 0x549   :  { %v628_v50 = vpop.xlane.xlu1 %627 }
 0x54a   :  { %4403 = vrcp.f32 %v628_v50 }
 0x54d   :  { %v631_v51 = vpop.xlane.xlu0 %630 }
 0x54e   :  { %4405 = vrcp.f32 %v631_v51 }
 0x553   :  { %v4402_v52 = vpop.eup %4401 }
 0x554   :  { %v647_v54 = vmul.f32 %v4402_v52, %v4390_v20 }
 0x556   :  { %3965 = vmatmul.mubr.msk.f32.vlgmr.msra.gmra.mxu1 %vm586_vm5, %v647_v54 }
 0x557   :  { %v4404_v48 = vpop.eup %4403  ;;  %3989 = vmatpush3.xpose.msk.msra.mxu1 %vm392_vm3, %v4854_v28  ;;  %3967 = vmatprep.mubr.msk.f32.mxu1 %vm4546_vm0, %v4545_v0  ;;  %v852_v28 = vpop.permute.xlu1 %851 }
 0x558   :  { %3990 = vmatprep.subr.mxu1 %v4545_v0  ;;  %v648_v55 = vmul.f32 %v4404_v48, %v4392_v23 }
 0x55a   :  { %3968 = vmatmul.mubr.msk.f32.gmra.mxu1 %vm586_vm5, %v648_v55 }
 0x55b   :  { %v4406_v53 = vpop.eup %4405  ;;  %3991 = vmatpush3.xpose.msk.msra.mxu1 %vm392_vm3, %v4859_v30  ;;  %3970 = vmatprep.mubr.msk.f32.mxu1 %vm4546_vm0, %v4545_v0  ;;  %v964_v30 = vpop.permute.xlu0 %963 }
 0x55c   :  { %3992 = vmatprep.subr.mxu1 %v4545_v0  ;;  %v649_v56 = vmul.f32 %v4406_v53, %v4394_v26 }
 0x55e   :  { %3971 = vmatmul.mubr.msk.f32.gmra.mxu1 %vm586_vm5, %v649_v56 }
 0x55f   :  { %3993 = vmatpush3.xpose.msk.msra.mxu1 %vm392_vm3, %v4863_v31  ;;  %3994 = vmatprep.mubr.msk.f32.mxu1 %vm4546_vm0, %v4545_v0 }
 0x560   :  { %4018 = vmatprep.subr.mxu1 %v4545_v0 }
 0x562   :  { %3995 = vmatmul.mubr.msk.f32.vlgmr.msra.gmra.mxu1 %vm392_vm3, %v850_v42 }
 0x563   :  { %3997 = vmatprep.mubr.msk.f32.mxu1 %vm4546_vm0, %v4545_v0 }
 0x566   :  { %3998 = vmatmul.mubr.msk.f32.gmra.mxu1 %vm392_vm3, %v852_v28 }
 0x567   :  { %4000 = vmatprep.mubr.msk.f32.mxu1 %vm4546_vm0, %v4545_v0 }
 0x57e   :  { %v634_v57 = vpop.xlane.xlu1 %633 }
 0x57f   :  { %4407 = vrcp.f32 %v634_v57 }
 0x582   :  { %v637_v31 = vpop.xlane.xlu0 %636  ;;  %v960_v2 = vpop.permute.xlu1 %959 }
 0x583   :  { %4409 = vrcp.f32 %v637_v31 }
 0x586   :  { %v962_v59 = vpop.permute.xlu0 %961 }
 0x58a   :  { %v854_v58 = vpop.permute.xlu0 %853 }
 0x58b   :  { %4001 = vmatmul.mubr.msk.f32.gmra.mxu1 %vm392_vm3, %v854_v58 }
 0x58c   :  { %v4408_v60 = vpop.eup %4407  ;;  %4024 = vmatprep.mubr.msk.f32.mxu1 %vm4546_vm0, %v4545_v0 }
 0x58d   :  { %v650_v61 = vmul.f32 %v4408_v60, %v4396_v37 }
 0x58e   :  { %v956_v11 = vpop.permute.xlu0 %955 }
 0x58f   :  { %3980 = vmatmul.mubr.msk.f32.vlgmr.msra.gmra.mxu0 %vm586_vm5, %v650_v61 }
 0x590   :  { %v4410_v62 = vpop.eup %4409  ;;  %4004 = vmatpush3.xpose.msk.msra.mxu0 %vm392_vm3, %v964_v30  ;;  %3982 = vmatprep.mubr.msk.f32.mxu0 %vm4546_vm0, %v4545_v0 }
 0x591   :  { %4005 = vmatprep.subr.mxu0 %v4545_v0  ;;  %v651_v1 = vmul.f32 %v4410_v62, %v4896_v40 }
 0x593   :  { %3983 = vmatmul.mubr.msk.f32.gmra.mxu0 %vm586_vm5, %v651_v1 }
 0x594   :  { %4006 = vmatpush3.xpose.msk.msra.mxu0 %vm392_vm3, %v962_v59  ;;  %3985 = vmatprep.mubr.msk.f32.mxu0 %vm4546_vm0, %v4545_v0 }
 0x595   :  { %4007 = vmatprep.subr.mxu0 %v4545_v0 }
 0x598   :  { %4008 = vmatpush3.xpose.msk.msra.mxu0 %vm392_vm3, %v960_v2 }
 0x599   :  { %4033 = vmatprep.subr.mxu0 %v4545_v0 }
 0x5b3   :  { %v640_v5 = vpop.xlane.xlu1 %639 }
 0x5b4   :  { %4411 = vrcp.f32 %v640_v5 }
 0x5b7   :  { %v954_v8 = vpop.permute.xlu1 %953 }
 0x5bb   :  { %v958_v12 = vpop.permute.xlu1 %957 }
 0x5c1   :  { %v4412_v6 = vpop.eup %4411 }
 0x5c2   :  { %v652_v7 = vmul.f32 %v4412_v6, %v4400_v43 }
 0x5c4   :  { %3986 = vmatmul.mubr.msk.f32.gmra.mxu0 %vm586_vm5, %v652_v7 }
 0x5c5   :  { %4009 = vmatprep.mubr.msk.f32.mxu0 %vm4546_vm0, %v4545_v0 }
 0x5c8   :  { %4010 = vmatmul.mubr.msk.f32.vlgmr.msra.gmra.mxu0 %vm392_vm3, %v954_v8 }
 0x5c9   :  { %4012 = vmatprep.mubr.msk.f32.mxu0 %vm4546_vm0, %v4545_v0 }
 0x5cc   :  { %4013 = vmatmul.mubr.msk.f32.gmra.mxu0 %vm392_vm3, %v956_v11 }
 0x5cd   :  { %4015 = vmatprep.mubr.msk.f32.mxu0 %vm4546_vm0, %v4545_v0 }
 0x5d0   :  { %4016 = vmatmul.mubr.msk.f32.gmra.mxu0 %vm392_vm3, %v958_v12 }
 0x5d1   :  { %4039 = vmatprep.mubr.msk.f32.mxu0 %vm4546_vm0, %v4545_v0 }
 0x616   :  { %v4965_v15 = vpop.f32.mrf.mxu1 }
 0x618   :  { %v3966_v17 = vpop.f32.mrf.mxu1 }
 0x61a   :  { %v4967_v18 = vpop.f32.mrf.mxu1 }
 0x61c   :  { %v3969_v20 = vpop.f32.mrf.mxu1 }
 0x61e   :  { %v4969_v21 = vpop.f32.mrf.mxu1 }
 0x620   :  { %v3972_v22 = vpop.f32.mrf.mxu1 }
 0x622   :  { %v939_v23 = vpop.f32.mrf.mxu1 }
 0x623   :  { %v940_v25 = vadd.f32 %v939_v23, %v4869_v38 }
 0x624   :  { %v3996_v26 = vpop.f32.mrf.mxu1 }
 0x625   :  { %v1057_v27 = vsel %vm586_vm5, %v940_v25, -inf }
 0x626   :  { %1058 = vmax.xlane.f32.xlu0 %v1057_v27  ;;  %v944_v32 = vpop.f32.mrf.mxu1 }
 0x627   :  { %v945_v33 = vadd.f32 %v944_v32, %v4869_v38 }
 0x628   :  { %v3999_v35 = vpop.f32.mrf.mxu1 }
 0x629   :  { %v1060_v36 = vsel %vm586_vm5, %v945_v33, -inf }
 0x62a   :  { %1061 = vmax.xlane.f32.xlu1 %v1060_v36 }
 0x64b   :  { %v949_v37 = vpop.f32.mrf.mxu1 }
 0x64c   :  { %v950_v39 = vadd.f32 %v949_v37, %v4869_v38 }
 0x64d   :  { %v4002_v40 = vpop.f32.mrf.mxu1 }
 0x64e   :  { %v1063_v41 = vsel %vm586_vm5, %v950_v39, -inf }
 0x64f   :  { %1064 = vmax.xlane.f32.xlu0 %v1063_v41  ;;  %v4977_v42 = vpop.f32.mrf.mxu0 }
 0x651   :  { %v3981_v44 = vpop.f32.mrf.mxu0 }
 0x653   :  { %v4979_v45 = vpop.f32.mrf.mxu0 }
 0x655   :  { %v3984_v46 = vpop.f32.mrf.mxu0 }
 0x684   :  { %v4981_v43 = vpop.f32.mrf.mxu0 }
 0x686   :  { %v3987_v47 = vpop.f32.mrf.mxu0 }
 0x688   :  { %v1043_v49 = vpop.f32.mrf.mxu0 }
 0x689   :  { %v1044_v50 = vadd.f32 %v1043_v49, %v4869_v38 }
 0x68a   :  { %v4011_v51 = vpop.f32.mrf.mxu0 }
 0x68b   :  { %v1066_v52 = vsel %vm586_vm5, %v1044_v50, -inf }
 0x68c   :  { %1067 = vmax.xlane.f32.xlu0 %v1066_v52  ;;  %v1048_v54 = vpop.f32.mrf.mxu0 }
 0x68d   :  { %v1049_v48 = vadd.f32 %v1048_v54, %v4869_v38 }
 0x68e   :  { %v4014_v55 = vpop.f32.mrf.mxu0 }
 0x68f   :  { %v1069_v53 = vsel %vm586_vm5, %v1049_v48, -inf }
 0x690   :  { %1070 = vmax.xlane.f32.xlu0 %v1069_v53  ;;  %v1053_v56 = vpop.f32.mrf.mxu0 }
 0x691   :  { %v1054_v28 = vadd.f32 %v1053_v56, %v4869_v38 }
 0x692   :  { %v4017_v30 = vpop.f32.mrf.mxu0 }
 0x693   :  { %v1072_v57 = vsel %vm586_vm5, %v1054_v28, -inf }
 0x694   :  { %1073 = vmax.xlane.f32.xlu1 %v1072_v57 }
 0x6a5   :  { %1125 = vrot.lane.b32.xlu1 %v4782_v63, %s4552_s19 }
 0x6a6   :  { %1127 = vrot.lane.b32.xlu0 %v4788_v4, %s4552_s19 }
 0x6a9   :  { %1123 = vrot.lane.b32.xlu1 %v4786_v3, %s4552_s19 }
 0x6ad   :  { %1225 = vrot.lane.b32.xlu1 %v4798_v13, %s4552_s19 }
 0x6af   :  { %v1059_v31 = vpop.xlane.xlu0 %1058 }
 0x6b0   :  { %v1075_v59 = vsub.f32 %v940_v25, %v1059_v31 }
 0x6b2   :  { %v1081_v58 = vmul.f32 1.442695, %v1075_v59 }
 0x6b3   :  { %v1062_v60 = vpop.xlane.xlu1 %1061 }
 0x6b4   :  { %4413 = vpow2.f32 %v1081_v58  ;;  %v1076_v61 = vsub.f32 %v945_v33, %v1062_v60 }
 0x6b6   :  { %v1083_v62 = vmul.f32 1.442695, %v1076_v61  ;;  %v4351_v61 = vld [vmem:[%s5701_s7 + $0x8] sm:$0xff]  }
 0x6b8   :  { %4415 = vpow2.f32 %v1083_v62 }
 0x6c1   :  { %v4414_v1 = vpop.eup %4413 }
 0x6c2   :  { %v1093_v63 = vsel %vm586_vm5, %v4414_v1, 0.0 }
 0x6c5   :  { %1094 = vadd.xlane.f32.xlu0 %v1093_v63  ;;  %v4416_v2 = vpop.eup %4415  ;;  %v4352_v63 = vld [vmem:[%s5701_s7] sm:$0xff]  }
 0x6c6   :  { %v1096_v4 = vsel %vm586_vm5, %v4416_v2, 0.0 }
 0x6d1   :  { %1097 = vadd.xlane.f32.xlu1 %v1096_v4 }
 0x6d8   :  { %v1065_v3 = vpop.xlane.xlu0 %1064 }
 0x6d9   :  { %v1077_v5 = vsub.f32 %v950_v39, %v1065_v3 }
 0x6db   :  { %v1085_v6 = vmul.f32 1.442695, %v1077_v5 }
 0x6dd   :  { %4417 = vpow2.f32 %v1085_v6 }
 0x6ea   :  { %v4418_v13 = vpop.eup %4417 }
 0x6eb   :  { %v1099_v7 = vsel %vm586_vm5, %v4418_v13, 0.0 }
 0x6ec   :  { %1100 = vadd.xlane.f32.xlu0 %v1099_v7 }
 0x715   :  { %v1068_v8 = vpop.xlane.xlu0 %1067 }
 0x716   :  { %v1078_v11 = vsub.f32 %v1044_v50, %v1068_v8 }
 0x718   :  { %v1087_v12 = vmul.f32 1.442695, %v1078_v11 }
 0x719   :  { %v1071_v17 = vpop.xlane.xlu0 %1070 }
 0x71a   :  { %4419 = vpow2.f32 %v1087_v12  ;;  %v1079_v20 = vsub.f32 %v1049_v48, %v1071_v17 }
 0x71c   :  { %v1089_v22 = vmul.f32 1.442695, %v1079_v20 }
 0x71d   :  { %v1128_v23 = vpop.permute.xlu0 %1127  ;;  %v1074_v25 = vpop.xlane.xlu1 %1073 }
 0x71e   :  { %4421 = vpow2.f32 %v1089_v22  ;;  %v1080_v26 = vsub.f32 %v1054_v28, %v1074_v25  ;;  %4019 = vmatpush3.msra.mxu1 %v1128_v23 }
 0x71f   :  { %4020 = vmatprep.subr.mxu1 %v4545_v0 }
 0x720   :  { %v1091_v27 = vmul.f32 1.442695, %v1080_v26 }
 0x721   :  { %v1126_v32 = vpop.permute.xlu1 %1125 }
 0x722   :  { %4423 = vpow2.f32 %v1091_v27  ;;  %4021 = vmatpush3.msra.mxu1 %v1126_v32 }
 0x723   :  { %4022 = vmatprep.subr.mxu1 %v4545_v0 }
 0x725   :  { %v1124_v33 = vpop.permute.xlu1 %1123 }
 0x726   :  { %4023 = vmatpush3.msra.mxu1 %v1124_v33 }
 0x727   :  { %v4420_v35 = vpop.eup %4419  ;;  %4048 = vmatprep.subr.bf16.mxu1 %v4545_v0 }
 0x728   :  { %v1102_v36 = vsel %vm586_vm5, %v4420_v35, 0.0 }
 0x729   :  { %1103 = vadd.xlane.f32.xlu1 %v1102_v36  ;;  %v1226_v37 = vpop.permute.xlu1 %1225 }
 0x72a   :  { %4034 = vmatpush3.msra.mxu0 %v1226_v37 }
 0x72b   :  { %v4422_v39 = vpop.eup %4421  ;;  %4035 = vmatprep.subr.mxu0 %v4545_v0 }
 0x72c   :  { %v1105_v40 = vsel %vm586_vm5, %v4422_v39, 0.0 }
 0x72d   :  { %1106 = vadd.xlane.f32.xlu0 %v1105_v40 }
 0x72f   :  { %v4424_v41 = vpop.eup %4423 }
 0x730   :  { %v1108_v44 = vsel %vm586_vm5, %v4424_v41, 0.0 }
 0x731   :  { %1109 = vadd.xlane.f32.xlu1 %v1108_v44 }
 0x742   :  { %1221 = vrot.lane.b32.xlu1 %v4804_v16, %s4552_s19 }
 0x743   :  { %1223 = vrot.lane.b32.xlu0 %v4794_v10, %s4552_s19 }
 0x74e   :  { %v1095_v46 = vpop.xlane.xlu0 %1094 }
 0x74f   :  { %4425 = vrcp.f32 %v1095_v46 }
 0x75a   :  { %v1098_v47 = vpop.xlane.xlu1 %1097 }
 0x75b   :  { %4427 = vrcp.f32 %v1098_v47 }
 0x75c   :  { %v4426_v49 = vpop.eup %4425 }
 0x75d   :  { %v1117_v50 = vmul.f32 %v4426_v49, %v4414_v1 }
 0x75f   :  { %4025 = vmatmul.mubr.msk.f32.vlgmr.msra.gmra.mxu1 %vm586_vm5, %v1117_v50  ;;  %v3614_v50 = vld [vmem:[%s5703_s9] ss:$0 sm:$0xff] }
 0x760   :  { %4027 = vmatprep.mubr.msk.f32.mxu1 %vm4546_vm0, %v4545_v0  ;;  %4049 = vmatpush3.bf16.msra.mxu1 %v4351_v61 }
 0x761   :  { %4050 = vmatprep.subr.bf16.mxu1 %v4545_v0 }
 0x764   :  { %4051 = vmatpush3.bf16.msra.mxu1 %v4352_v63 }
 0x765   :  { %4080 = vmatprep.subr.bf16.mxu1 %v4545_v0 }
 0x768   :  { %v4428_v51 = vpop.eup %4427 }
 0x769   :  { %v1118_v52 = vmul.f32 %v4428_v51, %v4416_v2 }
 0x76b   :  { %4028 = vmatmul.mubr.msk.f32.gmra.mxu1 %vm586_vm5, %v1118_v52 }
 0x76c   :  { %4030 = vmatprep.mubr.msk.f32.mxu1 %vm4546_vm0, %v4545_v0 }
 0x775   :  { %v1101_v16 = vpop.xlane.xlu0 %1100 }
 0x776   :  { %4429 = vrcp.f32 %v1101_v16 }
 0x783   :  { %v4430_v10 = vpop.eup %4429 }
 0x784   :  { %v1119_v54 = vmul.f32 %v4430_v10, %v4418_v13 }
 0x786   :  { %4031 = vmatmul.mubr.msk.f32.gmra.mxu1 %vm586_vm5, %v1119_v54 }
 0x787   :  { %4052 = vmatprep.mubr.msk.bf16.mxu1 %vm4546_vm0, %v4545_v0 }
 0x7b2   :  { %v1104_v48 = vpop.xlane.xlu1 %1103 }
 0x7b3   :  { %4431 = vrcp.f32 %v1104_v48 }
 0x7b6   :  { %v1107_v55 = vpop.xlane.xlu0 %1106 }
 0x7b7   :  { %4433 = vrcp.f32 %v1107_v55 }
 0x7ba   :  { %v1224_v53 = vpop.permute.xlu0 %1223  ;;  %v1110_v56 = vpop.xlane.xlu1 %1109 }
 0x7bb   :  { %4435 = vrcp.f32 %v1110_v56  ;;  %4036 = vmatpush3.msra.mxu0 %v1224_v53 }
 0x7bc   :  { %4037 = vmatprep.subr.mxu0 %v4545_v0 }
 0x7be   :  { %v1222_v28 = vpop.permute.xlu1 %1221 }
 0x7bf   :  { %4038 = vmatpush3.msra.mxu0 %v1222_v28 }
 0x7c0   :  { %v4432_v30 = vpop.eup %4431  ;;  %4064 = vmatprep.subr.bf16.mxu0 %v4545_v0 }
 0x7c1   :  { %v1120_v57 = vmul.f32 %v4432_v30, %v4420_v35 }
 0x7c3   :  { %4040 = vmatmul.mubr.msk.f32.vlgmr.msra.gmra.mxu0 %vm586_vm5, %v1120_v57 }
 0x7c4   :  { %v4434_v31 = vpop.eup %4433  ;;  %4042 = vmatprep.mubr.msk.f32.mxu0 %vm4546_vm0, %v4545_v0 }
 0x7c5   :  { %v1121_v59 = vmul.f32 %v4434_v31, %v4422_v39 }
 0x7c7   :  { %4043 = vmatmul.mubr.msk.f32.gmra.mxu0 %vm586_vm5, %v1121_v59 }
 0x7c8   :  { %v4436_v58 = vpop.eup %4435  ;;  %4045 = vmatprep.mubr.msk.f32.mxu0 %vm4546_vm0, %v4545_v0 }
 0x7c9   :  { %v1122_v60 = vmul.f32 %v4436_v58, %v4424_v41 }
 0x7cb   :  { %4046 = vmatmul.mubr.msk.f32.gmra.mxu0 %vm586_vm5, %v1122_v60 }
 0x7cc   :  { %4068 = vmatprep.mubr.msk.bf16.mxu0 %vm4546_vm0, %v4545_v0 }
 0x81f   :  { %v1207_v62 = vpop.f32.mrf.mxu1 }
 0x821   :  { %v4026_v1 = vpop.f32.mrf.mxu1 }
 0x82b   :  { %v1212_v2 = vpop.f32.mrf.mxu1 }
 0x82c   :  { %v4313_v4 = vpack.i.bf16 %v1212_v2, %v1207_v62 }
 0x82d   :  { %v4029_v3 = vpop.f32.mrf.mxu1 }
 0x82e   :  { %4314 = vrot.lane.b32.xlu0 %v4313_v4, %s4553_s22 }
 0x846   :  { %v1217_v5 = vpop.f32.mrf.mxu1 }
 0x848   :  { %v4032_v6 = vpop.f32.mrf.mxu1 }
 0x883   :  { %v1305_v13 = vpop.f32.mrf.mxu0 }
 0x884   :  { %v4318_v7 = vpack.i.bf16 %v1305_v13, %v1217_v5 }
 0x885   :  { %v4041_v8 = vpop.f32.mrf.mxu0 }
 0x886   :  { %4319 = vrot.lane.b32.xlu1 %v4318_v7, %s4553_s22 }
 0x887   :  { %v1310_v11 = vpop.f32.mrf.mxu0 }
 0x889   :  { %v4044_v12 = vpop.f32.mrf.mxu0 }
 0x88b   :  { %v1315_v17 = vpop.f32.mrf.mxu0 }
 0x88c   :  { %v4323_v20 = vpack.i.bf16 %v1315_v17, %v1310_v11 }
 0x88d   :  { %v4047_v22 = vpop.f32.mrf.mxu0 }
 0x88e   :  { %4324 = vrot.lane.b32.xlu0 %v4323_v20, %s4553_s22 }
 0x8a0   :  { %v4315_v23 = vpop.permute.xlu0 %4314 }
 0x8a1   :  { %v4317_v25 = vunpack.i.h.bf16 %v4315_v23  ;;  %v4316_v26 = vunpack.i.l.bf16 %v4315_v23 }
 0x8a3   :  { %v1344_v27 = vsel %vm392_vm3, %v4967_v18, %v4317_v25  ;;  %v1343_v32 = vsel %vm392_vm3, %v4965_v15, %v4316_v26 }
 0x8a4   :  { %v1349_v33 = vpack.c.bf16 %v1344_v27, %v1343_v32  ;;  %v4353_v32 = vld [vmem:[%s5704_s12 + $0x8] sm:$0xff]  }
 0x8a5   :  { %4065 = vmatpush3.bf16.msra.mxu0 %v4353_v32  ;;  %v4357_v32 = vld [vmem:[%s5707_s14 + $0x28] sm:$0xff]  }
 0x8a6   :  { %4053 = vmatmul.mubr.msk.bf16.vlgmr.msra.gmra.mxu1 %vm187_vm2, %v1349_v33  ;;  %v4354_v33 = vld [vmem:[%s5704_s12] sm:$0xff]   ;;  %4066 = vmatprep.subr.bf16.mxu0 %v4545_v0 }
 0x8a7   :  { %4056 = vmatprep.mubr.msk.bf16.mxu1 %vm4546_vm0, %v4545_v0 }
 0x8a9   :  { %4067 = vmatpush3.bf16.msra.mxu0 %v4354_v33 }
 0x8aa   :  { %4108 = vmatprep.subr.bf16.mxu0 %v4545_v0 }
 0x8f8   :  { %v4320_v35 = vpop.permute.xlu1 %4319 }
 0x8f9   :  { %v4322_v36 = vunpack.i.h.bf16 %v4320_v35  ;;  %v4321_v37 = vunpack.i.l.bf16 %v4320_v35 }
 0x8fb   :  { %v1346_v39 = vsel %vm392_vm3, %v4977_v42, %v4322_v36  ;;  %v1345_v40 = vsel %vm392_vm3, %v4969_v21, %v4321_v37  ;;  %v3608_v21 = vld [vmem:[%s5702_s8] ss:$0 sm:$0xff] }
 0x8fc   :  { %v1350_v41 = vpack.c.bf16 %v1346_v39, %v1345_v40 }
 0x8fe   :  { %4057 = vmatmul.mubr.msk.bf16.gmra.mxu1 %vm187_vm2, %v1350_v41 }
 0x8ff   :  { %4060 = vmatprep.mubr.msk.bf16.mxu1 %vm4546_vm0, %v4545_v0 }
 0x900   :  { %v4325_v15 = vpop.permute.xlu0 %4324 }
 0x901   :  { %v4327_v18 = vunpack.i.h.bf16 %v4325_v15  ;;  %v4326_v44 = vunpack.i.l.bf16 %v4325_v15 }
 0x903   :  { %v1348_v46 = vsel %vm392_vm3, %v4981_v43, %v4327_v18  ;;  %v1347_v47 = vsel %vm392_vm3, %v4979_v45, %v4326_v44 }
 0x904   :  { %v1351_v49 = vpack.c.bf16 %v1348_v46, %v1347_v47 }
 0x906   :  { %4061 = vmatmul.mubr.msk.bf16.gmra.mxu1 %vm187_vm2, %v1351_v49 }
 0x907   :  { %4096 = vmatprep.mubr.msk.bf16.mxu1 %vm4546_vm0, %v4545_v0 }
 0x966   :  { %v1418_v42 = vpop.f32.mrf.mxu1 }
 0x967   :  { %v1419_v51 = vadd.f32 %v3608_v21, %v1418_v42 }
 0x968   :  { %v4054_v43 = vpop.f32.mrf.mxu1 }
 0x969   :  { %v1448_v52 = vmul.f32 %v3614_v50, %v1419_v51 }
 0x96a   :  { %v1421_v16 = vpop.f32.mrf.mxu1 }
 0x96b   :  { %v5070_v45 = vadd.f32 %v1448_v52, %v4680_v9  ;;  %v1422_v10 = vadd.f32 %v3608_v21, %v1421_v16 }
 0x96c   :  { %v4055_v54 = vpop.f32.mrf.mxu1 }
 0x96d   :  { %v1449_v48 = vmul.f32 %v3614_v50, %v1422_v10  ;;  %v1462_v55 = vsel %vm187_vm2, %v5070_v45, 0.0 }
 0x96e   :  { %1463 = vadd.xlane.f32.xlu1 %v1462_v55 }
 0x96f   :  { %v5075_v53 = vadd.f32 %v1449_v48, %v4687_v14 }
 0x971   :  { %v1465_v56 = vsel %vm187_vm2, %v5075_v53, 0.0 }
 0x972   :  { %1466 = vadd.xlane.f32.xlu0 %v1465_v56 }
 0x9be   :  { %v1426_v28 = vpop.f32.mrf.mxu1 }
 0x9bf   :  { %v1427_v30 = vadd.f32 %v3608_v21, %v1426_v28 }
 0x9c0   :  { %v4058_v57 = vpop.f32.mrf.mxu1 }
 0x9c1   :  { %v1450_v31 = vmul.f32 %v3614_v50, %v1427_v30 }
 0x9c2   :  { %v1429_v9 = vpop.f32.mrf.mxu1 }
 0x9c3   :  { %v5080_v59 = vadd.f32 %v1450_v31, %v4694_v19  ;;  %v1430_v58 = vadd.f32 %v3608_v21, %v1429_v9  ;;  %v3615_v9 = vld [vmem:[%s5705_s10] ss:$0 sm:$0xff] }
 0x9c4   :  { %v4059_v60 = vpop.f32.mrf.mxu1 }
 0x9c5   :  { %v1451_v61 = vmul.f32 %v3614_v50, %v1430_v58  ;;  %v1468_v62 = vsel %vm187_vm2, %v5080_v59, 0.0 }
 0x9c6   :  { %1469 = vadd.xlane.f32.xlu0 %v1468_v62  ;;  %v1434_v14 = vpop.f32.mrf.mxu1  ;;  %v3616_v62 = vld [vmem:[%s5706_s11] ss:$0 sm:$0xff] }
 0x9c7   :  { %v5085_v1 = vadd.f32 %v1451_v61, %v4701_v24  ;;  %v1435_v63 = vadd.f32 %v3608_v21, %v1434_v14 }
 0x9c8   :  { %v4062_v2 = vpop.f32.mrf.mxu1 }
 0x9c9   :  { %v1452_v4 = vmul.f32 %v3614_v50, %v1435_v63  ;;  %v1471_v3 = vsel %vm187_vm2, %v5085_v1, 0.0 }
 0x9ca   :  { %1472 = vadd.xlane.f32.xlu0 %v1471_v3  ;;  %v1437_v19 = vpop.f32.mrf.mxu1 }
 0x9cb   :  { %v5090_v5 = vadd.f32 %v1452_v4, %v4708_v29  ;;  %v1438_v6 = vadd.f32 %v3608_v21, %v1437_v19 }
 0x9cc   :  { %v4063_v13 = vpop.f32.mrf.mxu1 }
 0x9cd   :  { %v1453_v7 = vmul.f32 %v3614_v50, %v1438_v6  ;;  %v1474_v8 = vsel %vm187_vm2, %v5090_v5, 0.0 }
 0x9ce   :  { %1475 = vadd.xlane.f32.xlu1 %v1474_v8 }
 0x9cf   :  { %v5095_v24 = vadd.f32 %v1453_v7, %v4715_v34 }
 0x9d1   :  { %v1477_v11 = vsel %vm187_vm2, %v5095_v24, 0.0 }
 0x9d2   :  { %1478 = vadd.xlane.f32.xlu0 %v1477_v11 }
 0x9f7   :  { %v1464_v12 = vpop.xlane.xlu1 %1463 }
 0x9f8   :  { %v1480_v17 = vmul.f32 0.03125, %v1464_v12 }
 0x9fa   :  { %v1486_v20 = vsub.f32 %v5070_v45, %v1480_v17 }
 0x9fb   :  { %v1467_v29 = vpop.xlane.xlu0 %1466 }
 0x9fc   :  { %v1481_v22 = vmul.f32 0.03125, %v1467_v29  ;;  %v1492_v23 = vmul.f32 %v1486_v20, %v1486_v20 }
 0x9fe   :  { %v1487_v25 = vsub.f32 %v5075_v53, %v1481_v22  ;;  %v1498_v26 = vsel %vm187_vm2, %v1492_v23, 0.0  ;;  %v4355_v22 = vld [vmem:[%s5707_s14 + $0x38] sm:$0xff]  }
 0x9ff   :  { %1499 = vadd.xlane.f32.xlu1 %v1498_v26  ;;  %4081 = vmatpush3.bf16.msra.mxu1 %v4355_v22  ;;  %v4356_v26 = vld [vmem:[%s5707_s14 + $0x30] sm:$0xff]  }
 0xa00   :  { %v1493_v27 = vmul.f32 %v1487_v25, %v1487_v25  ;;  %4082 = vmatprep.subr.bf16.mxu1 %v4545_v0 }
 0xa02   :  { %v1501_v34 = vsel %vm187_vm2, %v1493_v27, 0.0 }
 0xa03   :  { %1502 = vadd.xlane.f32.xlu0 %v1501_v34  ;;  %4083 = vmatpush3.bf16.msra.mxu1 %v4356_v26 }
 0xa04   :  { %4084 = vmatprep.subr.bf16.mxu1 %v4545_v0 }
 0xa07   :  { %4085 = vmatpush3.bf16.msra.mxu1 %v4357_v32 }
 0xa08   :  { %4086 = vmatprep.subr.bf16.mxu1 %v4545_v0 }
 0xa4f   :  { %v1470_v35 = vpop.xlane.xlu0 %1469 }
 0xa50   :  { %v1482_v36 = vmul.f32 0.03125, %v1470_v35 }
 0xa52   :  { %v5112_v37 = vsub.f32 %v5080_v59, %v1482_v36 }
 0xa53   :  { %v1473_v39 = vpop.xlane.xlu0 %1472 }
 0xa54   :  { %v1483_v40 = vmul.f32 0.03125, %v1473_v39  ;;  %v1494_v41 = vmul.f32 %v5112_v37, %v5112_v37 }
 0xa56   :  { %v5117_v15 = vsub.f32 %v5085_v1, %v1483_v40  ;;  %v1504_v18 = vsel %vm187_vm2, %v1494_v41, 0.0 }
 0xa57   :  { %1505 = vadd.xlane.f32.xlu1 %v1504_v18  ;;  %v1476_v44 = vpop.xlane.xlu1 %1475 }
 0xa58   :  { %v1484_v46 = vmul.f32 0.03125, %v1476_v44  ;;  %v1495_v47 = vmul.f32 %v5117_v15, %v5117_v15 }
 0xa5a   :  { %v5123_v49 = vsub.f32 %v5090_v5, %v1484_v46  ;;  %v1507_v21 = vsel %vm187_vm2, %v1495_v47, 0.0 }
 0xa5b   :  { %1508 = vadd.xlane.f32.xlu0 %v1507_v21  ;;  %v1479_v42 = vpop.xlane.xlu0 %1478 }
 0xa5c   :  { %v1485_v50 = vmul.f32 0.03125, %v1479_v42  ;;  %v1496_v51 = vmul.f32 %v5123_v49, %v5123_v49 }
 0xa5e   :  { %v5129_v43 = vsub.f32 %v5095_v24, %v1485_v50  ;;  %v1510_v52 = vsel %vm187_vm2, %v1496_v51, 0.0 }
 0xa5f   :  { %1511 = vadd.xlane.f32.xlu1 %v1510_v52 }
 0xa60   :  { %v1497_v16 = vmul.f32 %v5129_v43, %v5129_v43 }
 0xa62   :  { %v1513_v10 = vsel %vm187_vm2, %v1497_v16, 0.0  ;;  %v4362_v16 = vld [vmem:[%s5707_s14] sm:$0xff]  }
 0xa63   :  { %1514 = vadd.xlane.f32.xlu0 %v1513_v10  ;;  %v3617_v10 = vld [vmem:[%s5708_s13] ss:$0 sm:$0xff] }
 0xa88   :  { %v1500_v54 = vpop.xlane.xlu1 %1499 }
 0xa89   :  { %v1516_v48 = vmul.f32 0.03125, %v1500_v54 }
 0xa8b   :  { %v1522_v55 = vadd.f32 1e-06, %v1516_v48 }
 0xa8c   :  { %v1503_v56 = vpop.xlane.xlu0 %1502 }
 0xa8d   :  { %4437 = vrsqrt.f32 %v1522_v55  ;;  %v1517_v28 = vmul.f32 0.03125, %v1503_v56 }
 0xa8f   :  { %v1523_v30 = vadd.f32 1e-06, %v1517_v28 }
 0xa91   :  { %4439 = vrsqrt.f32 %v1523_v30 }
 0xa9a   :  { %v4438_v57 = vpop.eup %4437 }
 0xa9b   :  { %v1534_v31 = vmul.f32 %v4438_v57, %v1486_v20 }
 0xa9d   :  { %v1546_v60 = vmul.f32 %v3615_v9, %v1534_v31 }
 0xa9e   :  { %v4440_v58 = vpop.eup %4439 }
 0xa9f   :  { %v1535_v61 = vmul.f32 %v4440_v58, %v1487_v25  ;;  %v1558_v63 = vadd.f32 %v3616_v62, %v1546_v60 }
 0xaa1   :  { %v1547_v14 = vmul.f32 %v3615_v9, %v1535_v61 }
 0xaa3   :  { %v1559_v2 = vadd.f32 %v3616_v62, %v1547_v14 }
 0xaa5   :  { %v1564_v4 = vpack.c.bf16 %v1559_v2, %v1558_v63 }
 0xaa7   :  { %4069 = vmatmul.mubr.msk.bf16.vlgmr.msra.gmra.mxu0 %vm187_vm2, %v1564_v4 }
 0xaa8   :  { %4072 = vmatprep.mubr.msk.bf16.mxu0 %vm4546_vm0, %v4545_v0 }
 0xae0   :  { %v1506_v3 = vpop.xlane.xlu1 %1505 }
 0xae1   :  { %v1518_v19 = vmul.f32 0.03125, %v1506_v3 }
 0xae3   :  { %v1524_v6 = vadd.f32 1e-06, %v1518_v19 }
 0xae4   :  { %v1509_v13 = vpop.xlane.xlu0 %1508 }
 0xae5   :  { %4441 = vrsqrt.f32 %v1524_v6  ;;  %v1519_v7 = vmul.f32 0.03125, %v1509_v13 }
 0xae7   :  { %v1525_v8 = vadd.f32 1e-06, %v1519_v7 }
 0xae8   :  { %v1512_v11 = vpop.xlane.xlu1 %1511 }
 0xae9   :  { %4443 = vrsqrt.f32 %v1525_v8  ;;  %v1520_v12 = vmul.f32 0.03125, %v1512_v11 }
 0xaeb   :  { %v1526_v17 = vadd.f32 1e-06, %v1520_v12 }
 0xaec   :  { %v1515_v20 = vpop.xlane.xlu0 %1514 }
 0xaed   :  { %4445 = vrsqrt.f32 %v1526_v17  ;;  %v1521_v29 = vmul.f32 0.03125, %v1515_v20 }
 0xaef   :  { %v1527_v23 = vadd.f32 1e-06, %v1521_v29 }
 0xaf1   :  { %4447 = vrsqrt.f32 %v1527_v23 }
 0xaf2   :  { %v4442_v25 = vpop.eup %4441 }
 0xaf3   :  { %v1536_v27 = vmul.f32 %v4442_v25, %v5112_v37  ;;  %v4358_v37 = vld [vmem:[%s5707_s14 + $0x20] sm:$0xff]  }
 0xaf4   :  { %4087 = vmatpush3.bf16.msra.mxu1 %v4358_v37 }
 0xaf5   :  { %v1548_v35 = vmul.f32 %v3615_v9, %v1536_v27  ;;  %4088 = vmatprep.subr.bf16.mxu1 %v4545_v0 }
 0xaf6   :  { %v4444_v34 = vpop.eup %4443 }
 0xaf7   :  { %v1537_v33 = vmul.f32 %v4444_v34, %v5117_v15  ;;  %v1560_v40 = vadd.f32 %v3616_v62, %v1548_v35  ;;  %v4359_v15 = vld [vmem:[%s5707_s14 + $0x18] sm:$0xff]  }
 0xaf8   :  { %4089 = vmatpush3.bf16.msra.mxu1 %v4359_v15 }
 0xaf9   :  { %v1549_v36 = vmul.f32 %v3615_v9, %v1537_v33  ;;  %4090 = vmatprep.subr.bf16.mxu1 %v4545_v0 }
 0xafa   :  { %v4446_v39 = vpop.eup %4445 }
 0xafb   :  { %v1561_v41 = vadd.f32 %v3616_v62, %v1549_v36  ;;  %v1538_v18 = vmul.f32 %v4446_v39, %v5123_v49  ;;  %v4360_v49 = vld [vmem:[%s5707_s14 + $0x10] sm:$0xff]  }
 0xafc   :  { %4091 = vmatpush3.bf16.msra.mxu1 %v4360_v49 }
 0xafd   :  { %v1565_v44 = vpack.c.bf16 %v1561_v41, %v1560_v40  ;;  %v1550_v21 = vmul.f32 %v3615_v9, %v1538_v18  ;;  %4092 = vmatprep.subr.bf16.mxu1 %v4545_v0 }
 0xafe   :  { %v4448_v46 = vpop.eup %4447 }
 0xaff   :  { %4073 = vmatmul.mubr.msk.bf16.gmra.mxu0 %vm187_vm2, %v1565_v44  ;;  %v1539_v47 = vmul.f32 %v4448_v46, %v5129_v43  ;;  %v1562_v50 = vadd.f32 %v3616_v62, %v1550_v21  ;;  %v4361_v43 = vld [vmem:[%s5707_s14 + $0x8] sm:$0xff]  }
 0xb00   :  { %4076 = vmatprep.mubr.msk.bf16.mxu0 %vm4546_vm0, %v4545_v0  ;;  %4093 = vmatpush3.bf16.msra.mxu1 %v4361_v43 }
 0xb01   :  { %v1551_v42 = vmul.f32 %v3615_v9, %v1539_v47  ;;  %4094 = vmatprep.subr.bf16.mxu1 %v4545_v0 }
 0xb03   :  { %v1563_v51 = vadd.f32 %v3616_v62, %v1551_v42 }
 0xb04   :  { %4095 = vmatpush3.bf16.msra.mxu1 %v4362_v16 }
 0xb05   :  { %v1566_v52 = vpack.c.bf16 %v1563_v51, %v1562_v50  ;;  %4139 = vmatprep.subr.mxu1 %v4545_v0 }
 0xb07   :  { %4077 = vmatmul.mubr.msk.bf16.gmra.mxu0 %vm187_vm2, %v1566_v52 }
 0xb08   :  { %4112 = vmatprep.mubr.msk.bf16.mxu0 %vm4546_vm0, %v4545_v0 }
 0xb67   :  { %v1633_v54 = vpop.f32.mrf.mxu0 }
 0xb68   :  { %v1634_v48 = vadd.f32 %v3617_v10, %v1633_v54 }
 0xb69   :  { %v4070_v55 = vpop.f32.mrf.mxu0 }
 0xb6a   :  { %v1656_v56 = vmul.f32 %v1634_v48, %v1634_v48 }
 0xb6b   :  { %v1636_v28 = vpop.f32.mrf.mxu0 }
 0xb6c   :  { %v1662_v30 = vmul.f32 %v1656_v56, %v1634_v48  ;;  %v1637_v57 = vadd.f32 %v3617_v10, %v1636_v28 }
 0xb6d   :  { %v4071_v31 = vpop.f32.mrf.mxu0 }
 0xb6e   :  { %v1668_v9 = vmul.f32 0.044715, %v1662_v30  ;;  %v1657_v58 = vmul.f32 %v1637_v57, %v1637_v57 }
 0xb70   :  { %v1674_v60 = vadd.f32 %v1668_v9, %v1634_v48  ;;  %v1663_v61 = vmul.f32 %v1657_v58, %v1637_v57 }
 0xb72   :  { %v1680_v62 = vmul.f32 0.7978846, %v1674_v60  ;;  %v1669_v14 = vmul.f32 0.044715, %v1663_v61 }
 0xb74   :  { %4449 = vtanh.f32 %v1680_v62  ;;  %v1675_v63 = vadd.f32 %v1669_v14, %v1637_v57 }
 0xb76   :  { %v1681_v2 = vmul.f32 0.7978846, %v1675_v63 }
 0xb78   :  { %4451 = vtanh.f32 %v1681_v2 }
 0xb81   :  { %v4450_v4 = vpop.eup %4449 }
 0xb82   :  { %v1692_v3 = vadd.f32 1.0, %v4450_v4 }
 0xb84   :  { %v1698_v6 = vmul.f32 0.5, %v1692_v3 }
 0xb85   :  { %v4452_v19 = vpop.eup %4451 }
 0xb86   :  { %v1693_v13 = vadd.f32 1.0, %v4452_v19  ;;  %v1704_v8 = vmul.f32 %v1698_v6, %v1634_v48  ;;  %v3623_v6 = vld [vmem:[%s5709_s15] ss:$0 sm:$0xff] }
 0xb88   :  { %v1699_v7 = vmul.f32 0.5, %v1693_v13 }
 0xb8a   :  { %v1705_v11 = vmul.f32 %v1699_v7, %v1637_v57  ;;  %v3632_v7 = vld [vmem:[%s5710_s16] ss:$0 sm:$0xff] }
 0xb8c   :  { %v1710_v12 = vpack.c.bf16 %v1705_v11, %v1704_v8 }
 0xb8e   :  { %4097 = vmatmul.mubr.bf16.vlgmr.msra.gmra.mxu1 %v1710_v12 }
 0xb8f   :  { %4100 = vmatprep.mubr.msk.bf16.mxu1 %vm4546_vm0, %v4545_v0 }
 0xbbf   :  { %v1641_v17 = vpop.f32.mrf.mxu0 }
 0xbc0   :  { %v1642_v20 = vadd.f32 %v3617_v10, %v1641_v17 }
 0xbc1   :  { %v4074_v29 = vpop.f32.mrf.mxu0 }
 0xbc2   :  { %v1658_v22 = vmul.f32 %v1642_v20, %v1642_v20 }
 0xbc3   :  { %v1644_v23 = vpop.f32.mrf.mxu0 }
 0xbc4   :  { %v1664_v25 = vmul.f32 %v1658_v22, %v1642_v20  ;;  %v1645_v26 = vadd.f32 %v3617_v10, %v1644_v23 }
 0xbc5   :  { %v4075_v27 = vpop.f32.mrf.mxu0 }
 0xbc6   :  { %v1670_v34 = vmul.f32 0.044715, %v1664_v25  ;;  %v1659_v32 = vmul.f32 %v1645_v26, %v1645_v26 }
 0xbc7   :  { %v1649_v33 = vpop.f32.mrf.mxu0 }
 0xbc8   :  { %v1676_v35 = vadd.f32 %v1670_v34, %v1642_v20  ;;  %v1665_v36 = vmul.f32 %v1659_v32, %v1645_v26  ;;  %v1650_v39 = vadd.f32 %v3617_v10, %v1649_v33 }
 0xbc9   :  { %v4078_v37 = vpop.f32.mrf.mxu0 }
 0xbca   :  { %v1682_v40 = vmul.f32 0.7978846, %v1676_v35  ;;  %v1671_v41 = vmul.f32 0.044715, %v1665_v36  ;;  %v1660_v18 = vmul.f32 %v1650_v39, %v1650_v39 }
 0xbcb   :  { %v1652_v44 = vpop.f32.mrf.mxu0 }
 0xbcc   :  { %4453 = vtanh.f32 %v1682_v40  ;;  %v1677_v46 = vadd.f32 %v1671_v41, %v1645_v26  ;;  %v1666_v15 = vmul.f32 %v1660_v18, %v1650_v39  ;;  %v1653_v47 = vadd.f32 %v3617_v10, %v1652_v44 }
 0xbcd   :  { %v4079_v21 = vpop.f32.mrf.mxu0 }
 0xbce   :  { %v1683_v42 = vmul.f32 0.7978846, %v1677_v46  ;;  %v1672_v49 = vmul.f32 0.044715, %v1666_v15  ;;  %v1661_v50 = vmul.f32 %v1653_v47, %v1653_v47 }
 0xbd0   :  { %4455 = vtanh.f32 %v1683_v42  ;;  %v1678_v51 = vadd.f32 %v1672_v49, %v1650_v39  ;;  %v1667_v52 = vmul.f32 %v1661_v50, %v1653_v47 }
 0xbd2   :  { %v1684_v43 = vmul.f32 0.7978846, %v1678_v51  ;;  %v1673_v16 = vmul.f32 0.044715, %v1667_v52 }
 0xbd4   :  { %4457 = vtanh.f32 %v1684_v43  ;;  %v1679_v54 = vadd.f32 %v1673_v16, %v1653_v47 }
 0xbd6   :  { %v1685_v48 = vmul.f32 0.7978846, %v1679_v54 }
 0xbd8   :  { %4459 = vtanh.f32 %v1685_v48 }
 0xbd9   :  { %v4454_v55 = vpop.eup %4453 }
 0xbda   :  { %v1694_v56 = vadd.f32 1.0, %v4454_v55 }
 0xbdc   :  { %v1700_v57 = vmul.f32 0.5, %v1694_v56 }
 0xbdd   :  { %v4456_v28 = vpop.eup %4455 }
 0xbde   :  { %v1695_v30 = vadd.f32 1.0, %v4456_v28  ;;  %v1706_v9 = vmul.f32 %v1700_v57, %v1642_v20  ;;  %v4363_v57 = vld [vmem:[%s5697_s5 + $0x18] sm:$0xff]  }
 0xbdf   :  { %4109 = vmatpush3.bf16.msra.mxu0 %v4363_v57 }
 0xbe0   :  { %v1701_v31 = vmul.f32 0.5, %v1695_v30  ;;  %4110 = vmatprep.subr.bf16.mxu0 %v4545_v0 }
 0xbe1   :  { %v4458_v10 = vpop.eup %4457 }
 0xbe2   :  { %v1707_v58 = vmul.f32 %v1701_v31, %v1645_v26  ;;  %v1696_v60 = vadd.f32 1.0, %v4458_v10  ;;  %v4364_v31 = vld [vmem:[%s5697_s5 + $0x10] sm:$0xff]  }
 0xbe3   :  { %4111 = vmatpush3.bf16.msra.mxu0 %v4364_v31 }
 0xbe4   :  { %v1711_v61 = vpack.c.bf16 %v1707_v58, %v1706_v9  ;;  %v1702_v63 = vmul.f32 0.5, %v1696_v60  ;;  %4124 = vmatprep.subr.mxu0 %v4545_v0 }
 0xbe5   :  { %v4460_v62 = vpop.eup %4459 }
 0xbe6   :  { %4101 = vmatmul.mubr.bf16.gmra.mxu1 %v1711_v61  ;;  %v1697_v14 = vadd.f32 1.0, %v4460_v62  ;;  %v1708_v4 = vmul.f32 %v1702_v63, %v1650_v39 }
 0xbe7   :  { %4104 = vmatprep.mubr.msk.bf16.mxu1 %vm4546_vm0, %v4545_v0 }
 0xbe8   :  { %v1703_v2 = vmul.f32 0.5, %v1697_v14 }
 0xbea   :  { %v1709_v3 = vmul.f32 %v1703_v2, %v1653_v47 }
 0xbec   :  { %v1712_v19 = vpack.c.bf16 %v1709_v3, %v1708_v4 }
 0xbee   :  { %4105 = vmatmul.mubr.bf16.gmra.mxu1 %v1712_v19 }
 0xbef   :  { %4145 = vmatprep.mubr.msk.f32.mxu1 %vm4546_vm0, %v4545_v0 }
 0xc4e   :  { %v1818_v13 = vpop.f32.mrf.mxu1 }
 0xc4f   :  { %v1819_v8 = vadd.f32 %v3623_v6, %v1818_v13 }
 0xc50   :  { %v4098_v11 = vpop.f32.mrf.mxu1 }
 0xc51   :  { %v1848_v12 = vmul.f32 %v3632_v7, %v1819_v8 }
 0xc52   :  { %v1821_v17 = vpop.f32.mrf.mxu1 }
 0xc53   :  { %v5202_v20 = vadd.f32 %v1848_v12, %v5070_v45  ;;  %v1822_v29 = vadd.f32 %v3623_v6, %v1821_v17 }
 0xc54   :  { %v4099_v22 = vpop.f32.mrf.mxu1 }
 0xc55   :  { %v1849_v23 = vmul.f32 %v3632_v7, %v1822_v29  ;;  %v1864_v25 = vsel %vm187_vm2, %v5202_v20, 0.0 }
 0xc56   :  { %1865 = vadd.xlane.f32.xlu1 %v1864_v25 }
 0xc57   :  { %v5207_v26 = vadd.f32 %v1849_v23, %v5075_v53 }
 0xc59   :  { %v1867_v27 = vsel %vm187_vm2, %v5207_v26, 0.0 }
 0xc5a   :  { %1868 = vadd.xlane.f32.xlu0 %v1867_v27 }
 0xca6   :  { %v1826_v34 = vpop.f32.mrf.mxu1 }
 0xca7   :  { %v1827_v32 = vadd.f32 %v3623_v6, %v1826_v34 }
 0xca8   :  { %v4102_v33 = vpop.f32.mrf.mxu1 }
 0xca9   :  { %v1850_v35 = vmul.f32 %v3632_v7, %v1827_v32 }
 0xcaa   :  { %v1829_v45 = vpop.f32.mrf.mxu1 }
 0xcab   :  { %v5212_v36 = vadd.f32 %v1850_v35, %v5080_v59  ;;  %v1830_v39 = vadd.f32 %v3623_v6, %v1829_v45  ;;  %v3635_v45 = vld [vmem:[%s5698_s3 + $0x1] ss:$0 sm:$0xff] }
 0xcac   :  { %v4103_v37 = vpop.f32.mrf.mxu1 }
 0xcad   :  { %v1851_v40 = vmul.f32 %v3632_v7, %v1830_v39  ;;  %v1870_v41 = vsel %vm187_vm2, %v5212_v36, 0.0 }
 0xcae   :  { %1871 = vadd.xlane.f32.xlu1 %v1870_v41  ;;  %v1834_v53 = vpop.f32.mrf.mxu1  ;;  %v3636_v41 = vld [vmem:[%s5699_s4 + $0x1] ss:$0 sm:$0xff] }
 0xcaf   :  { %v5217_v18 = vadd.f32 %v1851_v40, %v5085_v1  ;;  %v1835_v44 = vadd.f32 %v3623_v6, %v1834_v53 }
 0xcb0   :  { %v4106_v46 = vpop.f32.mrf.mxu1 }
 0xcb1   :  { %v1852_v15 = vmul.f32 %v3632_v7, %v1835_v44  ;;  %v1873_v47 = vsel %vm187_vm2, %v5217_v18, 0.0 }
 0xcb2   :  { %1874 = vadd.xlane.f32.xlu0 %v1873_v47  ;;  %v1837_v59 = vpop.f32.mrf.mxu1 }
 0xcb3   :  { %v5222_v21 = vadd.f32 %v1852_v15, %v5090_v5  ;;  %v1838_v42 = vadd.f32 %v3623_v6, %v1837_v59 }
 0xcb4   :  { %v4107_v49 = vpop.f32.mrf.mxu1 }
 0xcb5   :  { %v1853_v50 = vmul.f32 %v3632_v7, %v1838_v42  ;;  %v1876_v51 = vsel %vm187_vm2, %v5222_v21, 0.0 }
 0xcb6   :  { %1877 = vadd.xlane.f32.xlu1 %v1876_v51 }
 0xcb7   :  { %v5227_v1 = vadd.f32 %v1853_v50, %v5095_v24 }
 0xcb9   :  { %v1879_v52 = vsel %vm187_vm2, %v5227_v1, 0.0 }
 0xcba   :  { %1880 = vadd.xlane.f32.xlu0 %v1879_v52 }
 0xcdf   :  { %v1866_v43 = vpop.xlane.xlu1 %1865 }
 0xce0   :  { %v1882_v16 = vmul.f32 0.03125, %v1866_v43 }
 0xce2   :  { %v1888_v54 = vsub.f32 %v5202_v20, %v1882_v16 }
 0xce3   :  { %v1869_v5 = vpop.xlane.xlu0 %1868 }
 0xce4   :  { %v1883_v48 = vmul.f32 0.03125, %v1869_v5  ;;  %v1894_v55 = vmul.f32 %v1888_v54, %v1888_v54 }
 0xce6   :  { %v1889_v56 = vsub.f32 %v5207_v26, %v1883_v48  ;;  %v1900_v28 = vsel %vm187_vm2, %v1894_v55, 0.0 }
 0xce7   :  { %1901 = vadd.xlane.f32.xlu1 %v1900_v28 }
 0xce8   :  { %v1895_v30 = vmul.f32 %v1889_v56, %v1889_v56 }
 0xcea   :  { %v1903_v24 = vsel %vm187_vm2, %v1895_v30, 0.0 }
 0xceb   :  { %1904 = vadd.xlane.f32.xlu0 %v1903_v24 }
 0xd37   :  { %v1872_v10 = vpop.xlane.xlu1 %1871 }
 0xd38   :  { %v1884_v9 = vmul.f32 0.03125, %v1872_v10 }
 0xd3a   :  { %v1890_v58 = vsub.f32 %v5212_v36, %v1884_v9 }
 0xd3b   :  { %v1875_v60 = vpop.xlane.xlu0 %1874 }
 0xd3c   :  { %v1885_v61 = vmul.f32 0.03125, %v1875_v60  ;;  %v1896_v62 = vmul.f32 %v1890_v58, %v1890_v58 }
 0xd3e   :  { %v1891_v14 = vsub.f32 %v5217_v18, %v1885_v61  ;;  %v1906_v63 = vsel %vm187_vm2, %v1896_v62, 0.0 }
 0xd3f   :  { %1907 = vadd.xlane.f32.xlu1 %v1906_v63  ;;  %v1878_v2 = vpop.xlane.xlu1 %1877 }
 0xd40   :  { %v1886_v4 = vmul.f32 0.03125, %v1878_v2  ;;  %v1897_v3 = vmul.f32 %v1891_v14, %v1891_v14 }
 0xd42   :  { %v1892_v19 = vsub.f32 %v5222_v21, %v1886_v4  ;;  %v1909_v6 = vsel %vm187_vm2, %v1897_v3, 0.0 }
 0xd43   :  { %1910 = vadd.xlane.f32.xlu0 %v1909_v6  ;;  %v1881_v13 = vpop.xlane.xlu0 %1880 }
 0xd44   :  { %v1887_v7 = vmul.f32 0.03125, %v1881_v13  ;;  %v1898_v8 = vmul.f32 %v1892_v19, %v1892_v19  ;;  %v3642_v13 = vld [vmem:[%s5700_s6 + $0x1] ss:$0 sm:$0xff] }
 0xd46   :  { %v1893_v11 = vsub.f32 %v5227_v1, %v1887_v7  ;;  %v1912_v12 = vsel %vm187_vm2, %v1898_v8, 0.0 }
 0xd47   :  { %1913 = vadd.xlane.f32.xlu1 %v1912_v12 }
 0xd48   :  { %v1899_v17 = vmul.f32 %v1893_v11, %v1893_v11 }
 0xd4a   :  { %v1915_v29 = vsel %vm187_vm2, %v1899_v17, 0.0 }
 0xd4b   :  { %1916 = vadd.xlane.f32.xlu0 %v1915_v29 }
 0xd70   :  { %v1902_v22 = vpop.xlane.xlu1 %1901 }
 0xd71   :  { %v1918_v23 = vmul.f32 0.03125, %v1902_v22 }
 0xd73   :  { %v1924_v25 = vadd.f32 1e-06, %v1918_v23 }
 0xd74   :  { %v1905_v27 = vpop.xlane.xlu0 %1904 }
 0xd75   :  { %4461 = vrsqrt.f32 %v1924_v25  ;;  %v1919_v34 = vmul.f32 0.03125, %v1905_v27 }
 0xd77   :  { %v1925_v32 = vadd.f32 1e-06, %v1919_v34 }
 0xd79   :  { %4463 = vrsqrt.f32 %v1925_v32 }
 0xd82   :  { %v4462_v33 = vpop.eup %4461 }
 0xd83   :  { %v1936_v35 = vmul.f32 %v4462_v33, %v1888_v54 }
 0xd85   :  { %v1948_v37 = vmul.f32 %v3635_v45, %v1936_v35 }
 0xd86   :  { %v4464_v39 = vpop.eup %4463 }
 0xd87   :  { %v1937_v40 = vmul.f32 %v4464_v39, %v1889_v56  ;;  %v1960_v44 = vadd.f32 %v3636_v41, %v1948_v37 }
 0xd89   :  { %v1949_v53 = vmul.f32 %v3635_v45, %v1937_v40 }
 0xd8b   :  { %v1961_v46 = vadd.f32 %v3636_v41, %v1949_v53 }
 0xd8d   :  { %v1966_v15 = vpack.c.bf16 %v1961_v46, %v1960_v44 }
 0xd8f   :  { %4113 = vmatmul.mubr.msk.bf16.vlgmr.msra.gmra.mxu0 %vm187_vm2, %v1966_v15 }
 0xd90   :  { %4116 = vmatprep.mubr.msk.bf16.mxu0 %vm4546_vm0, %v4545_v0 }
 0xdc8   :  { %v1908_v47 = vpop.xlane.xlu1 %1907 }
 0xdc9   :  { %v1920_v59 = vmul.f32 0.03125, %v1908_v47 }
 0xdcb   :  { %v1926_v42 = vadd.f32 1e-06, %v1920_v59 }
 0xdcc   :  { %v1911_v49 = vpop.xlane.xlu0 %1910 }
 0xdcd   :  { %4465 = vrsqrt.f32 %v1926_v42  ;;  %v1921_v50 = vmul.f32 0.03125, %v1911_v49 }
 0xdcf   :  { %v1927_v51 = vadd.f32 1e-06, %v1921_v50 }
 0xdd0   :  { %v1914_v52 = vpop.xlane.xlu1 %1913 }
 0xdd1   :  { %4467 = vrsqrt.f32 %v1927_v51  ;;  %v1922_v43 = vmul.f32 0.03125, %v1914_v52 }
 0xdd3   :  { %v1928_v16 = vadd.f32 1e-06, %v1922_v43 }
 0xdd4   :  { %v1917_v54 = vpop.xlane.xlu0 %1916 }
 0xdd5   :  { %4469 = vrsqrt.f32 %v1928_v16  ;;  %v1923_v5 = vmul.f32 0.03125, %v1917_v54 }
 0xdd7   :  { %v1929_v48 = vadd.f32 1e-06, %v1923_v5 }
 0xdd9   :  { %4471 = vrsqrt.f32 %v1929_v48 }
 0xdda   :  { %v4466_v55 = vpop.eup %4465 }
 0xddb   :  { %v1938_v56 = vmul.f32 %v4466_v55, %v1890_v58 }
 0xddd   :  { %v1950_v24 = vmul.f32 %v3635_v45, %v1938_v56 }
 0xdde   :  { %v4468_v28 = vpop.eup %4467 }
 0xddf   :  { %v1939_v30 = vmul.f32 %v4468_v28, %v1891_v14  ;;  %v1962_v10 = vadd.f32 %v3636_v41, %v1950_v24 }
 0xde1   :  { %v1951_v57 = vmul.f32 %v3635_v45, %v1939_v30 }
 0xde2   :  { %v4470_v31 = vpop.eup %4469 }
 0xde3   :  { %v1963_v9 = vadd.f32 %v3636_v41, %v1951_v57  ;;  %v1940_v60 = vmul.f32 %v4470_v31, %v1892_v19 }
 0xde5   :  { %v1967_v61 = vpack.c.bf16 %v1963_v9, %v1962_v10  ;;  %v1952_v2 = vmul.f32 %v3635_v45, %v1940_v60 }
 0xde6   :  { %v4472_v62 = vpop.eup %4471 }
 0xde7   :  { %4117 = vmatmul.mubr.msk.bf16.gmra.mxu0 %vm187_vm2, %v1967_v61  ;;  %v1941_v63 = vmul.f32 %v4472_v62, %v1893_v11  ;;  %v1964_v3 = vadd.f32 %v3636_v41, %v1952_v2 }
 0xde8   :  { %4120 = vmatprep.mubr.msk.bf16.mxu0 %vm4546_vm0, %v4545_v0 }
 0xde9   :  { %v1953_v4 = vmul.f32 %v3635_v45, %v1941_v63 }
 0xdeb   :  { %v1965_v58 = vadd.f32 %v3636_v41, %v1953_v4 }
 0xded   :  { %v1968_v6 = vpack.c.bf16 %v1965_v58, %v1964_v3 }
 0xdef   :  { %4121 = vmatmul.mubr.msk.bf16.gmra.mxu0 %vm187_vm2, %v1968_v6 }
 0xdf0   :  { %4130 = vmatprep.mubr.msk.f32.mxu0 %vm4546_vm0, %v4545_v0 }
 0xe4f   :  { %v2037_v14 = vpop.f32.mrf.mxu0 }
 0xe50   :  { %v5277_v23 = vadd.f32 %v3642_v13, %v2037_v14 }
 0xe51   :  { %v4114_v19 = vpop.f32.mrf.mxu0 }
 0xe53   :  { %v2040_v7 = vpop.f32.mrf.mxu0 }
 0xe54   :  { %v5269_v8 = vadd.f32 %v3642_v13, %v2040_v7 }
 0xe55   :  { %v4115_v11 = vpop.f32.mrf.mxu0 }
 0xe56   :  { %2065 = vrot.lane.b32.xlu0 %v5269_v8, %s4547_s29 }
 0xea7   :  { %v2045_v12 = vpop.f32.mrf.mxu0 }
 0xea8   :  { %v5273_v17 = vadd.f32 %v3642_v13, %v2045_v12 }
 0xea9   :  { %v4118_v29 = vpop.f32.mrf.mxu0 }
 0xeaa   :  { %2067 = vrot.lane.b32.xlu1 %v5273_v17, %s4547_s29 }
 0xeab   :  { %v2048_v22 = vpop.f32.mrf.mxu0 }
 0xeac   :  { %v5279_v25 = vadd.f32 %v3642_v13, %v2048_v22 }
 0xead   :  { %v4119_v27 = vpop.f32.mrf.mxu0 }
 0xeae   :  { %2063 = vrot.lane.b32.xlu1 %v5277_v23, %s4547_s29  ;;  %2164 = vrot.lane.b32.xlu0 %v5279_v25, %s4547_s29 }
 0xeaf   :  { %v2053_v34 = vpop.f32.mrf.mxu0 }
 0xeb0   :  { %v5293_v39 = vadd.f32 %v3642_v13, %v2053_v34 }
 0xeb1   :  { %v4122_v32 = vpop.f32.mrf.mxu0 }
 0xeb2   :  { %2330 = vrot.lane.b32.xlu0 %v5269_v8, %s4548_s1 }
 0xeb3   :  { %v2056_v33 = vpop.f32.mrf.mxu0 }
 0xeb4   :  { %v5287_v35 = vadd.f32 %v3642_v13, %v2056_v33 }
 0xeb5   :  { %v4123_v45 = vpop.f32.mrf.mxu0 }
 0xeb6   :  { %2530 = vrot.lane.b32.xlu0 %v5277_v23, %s4549_s30  ;;  %2168 = vrot.lane.b32.xlu1 %v5287_v35, %s4547_s29 }
 0xeba   :  { %2430 = vrot.lane.b32.xlu0 %v5287_v35, %s4548_s1  ;;  %2166 = vrot.lane.b32.xlu1 %v5293_v39, %s4547_s29 }
 0xebe   :  { %2332 = vrot.lane.b32.xlu1 %v5273_v17, %s4548_s1 }
 0xec2   :  { %2328 = vrot.lane.b32.xlu1 %v5277_v23, %s4548_s1 }
 0xec6   :  { %2534 = vrot.lane.b32.xlu1 %v5273_v17, %s4549_s30 }
 0xec8   :  { %v2066_v40 = vpop.permute.xlu0 %2065 }
 0xeca   :  { %2532 = vrot.lane.b32.xlu1 %v5269_v8, %s4549_s30 }
 0xece   :  { %2428 = vrot.lane.b32.xlu1 %v5293_v39, %s4548_s1 }
 0xed2   :  { %2426 = vrot.lane.b32.xlu1 %v5279_v25, %s4548_s1 }
 0xf1c   :  { %v2068_v37 = vpop.permute.xlu1 %2067 }
 0xf1d   :  { %4125 = vmatpush3.xpose.msk.msra.mxu0 %vm392_vm3, %v2068_v37 }
 0xf1e   :  { %4126 = vmatprep.subr.mxu0 %v4545_v0 }
 0xf20   :  { %v2165_v41 = vpop.permute.xlu0 %2164  ;;  %v2064_v53 = vpop.permute.xlu1 %2063 }
 0xf21   :  { %4127 = vmatpush3.xpose.msk.msra.mxu0 %vm392_vm3, %v2066_v40 }
 0xf22   :  { %4128 = vmatprep.subr.mxu0 %v4545_v0 }
 0xf24   :  { %v2331_v44 = vpop.permute.xlu0 %2330 }
 0xf25   :  { %4129 = vmatpush3.xpose.msk.msra.mxu0 %vm392_vm3, %v2064_v53 }
 0xf26   :  { %4154 = vmatprep.subr.mxu0 %v4545_v0 }
 0xf28   :  { %4131 = vmatmul.mubr.msk.f32.vlgmr.msra.gmra.mxu0 %vm392_vm3, %v5277_v23  ;;  %v2169_v46 = vpop.permute.xlu1 %2168  ;;  %v5328_v47 = vpop.permute.xlu0 %2530 }
 0xf29   :  { %4140 = vmatpush3.xpose.msk.msra.mxu1 %vm392_vm3, %v2169_v46  ;;  %4133 = vmatprep.mubr.msk.f32.mxu0 %vm4546_vm0, %v4545_v0 }
 0xf2a   :  { %4141 = vmatprep.subr.mxu1 %v4545_v0 }
 0xf2c   :  { %4134 = vmatmul.mubr.msk.f32.gmra.mxu0 %vm392_vm3, %v5269_v8  ;;  %v2167_v15 = vpop.permute.xlu1 %2166  ;;  %v2431_v42 = vpop.permute.xlu0 %2430 }
 0xf2d   :  { %4142 = vmatpush3.xpose.msk.msra.mxu1 %vm392_vm3, %v2167_v15  ;;  %4136 = vmatprep.mubr.msk.f32.mxu0 %vm4546_vm0, %v4545_v0 }
 0xf2e   :  { %4143 = vmatprep.subr.mxu1 %v4545_v0 }
 0xf30   :  { %4137 = vmatmul.mubr.msk.f32.gmra.mxu0 %vm392_vm3, %v5273_v17  ;;  %v2333_v59 = vpop.permute.xlu1 %2332 }
 0xf31   :  { %4144 = vmatpush3.xpose.msk.msra.mxu1 %vm392_vm3, %v2165_v41  ;;  %4155 = vmatpush3.msra.mxu0 %v2333_v59 }
 0xf32   :  { %4156 = vmatprep.subr.mxu0 %v4545_v0  ;;  %4169 = vmatprep.subr.mxu1 %v4545_v0 }
 0xf33   :  { %4157 = vmatpush3.msra.mxu0 %v2331_v44  ;;  %4160 = vmatprep.mubr.msk.f32.mxu0 %vm4546_vm0, %v4545_v0 }
 0xf34   :  { %4146 = vmatmul.mubr.msk.f32.vlgmr.msra.gmra.mxu1 %vm392_vm3, %v5279_v25  ;;  %4158 = vmatprep.subr.mxu0 %v4545_v0  ;;  %v2329_v49 = vpop.permute.xlu1 %2328 }
 0xf35   :  { %4159 = vmatpush3.msra.mxu0 %v2329_v49  ;;  %4170 = vmatpush3.msra.mxu1 %v2431_v42 }
 0xf36   :  { %4148 = vmatprep.mubr.msk.f32.mxu1 %vm4546_vm0, %v4545_v0  ;;  %4171 = vmatprep.subr.mxu1 %v4545_v0 }
 0xf37   :  { %4184 = vmatprep.subr.mxu0 %v4545_v0 }
 0xf38   :  { %4149 = vmatmul.mubr.msk.f32.gmra.mxu1 %vm392_vm3, %v5293_v39  ;;  %v5347_v50 = vpop.permute.xlu1 %2534 }
 0xf39   :  { %4151 = vmatprep.mubr.msk.f32.mxu1 %vm4546_vm0, %v4545_v0 }
 0xf3c   :  { %4152 = vmatmul.mubr.msk.f32.gmra.mxu1 %vm392_vm3, %v5287_v35  ;;  %v5353_v51 = vpop.permute.xlu1 %2532 }
 0xf3d   :  { %4175 = vmatprep.mubr.msk.f32.mxu1 %vm4546_vm0, %v4545_v0 }
 0xf40   :  { %v2429_v52 = vpop.permute.xlu1 %2428 }
 0xf41   :  { %4172 = vmatpush3.msra.mxu1 %v2429_v52 }
 0xf42   :  { %4173 = vmatprep.subr.mxu1 %v4545_v0 }
 0xf44   :  { %v2427_v43 = vpop.permute.xlu1 %2426 }
 0xf45   :  { %4174 = vmatpush3.msra.mxu1 %v2427_v43 }
 0xf46   :  { %4199 = vmatprep.subr.mxu1 %v4545_v0 }
 0xfe8   :  { %v2147_v16 = vpop.f32.mrf.mxu0 }
 0xfe9   :  { %v2148_v54 = vadd.f32 %v2147_v16, %v4869_v38 }
 0xfea   :  { %v4132_v5 = vpop.f32.mrf.mxu0 }
 0xfeb   :  { %v2262_v48 = vsel %vm586_vm5, %v2148_v54, -inf }
 0xfec   :  { %2263 = vmax.xlane.f32.xlu1 %v2262_v48  ;;  %v2152_v55 = vpop.f32.mrf.mxu0 }
 0xfed   :  { %v2153_v56 = vadd.f32 %v2152_v55, %v4869_v38 }
 0xfee   :  { %v4135_v28 = vpop.f32.mrf.mxu0 }
 0xfef   :  { %v2265_v30 = vsel %vm586_vm5, %v2153_v56, -inf }
 0xff0   :  { %2266 = vmax.xlane.f32.xlu0 %v2265_v30  ;;  %v2157_v24 = vpop.f32.mrf.mxu0 }
 0xff1   :  { %v2158_v57 = vadd.f32 %v2157_v24, %v4869_v38 }
 0xff2   :  { %v4138_v31 = vpop.f32.mrf.mxu0 }
 0xff3   :  { %v2268_v10 = vsel %vm586_vm5, %v2158_v57, -inf }
 0xff4   :  { %v2248_v9 = vpop.f32.mrf.mxu1  ;;  %2269 = vmax.xlane.f32.xlu0 %v2268_v10 }
 0xff5   :  { %v2249_v60 = vadd.f32 %v2248_v9, %v4869_v38 }
 0xff6   :  { %v4147_v61 = vpop.f32.mrf.mxu1 }
 0xff7   :  { %v2271_v62 = vsel %vm586_vm5, %v2249_v60, -inf }
 0xff8   :  { %v2253_v63 = vpop.f32.mrf.mxu1  ;;  %2272 = vmax.xlane.f32.xlu0 %v2271_v62 }
 0xff9   :  { %v2254_v2 = vadd.f32 %v2253_v63, %v4869_v38 }
 0xffa   :  { %v4150_v4 = vpop.f32.mrf.mxu1 }
 0xffb   :  { %v2274_v3 = vsel %vm586_vm5, %v2254_v2, -inf }
 0xffc   :  { %v2258_v58 = vpop.f32.mrf.mxu1  ;;  %2275 = vmax.xlane.f32.xlu1 %v2274_v3 }
 0xffd   :  { %v2259_v6 = vadd.f32 %v2258_v58, %v4869_v38 }
 0xffe   :  { %v4153_v14 = vpop.f32.mrf.mxu1 }
 0xfff   :  { %v2277_v19 = vsel %vm586_vm5, %v2259_v6, -inf }
0x1000   :  { %2278 = vmax.xlane.f32.xlu0 %v2277_v19 }
0x100d   :  { %2638 = vrot.lane.b32.xlu1 %v5287_v35, %s4549_s30 }
0x1016   :  { %2524 = vrot.lane.b32.xlu0 %v5277_v23, %s4551_s18 }
0x1075   :  { %v2264_v13 = vpop.xlane.xlu1 %2263 }
0x1076   :  { %v2280_v7 = vsub.f32 %v2148_v54, %v2264_v13 }
0x1078   :  { %v2286_v11 = vmul.f32 1.442695, %v2280_v7 }
0x1079   :  { %v2267_v12 = vpop.xlane.xlu0 %2266 }
0x107a   :  { %4473 = vpow2.f32 %v2286_v11  ;;  %v2281_v29 = vsub.f32 %v2153_v56, %v2267_v12 }
0x107c   :  { %v2288_v22 = vmul.f32 1.442695, %v2281_v29 }
0x107d   :  { %v2270_v27 = vpop.xlane.xlu0 %2269 }
0x107e   :  { %4475 = vpow2.f32 %v2288_v22  ;;  %v2282_v34 = vsub.f32 %v2158_v57, %v2270_v27 }
0x1080   :  { %v2290_v32 = vmul.f32 1.442695, %v2282_v34 }
0x1081   :  { %v2273_v33 = vpop.xlane.xlu0 %2272 }
0x1082   :  { %4477 = vpow2.f32 %v2290_v32  ;;  %v2283_v45 = vsub.f32 %v2249_v60, %v2273_v33 }
0x1084   :  { %v2292_v37 = vmul.f32 1.442695, %v2283_v45 }
0x1085   :  { %v2276_v49 = vpop.xlane.xlu1 %2275 }
0x1086   :  { %4479 = vpow2.f32 %v2292_v37  ;;  %v2284_v52 = vsub.f32 %v2254_v2, %v2276_v49 }
0x1087   :  { %v4474_v40 = vpop.eup %4473 }
0x1088   :  { %v2298_v41 = vsel %vm586_vm5, %v4474_v40, 0.0  ;;  %v2294_v16 = vmul.f32 1.442695, %v2284_v52 }
0x1089   :  { %2299 = vadd.xlane.f32.xlu1 %v2298_v41  ;;  %v2279_v43 = vpop.xlane.xlu0 %2278  ;;  %v2639_v30 = vpop.permute.xlu1 %2638 }
0x108a   :  { %v2285_v54 = vsub.f32 %v2259_v6, %v2279_v43  ;;  %4481 = vpow2.f32 %v2294_v16 }
0x108b   :  { %v4476_v53 = vpop.eup %4475 }
0x108c   :  { %v2301_v44 = vsel %vm586_vm5, %v4476_v53, 0.0  ;;  %v2296_v5 = vmul.f32 1.442695, %v2285_v54 }
0x108d   :  { %2302 = vadd.xlane.f32.xlu0 %v2301_v44  ;;  %v2525_v24 = vpop.permute.xlu0 %2524 }
0x108e   :  { %4483 = vpow2.f32 %v2296_v5 }
0x108f   :  { %v4478_v46 = vpop.eup %4477 }
0x1090   :  { %v2304_v15 = vsel %vm586_vm5, %v4478_v46, 0.0 }
0x1091   :  { %2305 = vadd.xlane.f32.xlu1 %v2304_v15 }
0x1093   :  { %v4480_v59 = vpop.eup %4479 }
0x1094   :  { %v2307_v42 = vsel %vm586_vm5, %v4480_v59, 0.0 }
0x1095   :  { %2308 = vadd.xlane.f32.xlu0 %v2307_v42 }
0x1097   :  { %v5383_v48 = vpop.eup %4481 }
0x1098   :  { %v2310_v55 = vsel %vm586_vm5, %v5383_v48, 0.0 }
0x109b   :  { %v5387_v56 = vpop.eup %4483 }
0x109c   :  { %v2313_v28 = vsel %vm586_vm5, %v5387_v56, 0.0 }
0x10a2   :  { %2636 = vrot.lane.b32.xlu1 %v5293_v39, %s4549_s30 }
0x10ab   :  { %2526 = vrot.lane.b32.xlu0 %v5269_v8, %s4551_s18 }
0x10c6   :  { %2311 = vadd.xlane.f32.xlu1 %v2310_v55 }
0x10ca   :  { %2314 = vadd.xlane.f32.xlu0 %v2313_v28 }
0x10d7   :  { %2528 = vrot.lane.b32.xlu1 %v5273_v17, %s4551_s18 }
0x10db   :  { %2630 = vrot.lane.b32.xlu1 %v5293_v39, %s4551_s18 }
0x10e0   :  { %2634 = vrot.lane.b32.xlu0 %v5279_v25, %s4549_s30 }
0x10e4   :  { %2628 = vrot.lane.b32.xlu0 %v5279_v25, %s4551_s18 }
0x10e8   :  { %2632 = vrot.lane.b32.xlu0 %v5287_v35, %s4551_s18 }
0x1112   :  { %v2300_v57 = vpop.xlane.xlu1 %2299 }
0x1113   :  { %4485 = vrcp.f32 %v2300_v57 }
0x1116   :  { %v2303_v31 = vpop.xlane.xlu0 %2302 }
0x1117   :  { %4487 = vrcp.f32 %v2303_v31 }
0x111a   :  { %v2306_v10 = vpop.xlane.xlu1 %2305 }
0x111b   :  { %4489 = vrcp.f32 %v2306_v10 }
0x111e   :  { %v2309_v9 = vpop.xlane.xlu0 %2308 }
0x111f   :  { %4491 = vrcp.f32 %v2309_v9 }
0x1120   :  { %v4486_v60 = vpop.eup %4485 }
0x1121   :  { %v2322_v61 = vmul.f32 %v4486_v60, %v4474_v40 }
0x1123   :  { %4161 = vmatmul.mubr.msk.f32.vlgmr.msra.gmra.mxu0 %vm586_vm5, %v2322_v61 }
0x1124   :  { %v4488_v62 = vpop.eup %4487  ;;  %4185 = vmatpush3.xpose.msk.msra.mxu0 %vm392_vm3, %v5347_v50  ;;  %4163 = vmatprep.mubr.msk.f32.mxu0 %vm4546_vm0, %v4545_v0 }
0x1125   :  { %4186 = vmatprep.subr.mxu0 %v4545_v0  ;;  %v2323_v63 = vmul.f32 %v4488_v62, %v4476_v53 }
0x1127   :  { %4164 = vmatmul.mubr.msk.f32.gmra.mxu0 %vm586_vm5, %v2323_v63 }
0x1128   :  { %v4490_v2 = vpop.eup %4489  ;;  %4187 = vmatpush3.xpose.msk.msra.mxu0 %vm392_vm3, %v5353_v51  ;;  %4166 = vmatprep.mubr.msk.f32.mxu0 %vm4546_vm0, %v4545_v0  ;;  %v2637_v51 = vpop.permute.xlu1 %2636 }
0x1129   :  { %4188 = vmatprep.subr.mxu0 %v4545_v0  ;;  %v2324_v4 = vmul.f32 %v4490_v2, %v4478_v46 }
0x112b   :  { %4167 = vmatmul.mubr.msk.f32.gmra.mxu0 %vm586_vm5, %v2324_v4 }
0x112c   :  { %v4492_v50 = vpop.eup %4491  ;;  %4189 = vmatpush3.xpose.msk.msra.mxu0 %vm392_vm3, %v5328_v47  ;;  %4190 = vmatprep.mubr.msk.f32.mxu0 %vm4546_vm0, %v4545_v0  ;;  %v2527_v47 = vpop.permute.xlu0 %2526 }
0x112d   :  { %v2325_v3 = vmul.f32 %v4492_v50, %v4480_v59  ;;  %4214 = vmatprep.subr.mxu0 %v4545_v0 }
0x112f   :  { %4176 = vmatmul.mubr.msk.f32.vlgmr.msra.gmra.mxu1 %vm586_vm5, %v2325_v3  ;;  %4191 = vmatmul.mubr.msk.f32.vlgmr.msra.gmra.mxu0 %vm392_vm3, %v2525_v24 }
0x1130   :  { %4200 = vmatpush3.xpose.msk.msra.mxu1 %vm392_vm3, %v2639_v30  ;;  %4193 = vmatprep.mubr.msk.f32.mxu0 %vm4546_vm0, %v4545_v0 }
0x1131   :  { %4201 = vmatprep.subr.mxu1 %v4545_v0  ;;  %4178 = vmatprep.mubr.msk.f32.mxu1 %vm4546_vm0, %v4545_v0 }
0x1133   :  { %4194 = vmatmul.mubr.msk.f32.gmra.mxu0 %vm392_vm3, %v2527_v47 }
0x1134   :  { %4202 = vmatpush3.xpose.msk.msra.mxu1 %vm392_vm3, %v2637_v51  ;;  %4196 = vmatprep.mubr.msk.f32.mxu0 %vm4546_vm0, %v4545_v0 }
0x1135   :  { %4203 = vmatprep.subr.mxu1 %v4545_v0 }
0x114f   :  { %v2312_v58 = vpop.xlane.xlu1 %2311 }
0x1150   :  { %4493 = vrcp.f32 %v2312_v58 }
0x1153   :  { %v2529_v6 = vpop.permute.xlu1 %2528  ;;  %v2315_v14 = vpop.xlane.xlu0 %2314 }
0x1154   :  { %4495 = vrcp.f32 %v2315_v14  ;;  %4197 = vmatmul.mubr.msk.f32.gmra.mxu0 %vm392_vm3, %v2529_v6 }
0x1155   :  { %4220 = vmatprep.mubr.msk.f32.mxu0 %vm4546_vm0, %v4545_v0 }
0x1157   :  { %v2635_v19 = vpop.permute.xlu0 %2634  ;;  %v2631_v22 = vpop.permute.xlu1 %2630 }
0x1158   :  { %4204 = vmatpush3.xpose.msk.msra.mxu1 %vm392_vm3, %v2635_v19 }
0x1159   :  { %4229 = vmatprep.subr.mxu1 %v4545_v0 }
0x115b   :  { %v2629_v29 = vpop.permute.xlu0 %2628 }
0x115d   :  { %v4494_v13 = vpop.eup %4493 }
0x115e   :  { %v2326_v7 = vmul.f32 %v4494_v13, %v5383_v48 }
0x115f   :  { %v2633_v27 = vpop.permute.xlu0 %2632 }
0x1160   :  { %4179 = vmatmul.mubr.msk.f32.gmra.mxu1 %vm586_vm5, %v2326_v7 }
0x1161   :  { %v4496_v11 = vpop.eup %4495  ;;  %4181 = vmatprep.mubr.msk.f32.mxu1 %vm4546_vm0, %v4545_v0 }
0x1162   :  { %v2327_v12 = vmul.f32 %v4496_v11, %v5387_v56 }
0x1164   :  { %4182 = vmatmul.mubr.msk.f32.gmra.mxu1 %vm586_vm5, %v2327_v12 }
0x1165   :  { %4205 = vmatprep.mubr.msk.f32.mxu1 %vm4546_vm0, %v4545_v0 }
0x1168   :  { %4206 = vmatmul.mubr.msk.f32.vlgmr.msra.gmra.mxu1 %vm392_vm3, %v2629_v29 }
0x1169   :  { %4208 = vmatprep.mubr.msk.f32.mxu1 %vm4546_vm0, %v4545_v0 }
0x116c   :  { %4209 = vmatmul.mubr.msk.f32.gmra.mxu1 %vm392_vm3, %v2631_v22 }
0x116d   :  { %4211 = vmatprep.mubr.msk.f32.mxu1 %vm4546_vm0, %v4545_v0 }
0x1170   :  { %4212 = vmatmul.mubr.msk.f32.gmra.mxu1 %vm392_vm3, %v2633_v27 }
0x1171   :  { %4235 = vmatprep.mubr.msk.f32.mxu1 %vm4546_vm0, %v4545_v0 }
0x11e3   :  { %v5454_v34 = vpop.f32.mrf.mxu0 }
0x11e5   :  { %v4162_v32 = vpop.f32.mrf.mxu0 }
0x11e7   :  { %v5456_v33 = vpop.f32.mrf.mxu0 }
0x11e9   :  { %v4165_v45 = vpop.f32.mrf.mxu0 }
0x11eb   :  { %v5458_v37 = vpop.f32.mrf.mxu0 }
0x11ed   :  { %v4168_v40 = vpop.f32.mrf.mxu0 }
0x11ef   :  { %v5460_v41 = vpop.f32.mrf.mxu1  ;;  %v2614_v53 = vpop.f32.mrf.mxu0 }
0x11f0   :  { %v2615_v44 = vadd.f32 %v2614_v53, %v4869_v38 }
0x11f1   :  { %v4177_v46 = vpop.f32.mrf.mxu1  ;;  %v4192_v15 = vpop.f32.mrf.mxu0 }
0x11f2   :  { %v2732_v59 = vsel %vm586_vm5, %v2615_v44, -inf }
0x11f3   :  { %2733 = vmax.xlane.f32.xlu1 %v2732_v59  ;;  %v2619_v42 = vpop.f32.mrf.mxu0 }
0x11f4   :  { %v2620_v49 = vadd.f32 %v2619_v42, %v4869_v38 }
0x11f5   :  { %v4195_v52 = vpop.f32.mrf.mxu0 }
0x11f6   :  { %v2735_v43 = vsel %vm586_vm5, %v2620_v49, -inf }
0x11f7   :  { %2736 = vmax.xlane.f32.xlu0 %v2735_v43 }
0x1214   :  { %v2624_v16 = vpop.f32.mrf.mxu0 }
0x1215   :  { %v2625_v54 = vadd.f32 %v2624_v16, %v4869_v38 }
0x1216   :  { %v4198_v5 = vpop.f32.mrf.mxu0 }
0x1217   :  { %v2738_v48 = vsel %vm586_vm5, %v2625_v54, -inf }
0x1218   :  { %2739 = vmax.xlane.f32.xlu0 %v2738_v48 }
0x1220   :  { %v5468_v55 = vpop.f32.mrf.mxu1 }
0x1222   :  { %v4180_v56 = vpop.f32.mrf.mxu1 }
0x1224   :  { %v5470_v28 = vpop.f32.mrf.mxu1 }
0x1226   :  { %v4183_v30 = vpop.f32.mrf.mxu1 }
0x1228   :  { %v2718_v24 = vpop.f32.mrf.mxu1 }
0x1229   :  { %v2719_v57 = vadd.f32 %v2718_v24, %v4869_v38 }
0x122a   :  { %v4207_v31 = vpop.f32.mrf.mxu1 }
0x122b   :  { %v2741_v10 = vsel %vm586_vm5, %v2719_v57, -inf }
0x122c   :  { %v2723_v9 = vpop.f32.mrf.mxu1  ;;  %2742 = vmax.xlane.f32.xlu0 %v2741_v10 }
0x122d   :  { %v2724_v60 = vadd.f32 %v2723_v9, %v4869_v38 }
0x122e   :  { %v4210_v61 = vpop.f32.mrf.mxu1 }
0x122f   :  { %v2744_v62 = vsel %vm586_vm5, %v2724_v60, -inf }
0x1230   :  { %v2728_v63 = vpop.f32.mrf.mxu1  ;;  %2745 = vmax.xlane.f32.xlu1 %v2744_v62 }
0x1231   :  { %v2729_v2 = vadd.f32 %v2728_v63, %v4869_v38 }
0x1232   :  { %v4213_v4 = vpop.f32.mrf.mxu1 }
0x1233   :  { %v2747_v50 = vsel %vm586_vm5, %v2729_v2, -inf }
0x1234   :  { %2748 = vmax.xlane.f32.xlu0 %v2747_v50 }
0x1241   :  { %2802 = vrot.lane.b32.xlu1 %v5273_v17, %s4552_s19 }
0x1245   :  { %2798 = vrot.lane.b32.xlu1 %v5277_v23, %s4552_s19 }
0x1249   :  { %2900 = vrot.lane.b32.xlu1 %v5287_v35, %s4552_s19 }
0x124a   :  { %2800 = vrot.lane.b32.xlu0 %v5269_v8, %s4552_s19 }
0x127c   :  { %v2734_v3 = vpop.xlane.xlu1 %2733 }
0x127d   :  { %v2750_v47 = vsub.f32 %v2615_v44, %v2734_v3 }
0x127f   :  { %v2756_v51 = vmul.f32 1.442695, %v2750_v47 }
0x1280   :  { %v2737_v38 = vpop.xlane.xlu0 %2736 }
0x1281   :  { %4497 = vpow2.f32 %v2756_v51  ;;  %v2751_v58 = vsub.f32 %v2620_v49, %v2737_v38  ;;  %v4365_v38 = vld [vmem:[%s5701_s7 + $0x18] sm:$0xff]  }
0x1283   :  { %v2758_v6 = vmul.f32 1.442695, %v2751_v58  ;;  %v4366_v58 = vld [vmem:[%s5701_s7 + $0x10] sm:$0xff]  }
0x1285   :  { %4499 = vpow2.f32 %v2758_v6 }
0x128e   :  { %v4498_v14 = vpop.eup %4497 }
0x128f   :  { %v2768_v17 = vsel %vm586_vm5, %v4498_v14, 0.0 }
0x1290   :  { %2769 = vadd.xlane.f32.xlu1 %v2768_v17 }
0x1292   :  { %v4500_v19 = vpop.eup %4499 }
0x1293   :  { %v2771_v23 = vsel %vm586_vm5, %v4500_v19, 0.0 }
0x1294   :  { %2772 = vadd.xlane.f32.xlu0 %v2771_v23 }
0x12a1   :  { %v2740_v35 = vpop.xlane.xlu0 %2739 }
0x12a2   :  { %v2752_v13 = vsub.f32 %v2625_v54, %v2740_v35 }
0x12a4   :  { %v2760_v7 = vmul.f32 1.442695, %v2752_v13 }
0x12a6   :  { %4501 = vpow2.f32 %v2760_v7 }
0x12b3   :  { %v4502_v8 = vpop.eup %4501 }
0x12b4   :  { %v2774_v11 = vsel %vm586_vm5, %v4502_v8, 0.0 }
0x12b5   :  { %2775 = vadd.xlane.f32.xlu1 %v2774_v11  ;;  %v2743_v12 = vpop.xlane.xlu0 %2742 }
0x12b6   :  { %v2753_v29 = vsub.f32 %v2719_v57, %v2743_v12 }
0x12b8   :  { %v2762_v22 = vmul.f32 1.442695, %v2753_v29 }
0x12b9   :  { %v2746_v27 = vpop.xlane.xlu1 %2745 }
0x12ba   :  { %4503 = vpow2.f32 %v2762_v22  ;;  %v2754_v32 = vsub.f32 %v2724_v60, %v2746_v27 }
0x12bc   :  { %v2764_v45 = vmul.f32 1.442695, %v2754_v32 }
0x12bd   :  { %v2803_v40 = vpop.permute.xlu1 %2802  ;;  %v2749_v53 = vpop.xlane.xlu0 %2748 }
0x12be   :  { %4505 = vpow2.f32 %v2764_v45  ;;  %v2755_v44 = vsub.f32 %v2729_v2, %v2749_v53  ;;  %4215 = vmatpush3.msra.mxu0 %v2803_v40 }
0x12bf   :  { %4216 = vmatprep.subr.mxu0 %v4545_v0 }
0x12c0   :  { %v2766_v46 = vmul.f32 1.442695, %v2755_v44 }
0x12c1   :  { %v2799_v15 = vpop.permute.xlu1 %2798  ;;  %v2801_v59 = vpop.permute.xlu0 %2800 }
0x12c2   :  { %4507 = vpow2.f32 %v2766_v46  ;;  %4217 = vmatpush3.msra.mxu0 %v2801_v59 }
0x12c3   :  { %4218 = vmatprep.subr.mxu0 %v4545_v0 }
0x12c4   :  { %4219 = vmatpush3.msra.mxu0 %v2799_v15 }
0x12c5   :  { %v2901_v42 = vpop.permute.xlu1 %2900  ;;  %4244 = vmatprep.subr.bf16.mxu0 %v4545_v0 }
0x12c6   :  { %4230 = vmatpush3.msra.mxu1 %v2901_v42 }
0x12c7   :  { %v4504_v49 = vpop.eup %4503  ;;  %4231 = vmatprep.subr.mxu1 %v4545_v0 }
0x12c8   :  { %v2777_v52 = vsel %vm586_vm5, %v4504_v49, 0.0 }
0x12c9   :  { %2778 = vadd.xlane.f32.xlu0 %v2777_v52 }
0x12cb   :  { %v4506_v43 = vpop.eup %4505 }
0x12cc   :  { %v2780_v16 = vsel %vm586_vm5, %v4506_v43, 0.0 }
0x12cd   :  { %2781 = vadd.xlane.f32.xlu1 %v2780_v16 }
0x12cf   :  { %v4508_v54 = vpop.eup %4507 }
0x12d0   :  { %v2783_v5 = vsel %vm586_vm5, %v4508_v54, 0.0 }
0x12d1   :  { %2784 = vadd.xlane.f32.xlu0 %v2783_v5 }
0x12de   :  { %2898 = vrot.lane.b32.xlu1 %v5293_v39, %s4552_s19 }
0x12e7   :  { %2896 = vrot.lane.b32.xlu0 %v5279_v25, %s4552_s19 }
0x1319   :  { %v2770_v48 = vpop.xlane.xlu1 %2769 }
0x131a   :  { %4509 = vrcp.f32 %v2770_v48 }
0x131d   :  { %v2773_v56 = vpop.xlane.xlu0 %2772 }
0x131e   :  { %4511 = vrcp.f32 %v2773_v56 }
0x1327   :  { %v4510_v30 = vpop.eup %4509 }
0x1328   :  { %v2792_v24 = vmul.f32 %v4510_v30, %v4498_v14  ;;  %v3696_v30 = vld [vmem:[%s5703_s9 + $0x1] ss:$0 sm:$0xff] }
0x132a   :  { %4221 = vmatmul.mubr.msk.f32.vlgmr.msra.gmra.mxu0 %vm586_vm5, %v2792_v24 }
0x132b   :  { %v4512_v57 = vpop.eup %4511  ;;  %4223 = vmatprep.mubr.msk.f32.mxu0 %vm4546_vm0, %v4545_v0  ;;  %4245 = vmatpush3.bf16.msra.mxu0 %v4365_v38 }
0x132c   :  { %v2793_v31 = vmul.f32 %v4512_v57, %v4500_v19  ;;  %4246 = vmatprep.subr.bf16.mxu0 %v4545_v0 }
0x132e   :  { %4224 = vmatmul.mubr.msk.f32.gmra.mxu0 %vm586_vm5, %v2793_v31 }
0x132f   :  { %4226 = vmatprep.mubr.msk.f32.mxu0 %vm4546_vm0, %v4545_v0  ;;  %4247 = vmatpush3.bf16.msra.mxu0 %v4366_v58 }
0x1330   :  { %4276 = vmatprep.subr.bf16.mxu0 %v4545_v0 }
0x133e   :  { %v2776_v39 = vpop.xlane.xlu1 %2775 }
0x133f   :  { %4513 = vrcp.f32 %v2776_v39 }
0x134c   :  { %v4514_v25 = vpop.eup %4513 }
0x134d   :  { %v2794_v10 = vmul.f32 %v4514_v25, %v4502_v8 }
0x134f   :  { %4227 = vmatmul.mubr.msk.f32.gmra.mxu0 %vm586_vm5, %v2794_v10 }
0x1350   :  { %4248 = vmatprep.mubr.msk.bf16.mxu0 %vm4546_vm0, %v4545_v0 }
0x1352   :  { %v2779_v9 = vpop.xlane.xlu0 %2778 }
0x1353   :  { %4515 = vrcp.f32 %v2779_v9 }
0x1356   :  { %v2782_v60 = vpop.xlane.xlu1 %2781 }
0x1357   :  { %4517 = vrcp.f32 %v2782_v60 }
0x135a   :  { %v2899_v61 = vpop.permute.xlu1 %2898  ;;  %v2785_v62 = vpop.xlane.xlu0 %2784 }
0x135b   :  { %4519 = vrcp.f32 %v2785_v62  ;;  %4232 = vmatpush3.msra.mxu1 %v2899_v61 }
0x135c   :  { %4233 = vmatprep.subr.mxu1 %v4545_v0 }
0x135e   :  { %v2897_v63 = vpop.permute.xlu0 %2896 }
0x135f   :  { %4234 = vmatpush3.msra.mxu1 %v2897_v63 }
0x1360   :  { %v4516_v2 = vpop.eup %4515  ;;  %4260 = vmatprep.subr.bf16.mxu1 %v4545_v0 }
0x1361   :  { %v2795_v4 = vmul.f32 %v4516_v2, %v4504_v49 }
0x1363   :  { %4236 = vmatmul.mubr.msk.f32.vlgmr.msra.gmra.mxu1 %vm586_vm5, %v2795_v4 }
0x1364   :  { %v4518_v50 = vpop.eup %4517  ;;  %4238 = vmatprep.mubr.msk.f32.mxu1 %vm4546_vm0, %v4545_v0 }
0x1365   :  { %v2796_v3 = vmul.f32 %v4518_v50, %v4506_v43 }
0x1367   :  { %4239 = vmatmul.mubr.msk.f32.gmra.mxu1 %vm586_vm5, %v2796_v3 }
0x1368   :  { %v4520_v47 = vpop.eup %4519  ;;  %4241 = vmatprep.mubr.msk.f32.mxu1 %vm4546_vm0, %v4545_v0 }
0x1369   :  { %v2797_v51 = vmul.f32 %v4520_v47, %v4508_v54 }
0x136b   :  { %4242 = vmatmul.mubr.msk.f32.gmra.mxu1 %vm586_vm5, %v2797_v51 }
0x136c   :  { %4264 = vmatprep.mubr.msk.bf16.mxu1 %vm4546_vm0, %v4545_v0 }
0x13ea   :  { %v2882_v6 = vpop.f32.mrf.mxu0 }
0x13ec   :  { %v4222_v14 = vpop.f32.mrf.mxu0 }
0x13ee   :  { %v2887_v17 = vpop.f32.mrf.mxu0 }
0x13ef   :  { %v4328_v19 = vpack.i.bf16 %v2887_v17, %v2882_v6 }
0x13f0   :  { %v4225_v23 = vpop.f32.mrf.mxu0 }
0x13f1   :  { %4329 = vrot.lane.b32.xlu1 %v4328_v19, %s4553_s22 }
0x140f   :  { %v2892_v35 = vpop.f32.mrf.mxu0 }
0x1411   :  { %v4228_v13 = vpop.f32.mrf.mxu0 }
0x1423   :  { %v2980_v7 = vpop.f32.mrf.mxu1 }
0x1424   :  { %v4333_v8 = vpack.i.bf16 %v2980_v7, %v2892_v35 }
0x1425   :  { %v4237_v11 = vpop.f32.mrf.mxu1 }
0x1426   :  { %4334 = vrot.lane.b32.xlu0 %v4333_v8, %s4553_s22 }
0x1427   :  { %v2985_v12 = vpop.f32.mrf.mxu1 }
0x1429   :  { %v4240_v29 = vpop.f32.mrf.mxu1 }
0x142b   :  { %v2990_v22 = vpop.f32.mrf.mxu1 }
0x142c   :  { %v4338_v27 = vpack.i.bf16 %v2990_v22, %v2985_v12 }
0x142d   :  { %v4243_v32 = vpop.f32.mrf.mxu1 }
0x142e   :  { %4339 = vrot.lane.b32.xlu1 %v4338_v27, %s4553_s22 }
0x1463   :  { %v4330_v45 = vpop.permute.xlu1 %4329 }
0x1464   :  { %v4332_v40 = vunpack.i.h.bf16 %v4330_v45  ;;  %v4331_v53 = vunpack.i.l.bf16 %v4330_v45 }
0x1466   :  { %v3019_v44 = vsel %vm392_vm3, %v5456_v33, %v4332_v40  ;;  %v3018_v46 = vsel %vm392_vm3, %v5454_v34, %v4331_v53 }
0x1467   :  { %v3024_v15 = vpack.c.bf16 %v3019_v44, %v3018_v46  ;;  %v4367_v44 = vld [vmem:[%s5704_s12 + $0x18] sm:$0xff]   ;;  %v4368_v46 = vld [vmem:[%s5704_s12 + $0x10] sm:$0xff]  }
0x1468   :  { %4261 = vmatpush3.bf16.msra.mxu1 %v4367_v44 }
0x1469   :  { %4249 = vmatmul.mubr.msk.bf16.vlgmr.msra.gmra.mxu0 %vm187_vm2, %v3024_v15  ;;  %4262 = vmatprep.subr.bf16.mxu1 %v4545_v0 }
0x146a   :  { %4252 = vmatprep.mubr.msk.bf16.mxu0 %vm4546_vm0, %v4545_v0 }
0x146c   :  { %4263 = vmatpush3.bf16.msra.mxu1 %v4368_v46 }
0x1498   :  { %v4335_v59 = vpop.permute.xlu0 %4334 }
0x1499   :  { %v4337_v42 = vunpack.i.h.bf16 %v4335_v59  ;;  %v4336_v49 = vunpack.i.l.bf16 %v4335_v59 }
0x149b   :  { %v3021_v52 = vsel %vm392_vm3, %v5460_v41, %v4337_v42  ;;  %v3020_v43 = vsel %vm392_vm3, %v5458_v37, %v4336_v49  ;;  %v3689_v37 = vld [vmem:[%s5702_s8 + $0x1] ss:$0 sm:$0xff] }
0x149c   :  { %v3025_v16 = vpack.c.bf16 %v3021_v52, %v3020_v43 }
0x149e   :  { %4253 = vmatmul.mubr.msk.bf16.gmra.mxu0 %vm187_vm2, %v3025_v16 }
0x149f   :  { %4256 = vmatprep.mubr.msk.bf16.mxu0 %vm4546_vm0, %v4545_v0 }
0x14a0   :  { %v4340_v34 = vpop.permute.xlu1 %4339 }
0x14a1   :  { %v4342_v33 = vunpack.i.h.bf16 %v4340_v34  ;;  %v4341_v54 = vunpack.i.l.bf16 %v4340_v34 }
0x14a3   :  { %v3023_v5 = vsel %vm392_vm3, %v5470_v28, %v4342_v33  ;;  %v3022_v48 = vsel %vm392_vm3, %v5468_v55, %v4341_v54 }
0x14a4   :  { %v3026_v56 = vpack.c.bf16 %v3023_v5, %v3022_v48 }
0x14a6   :  { %4257 = vmatmul.mubr.msk.bf16.gmra.mxu0 %vm187_vm2, %v3026_v56 }
0x14a7   :  { %4292 = vmatprep.mubr.msk.bf16.mxu0 %vm4546_vm0, %v4545_v0 }
0x1529   :  { %v3095_v41 = vpop.f32.mrf.mxu0 }
0x152a   :  { %v3096_v24 = vadd.f32 %v3689_v37, %v3095_v41 }
0x152b   :  { %v4250_v28 = vpop.f32.mrf.mxu0 }
0x152c   :  { %v3126_v57 = vmul.f32 %v3696_v30, %v3096_v24 }
0x152d   :  { %v3098_v31 = vpop.f32.mrf.mxu0 }
0x152e   :  { %v5559_v55 = vadd.f32 %v3126_v57, %v5202_v20  ;;  %v3099_v39 = vadd.f32 %v3689_v37, %v3098_v31 }
0x152f   :  { %v4251_v25 = vpop.f32.mrf.mxu0 }
0x1530   :  { %v3127_v10 = vmul.f32 %v3696_v30, %v3099_v39  ;;  %v3142_v9 = vsel %vm187_vm2, %v5559_v55, 0.0 }
0x1531   :  { %3143 = vadd.xlane.f32.xlu0 %v3142_v9 }
0x1532   :  { %v5564_v60 = vadd.f32 %v3127_v10, %v5207_v26 }
0x1534   :  { %v3145_v61 = vsel %vm187_vm2, %v5564_v60, 0.0 }
0x1535   :  { %3146 = vadd.xlane.f32.xlu1 %v3145_v61 }
0x155e   :  { %v3103_v62 = vpop.f32.mrf.mxu0 }
0x155f   :  { %v3104_v63 = vadd.f32 %v3689_v37, %v3103_v62 }
0x1560   :  { %v4254_v2 = vpop.f32.mrf.mxu0 }
0x1561   :  { %v3128_v4 = vmul.f32 %v3696_v30, %v3104_v63 }
0x1562   :  { %v3106_v20 = vpop.f32.mrf.mxu0 }
0x1563   :  { %v5569_v50 = vadd.f32 %v3128_v4, %v5212_v36  ;;  %v3107_v3 = vadd.f32 %v3689_v37, %v3106_v20  ;;  %v3699_v4 = vld [vmem:[%s5705_s10 + $0x1] ss:$0 sm:$0xff] }
0x1564   :  { %v4255_v47 = vpop.f32.mrf.mxu0 }
0x1565   :  { %v3129_v51 = vmul.f32 %v3696_v30, %v3107_v3  ;;  %v3148_v38 = vsel %vm187_vm2, %v5569_v50, 0.0 }
0x1566   :  { %3149 = vadd.xlane.f32.xlu0 %v3148_v38  ;;  %v3111_v26 = vpop.f32.mrf.mxu0 }
0x1567   :  { %v5574_v58 = vadd.f32 %v3129_v51, %v5217_v18  ;;  %v3112_v6 = vadd.f32 %v3689_v37, %v3111_v26  ;;  %v3700_v51 = vld [vmem:[%s5706_s11 + $0x1] ss:$0 sm:$0xff] }
0x1568   :  { %v4258_v14 = vpop.f32.mrf.mxu0 }
0x1569   :  { %v3130_v17 = vmul.f32 %v3696_v30, %v3112_v6  ;;  %v3151_v19 = vsel %vm187_vm2, %v5574_v58, 0.0 }
0x156a   :  { %3152 = vadd.xlane.f32.xlu0 %v3151_v19  ;;  %v3114_v36 = vpop.f32.mrf.mxu0 }
0x156b   :  { %v5579_v23 = vadd.f32 %v3130_v17, %v5222_v21  ;;  %v3115_v35 = vadd.f32 %v3689_v37, %v3114_v36 }
0x156c   :  { %v4259_v13 = vpop.f32.mrf.mxu0 }
0x156d   :  { %v3131_v7 = vmul.f32 %v3696_v30, %v3115_v35  ;;  %v3154_v8 = vsel %vm187_vm2, %v5579_v23, 0.0 }
0x156e   :  { %3155 = vadd.xlane.f32.xlu0 %v3154_v8 }
0x156f   :  { %v5584_v18 = vadd.f32 %v3131_v7, %v5227_v1 }
0x1571   :  { %v3157_v11 = vsel %vm187_vm2, %v5584_v18, 0.0 }
0x1572   :  { %3158 = vadd.xlane.f32.xlu1 %v3157_v11 }
0x15ba   :  { %v3144_v12 = vpop.xlane.xlu0 %3143 }
0x15bb   :  { %v3160_v29 = vmul.f32 0.03125, %v3144_v12 }
0x15bd   :  { %v3166_v22 = vsub.f32 %v5559_v55, %v3160_v29 }
0x15be   :  { %v3147_v21 = vpop.xlane.xlu1 %3146 }
0x15bf   :  { %v3161_v27 = vmul.f32 0.03125, %v3147_v21  ;;  %v3172_v32 = vmul.f32 %v3166_v22, %v3166_v22 }
0x15c1   :  { %v3167_v45 = vsub.f32 %v5564_v60, %v3161_v27  ;;  %v3178_v40 = vsel %vm187_vm2, %v3172_v32, 0.0 }
0x15c2   :  { %3179 = vadd.xlane.f32.xlu0 %v3178_v40 }
0x15c3   :  { %v3173_v53 = vmul.f32 %v3167_v45, %v3167_v45 }
0x15c5   :  { %v3181_v1 = vsel %vm187_vm2, %v3173_v53, 0.0 }
0x15c6   :  { %3182 = vadd.xlane.f32.xlu1 %v3181_v1 }
0x15ef   :  { %v3150_v15 = vpop.xlane.xlu0 %3149 }
0x15f0   :  { %v3162_v59 = vmul.f32 0.03125, %v3150_v15 }
0x15f2   :  { %v3168_v42 = vsub.f32 %v5569_v50, %v3162_v59 }
0x15f3   :  { %v3153_v49 = vpop.xlane.xlu0 %3152 }
0x15f4   :  { %v3163_v52 = vmul.f32 0.03125, %v3153_v49  ;;  %v3174_v43 = vmul.f32 %v3168_v42, %v3168_v42 }
0x15f6   :  { %v3169_v16 = vsub.f32 %v5574_v58, %v3163_v52  ;;  %v3184_v34 = vsel %vm187_vm2, %v3174_v43, 0.0 }
0x15f7   :  { %3185 = vadd.xlane.f32.xlu0 %v3184_v34  ;;  %v3156_v33 = vpop.xlane.xlu0 %3155 }
0x15f8   :  { %v3164_v54 = vmul.f32 0.03125, %v3156_v33  ;;  %v3175_v5 = vmul.f32 %v3169_v16, %v3169_v16 }
0x15fa   :  { %v3170_v48 = vsub.f32 %v5579_v23, %v3164_v54  ;;  %v3187_v56 = vsel %vm187_vm2, %v3175_v5, 0.0 }
0x15fb   :  { %3188 = vadd.xlane.f32.xlu1 %v3187_v56  ;;  %v3159_v37 = vpop.xlane.xlu1 %3158  ;;  %v4371_v56 = vld [vmem:[%s5707_s14 + $0x68] sm:$0xff]  }
0x15fc   :  { %v3165_v41 = vmul.f32 0.03125, %v3159_v37  ;;  %v3176_v30 = vmul.f32 %v3170_v48, %v3170_v48  ;;  %v4372_v37 = vld [vmem:[%s5707_s14 + $0x60] sm:$0xff]  }
0x15fe   :  { %v3171_v24 = vsub.f32 %v5584_v18, %v3165_v41  ;;  %v3190_v28 = vsel %vm187_vm2, %v3176_v30, 0.0  ;;  %v4373_v41 = vld [vmem:[%s5707_s14 + $0x58] sm:$0xff]   ;;  %v4374_v30 = vld [vmem:[%s5707_s14 + $0x50] sm:$0xff]  }
0x15ff   :  { %3191 = vadd.xlane.f32.xlu0 %v3190_v28  ;;  %v4376_v28 = vld [vmem:[%s5707_s14 + $0x40] sm:$0xff]  }
0x1600   :  { %v3177_v57 = vmul.f32 %v3171_v24, %v3171_v24 }
0x1602   :  { %v3193_v31 = vsel %vm187_vm2, %v3177_v57, 0.0  ;;  %v3706_v57 = vld [vmem:[%s5708_s13 + $0x1] ss:$0 sm:$0xff] }
0x1603   :  { %3194 = vadd.xlane.f32.xlu1 %v3193_v31 }
0x164b   :  { %v3180_v39 = vpop.xlane.xlu0 %3179 }
0x164c   :  { %v3196_v25 = vmul.f32 0.03125, %v3180_v39 }
0x164e   :  { %v3202_v10 = vadd.f32 1e-06, %v3196_v25 }
0x164f   :  { %v3183_v9 = vpop.xlane.xlu1 %3182 }
0x1650   :  { %4521 = vrsqrt.f32 %v3202_v10  ;;  %v3197_v61 = vmul.f32 0.03125, %v3183_v9 }
0x1652   :  { %v3203_v62 = vadd.f32 1e-06, %v3197_v61 }
0x1654   :  { %4523 = vrsqrt.f32 %v3203_v62 }
0x165d   :  { %v4522_v63 = vpop.eup %4521 }
0x165e   :  { %v3214_v2 = vmul.f32 %v4522_v63, %v3166_v22 }
0x1660   :  { %v3226_v3 = vmul.f32 %v3699_v4, %v3214_v2 }
0x1661   :  { %v4524_v20 = vpop.eup %4523 }
0x1662   :  { %v3215_v47 = vmul.f32 %v4524_v20, %v3167_v45  ;;  %v3238_v26 = vadd.f32 %v3700_v51, %v3226_v3 }
0x1664   :  { %v3227_v38 = vmul.f32 %v3699_v4, %v3215_v47 }
0x1666   :  { %v3239_v6 = vadd.f32 %v3700_v51, %v3227_v38 }
0x1668   :  { %v3244_v14 = vpack.c.bf16 %v3239_v6, %v3238_v26 }
0x166a   :  { %4265 = vmatmul.mubr.msk.bf16.vlgmr.msra.gmra.mxu1 %vm187_vm2, %v3244_v14 }
0x166b   :  { %4268 = vmatprep.mubr.msk.bf16.mxu1 %vm4546_vm0, %v4545_v0 }
0x1680   :  { %v3186_v17 = vpop.xlane.xlu0 %3185 }
0x1681   :  { %v3198_v19 = vmul.f32 0.03125, %v3186_v17 }
0x1683   :  { %v3204_v36 = vadd.f32 1e-06, %v3198_v19 }
0x1684   :  { %v3189_v35 = vpop.xlane.xlu1 %3188 }
0x1685   :  { %4525 = vrsqrt.f32 %v3204_v36  ;;  %v3199_v13 = vmul.f32 0.03125, %v3189_v35 }
0x1687   :  { %v3205_v7 = vadd.f32 1e-06, %v3199_v13 }
0x1688   :  { %v3192_v8 = vpop.xlane.xlu0 %3191 }
0x1689   :  { %4527 = vrsqrt.f32 %v3205_v7  ;;  %v3200_v11 = vmul.f32 0.03125, %v3192_v8 }
0x168b   :  { %v3206_v12 = vadd.f32 1e-06, %v3200_v11 }
0x168c   :  { %v3195_v29 = vpop.xlane.xlu1 %3194 }
0x168d   :  { %4529 = vrsqrt.f32 %v3206_v12  ;;  %v3201_v22 = vmul.f32 0.03125, %v3195_v29 }
0x168f   :  { %v3207_v21 = vadd.f32 1e-06, %v3201_v22 }
0x1691   :  { %4531 = vrsqrt.f32 %v3207_v21 }
0x1692   :  { %v4526_v27 = vpop.eup %4525 }
0x1693   :  { %v3216_v32 = vmul.f32 %v4526_v27, %v3168_v42 }
0x1695   :  { %v3228_v53 = vmul.f32 %v3699_v4, %v3216_v32 }
0x1696   :  { %v4528_v45 = vpop.eup %4527 }
0x1697   :  { %v3217_v40 = vmul.f32 %v4528_v45, %v3169_v16  ;;  %v3240_v46 = vadd.f32 %v3700_v51, %v3228_v53  ;;  %v4369_v16 = vld [vmem:[%s5707_s14 + $0x78] sm:$0xff]  }
0x1698   :  { %4277 = vmatpush3.bf16.msra.mxu0 %v4369_v16 }
0x1699   :  { %v3229_v1 = vmul.f32 %v3699_v4, %v3217_v40  ;;  %4278 = vmatprep.subr.bf16.mxu0 %v4545_v0 }
0x169a   :  { %v4530_v44 = vpop.eup %4529 }
0x169b   :  { %v3241_v15 = vadd.f32 %v3700_v51, %v3229_v1  ;;  %v3218_v59 = vmul.f32 %v4530_v44, %v3170_v48  ;;  %v4370_v48 = vld [vmem:[%s5707_s14 + $0x70] sm:$0xff]  }
0x169c   :  { %4279 = vmatpush3.bf16.msra.mxu0 %v4370_v48 }
0x169d   :  { %v3245_v49 = vpack.c.bf16 %v3241_v15, %v3240_v46  ;;  %v3230_v34 = vmul.f32 %v3699_v4, %v3218_v59  ;;  %4280 = vmatprep.subr.bf16.mxu0 %v4545_v0 }
0x169e   :  { %v4532_v52 = vpop.eup %4531 }
0x169f   :  { %4269 = vmatmul.mubr.msk.bf16.gmra.mxu1 %vm187_vm2, %v3245_v49  ;;  %v3219_v43 = vmul.f32 %v4532_v52, %v3171_v24  ;;  %v3242_v54 = vadd.f32 %v3700_v51, %v3230_v34  ;;  %v4375_v24 = vld [vmem:[%s5707_s14 + $0x48] sm:$0xff]  }
0x16a0   :  { %4272 = vmatprep.mubr.msk.bf16.mxu1 %vm4546_vm0, %v4545_v0  ;;  %4281 = vmatpush3.bf16.msra.mxu0 %v4371_v56 }
0x16a1   :  { %v3231_v33 = vmul.f32 %v3699_v4, %v3219_v43  ;;  %4282 = vmatprep.subr.bf16.mxu0 %v4545_v0 }
0x16a3   :  { %v3243_v42 = vadd.f32 %v3700_v51, %v3231_v33 }
0x16a4   :  { %4283 = vmatpush3.bf16.msra.mxu0 %v4372_v37 }
0x16a5   :  { %v3246_v5 = vpack.c.bf16 %v3243_v42, %v3242_v54  ;;  %4284 = vmatprep.subr.bf16.mxu0 %v4545_v0 }
0x16a7   :  { %4273 = vmatmul.mubr.msk.bf16.gmra.mxu1 %vm187_vm2, %v3246_v5 }
0x16a8   :  { %4285 = vmatpush3.bf16.msra.mxu0 %v4373_v41 }
0x16a9   :  { %4286 = vmatprep.subr.bf16.mxu0 %v4545_v0 }
0x16ac   :  { %4287 = vmatpush3.bf16.msra.mxu0 %v4374_v30 }
0x16ad   :  { %4288 = vmatprep.subr.bf16.mxu0 %v4545_v0 }
0x16b0   :  { %4289 = vmatpush3.bf16.msra.mxu0 %v4375_v24 }
0x16b1   :  { %4290 = vmatprep.subr.bf16.mxu0 %v4545_v0 }
0x16b4   :  { %4291 = vmatpush3.bf16.msra.mxu0 %v4376_v28 }
0x172a   :  { %v3315_v31 = vpop.f32.mrf.mxu1 }
0x172b   :  { %v3316_v39 = vadd.f32 %v3706_v57, %v3315_v31 }
0x172c   :  { %v4266_v25 = vpop.f32.mrf.mxu1 }
0x172d   :  { %v3338_v10 = vmul.f32 %v3316_v39, %v3316_v39 }
0x172e   :  { %v3318_v9 = vpop.f32.mrf.mxu1 }
0x172f   :  { %v3344_v61 = vmul.f32 %v3338_v10, %v3316_v39  ;;  %v3319_v62 = vadd.f32 %v3706_v57, %v3318_v9 }
0x1730   :  { %v4267_v63 = vpop.f32.mrf.mxu1 }
0x1731   :  { %v3350_v2 = vmul.f32 0.044715, %v3344_v61  ;;  %v3339_v4 = vmul.f32 %v3319_v62, %v3319_v62 }
0x1733   :  { %v3356_v20 = vadd.f32 %v3350_v2, %v3316_v39  ;;  %v3345_v3 = vmul.f32 %v3339_v4, %v3319_v62 }
0x1735   :  { %v3362_v47 = vmul.f32 0.7978846, %v3356_v20  ;;  %v3351_v51 = vmul.f32 0.044715, %v3345_v3 }
0x1737   :  { %4533 = vtanh.f32 %v3362_v47  ;;  %v3357_v38 = vadd.f32 %v3351_v51, %v3319_v62 }
0x1739   :  { %v3363_v26 = vmul.f32 0.7978846, %v3357_v38 }
0x173b   :  { %4535 = vtanh.f32 %v3363_v26 }
0x1744   :  { %v4534_v6 = vpop.eup %4533 }
0x1745   :  { %v3374_v14 = vadd.f32 1.0, %v4534_v6 }
0x1747   :  { %v3380_v19 = vmul.f32 0.5, %v3374_v14 }
0x1748   :  { %v4536_v17 = vpop.eup %4535 }
0x1749   :  { %v3375_v36 = vadd.f32 1.0, %v4536_v17  ;;  %v3386_v13 = vmul.f32 %v3380_v19, %v3316_v39  ;;  %v3729_v17 = vld [vmem:[%s5709_s15 + $0x1] ss:$0 sm:$0xff] }
0x174b   :  { %v3381_v35 = vmul.f32 0.5, %v3375_v36  ;;  %v3739_v36 = vld [vmem:[%s5710_s16 + $0x1] ss:$0 sm:$0xff] }
0x174d   :  { %v3387_v7 = vmul.f32 %v3381_v35, %v3319_v62 }
0x174f   :  { %v3392_v8 = vpack.c.bf16 %v3387_v7, %v3386_v13 }
0x1751   :  { %4293 = vmatmul.mubr.bf16.vlgmr.msra.gmra.mxu0 %v3392_v8 }
0x1752   :  { %4296 = vmatprep.mubr.msk.bf16.mxu0 %vm4546_vm0, %v4545_v0 }
0x175f   :  { %v3323_v11 = vpop.f32.mrf.mxu1 }
0x1760   :  { %v3324_v12 = vadd.f32 %v3706_v57, %v3323_v11 }
0x1761   :  { %v4270_v29 = vpop.f32.mrf.mxu1 }
0x1762   :  { %v3340_v22 = vmul.f32 %v3324_v12, %v3324_v12 }
0x1763   :  { %v3326_v21 = vpop.f32.mrf.mxu1 }
0x1764   :  { %v3346_v27 = vmul.f32 %v3340_v22, %v3324_v12  ;;  %v3327_v32 = vadd.f32 %v3706_v57, %v3326_v21 }
0x1765   :  { %v4271_v45 = vpop.f32.mrf.mxu1 }
0x1766   :  { %v3352_v40 = vmul.f32 0.044715, %v3346_v27  ;;  %v3341_v53 = vmul.f32 %v3327_v32, %v3327_v32 }
0x1767   :  { %v3331_v1 = vpop.f32.mrf.mxu1 }
0x1768   :  { %v3358_v44 = vadd.f32 %v3352_v40, %v3324_v12  ;;  %v3347_v46 = vmul.f32 %v3341_v53, %v3327_v32  ;;  %v3332_v15 = vadd.f32 %v3706_v57, %v3331_v1 }
0x1769   :  { %v4274_v59 = vpop.f32.mrf.mxu1 }
0x176a   :  { %v3364_v49 = vmul.f32 0.7978846, %v3358_v44  ;;  %v3353_v52 = vmul.f32 0.044715, %v3347_v46  ;;  %v3342_v43 = vmul.f32 %v3332_v15, %v3332_v15 }
0x176b   :  { %v3334_v34 = vpop.f32.mrf.mxu1 }
0x176c   :  { %4537 = vtanh.f32 %v3364_v49  ;;  %v3359_v33 = vadd.f32 %v3353_v52, %v3327_v32  ;;  %v3348_v54 = vmul.f32 %v3342_v43, %v3332_v15  ;;  %v3335_v42 = vadd.f32 %v3706_v57, %v3334_v34 }
0x176d   :  { %v4275_v5 = vpop.f32.mrf.mxu1 }
0x176e   :  { %v3365_v16 = vmul.f32 0.7978846, %v3359_v33  ;;  %v3354_v48 = vmul.f32 0.044715, %v3348_v54  ;;  %v3343_v56 = vmul.f32 %v3335_v42, %v3335_v42 }
0x1770   :  { %4539 = vtanh.f32 %v3365_v16  ;;  %v3360_v37 = vadd.f32 %v3354_v48, %v3332_v15  ;;  %v3349_v41 = vmul.f32 %v3343_v56, %v3335_v42 }
0x1772   :  { %v3366_v30 = vmul.f32 0.7978846, %v3360_v37  ;;  %v3355_v24 = vmul.f32 0.044715, %v3349_v41 }
0x1774   :  { %4541 = vtanh.f32 %v3366_v30  ;;  %v3361_v28 = vadd.f32 %v3355_v24, %v3335_v42 }
0x1776   :  { %v3367_v31 = vmul.f32 0.7978846, %v3361_v28 }
0x1778   :  { %4543 = vtanh.f32 %v3367_v31 }
0x1779   :  { %v4538_v39 = vpop.eup %4537 }
0x177a   :  { %v3376_v25 = vadd.f32 1.0, %v4538_v39 }
0x177c   :  { %v3382_v61 = vmul.f32 0.5, %v3376_v25 }
0x177d   :  { %v4540_v10 = vpop.eup %4539 }
0x177e   :  { %v3377_v9 = vadd.f32 1.0, %v4540_v10  ;;  %v3388_v63 = vmul.f32 %v3382_v61, %v3324_v12 }
0x1780   :  { %v3383_v62 = vmul.f32 0.5, %v3377_v9 }
0x1781   :  { %v4542_v57 = vpop.eup %4541 }
0x1782   :  { %v3389_v2 = vmul.f32 %v3383_v62, %v3327_v32  ;;  %v3378_v4 = vadd.f32 1.0, %v4542_v57 }
0x1784   :  { %v3393_v20 = vpack.c.bf16 %v3389_v2, %v3388_v63  ;;  %v3384_v51 = vmul.f32 0.5, %v3378_v4 }
0x1785   :  { %v4544_v3 = vpop.eup %4543 }
0x1786   :  { %4297 = vmatmul.mubr.bf16.gmra.mxu0 %v3393_v20  ;;  %v3379_v47 = vadd.f32 1.0, %v4544_v3  ;;  %v3390_v26 = vmul.f32 %v3384_v51, %v3332_v15 }
0x1787   :  { %4300 = vmatprep.mubr.msk.bf16.mxu0 %vm4546_vm0, %v4545_v0 }
0x1788   :  { %v3385_v38 = vmul.f32 0.5, %v3379_v47 }
0x178a   :  { %v3391_v6 = vmul.f32 %v3385_v38, %v3335_v42 }
0x178c   :  { %v3394_v14 = vpack.c.bf16 %v3391_v6, %v3390_v26 }
0x178e   :  { %4301 = vmatmul.mubr.bf16.gmra.mxu0 %v3394_v14 }
0x1811   :  { %v3502_v19 = vpop.f32.mrf.mxu0 }
0x1812   :  { %v3503_v35 = vadd.f32 %v3729_v17, %v3502_v19 }
0x1813   :  { %v4294_v13 = vpop.f32.mrf.mxu0 }
0x1814   :  { %v3533_v7 = vmul.f32 %v3739_v36, %v3503_v35 }
0x1815   :  { %v3505_v8 = vpop.f32.mrf.mxu0 }
0x1816   :  { %v3539_v0 = vadd.f32 %v3533_v7, %v5559_v55  ;;  %v3506_v11 = vadd.f32 %v3729_v17, %v3505_v8 }
0x1817   :  { %v4295_v12 = vpop.f32.mrf.mxu0 }
0x1818   :  { %3545 = vst.msk [vmem:[%s5711_s17] sm:$0xff] %vm187_vm2, %v3539_v0  ;;  %v3534_v29 = vmul.f32 %v3739_v36, %v3506_v11 }
0x181a   :  { %v3540_v22 = vadd.f32 %v3534_v29, %v5564_v60 }
0x181c   :  { %3546 = vst.msk [vmem:[%s5711_s17 + $0x8] sm:$0xff] %vm187_vm2, %v3540_v22 }
0x1846   :  { %v3510_v21 = vpop.f32.mrf.mxu0 }
0x1847   :  { %v3511_v27 = vadd.f32 %v3729_v17, %v3510_v21 }
0x1848   :  { %v4298_v32 = vpop.f32.mrf.mxu0 }
0x1849   :  { %v3535_v45 = vmul.f32 %v3739_v36, %v3511_v27 }
0x184a   :  { %v3513_v55 = vpop.f32.mrf.mxu0 }
0x184b   :  { %v3541_v40 = vadd.f32 %v3535_v45, %v5569_v50  ;;  %v3514_v53 = vadd.f32 %v3729_v17, %v3513_v55 }
0x184c   :  { %v4299_v1 = vpop.f32.mrf.mxu0 }
0x184d   :  { %3547 = vst.msk [vmem:[%s5711_s17 + $0x10] sm:$0xff] %vm187_vm2, %v3541_v40  ;;  %v3536_v60 = vmul.f32 %v3739_v36, %v3514_v53 }
0x184e   :  { %v3518_v44 = vpop.f32.mrf.mxu0 }
0x184f   :  { %v3542_v46 = vadd.f32 %v3536_v60, %v5574_v58  ;;  %v3519_v15 = vadd.f32 %v3729_v17, %v3518_v44 }
0x1850   :  { %v4302_v59 = vpop.f32.mrf.mxu0 }
0x1851   :  { %3548 = vst.msk [vmem:[%s5711_s17 + $0x18] sm:$0xff] %vm187_vm2, %v3542_v46  ;;  %v3537_v49 = vmul.f32 %v3739_v36, %v3519_v15 }
0x1852   :  { %v3521_v50 = vpop.f32.mrf.mxu0 }
0x1853   :  { %v3543_v52 = vadd.f32 %v3537_v49, %v5579_v23  ;;  %v3522_v43 = vadd.f32 %v3729_v17, %v3521_v50 }
0x1854   :  { %v4303_v34 = vpop.f32.mrf.mxu0 }
0x1855   :  { %3549 = vst.msk [vmem:[%s5711_s17 + $0x20] sm:$0xff] %vm187_vm2, %v3543_v52  ;;  %v3538_v33 = vmul.f32 %v3739_v36, %v3522_v43 }
0x1857   :  { %v3544_v58 = vadd.f32 %v3538_v33, %v5584_v18 }
0x1859   :  { %3550 = vst.msk [vmem:[%s5711_s17 + $0x28] sm:$0xff] %vm187_vm2, %v3544_v58 }

</bundles_post_ra>
